<compile_context>
chip_gen: v6e
topology: v6e:2x2x1
jax: 0.10.0
libtpu: 0.0.40
codegen_flags: <defaults>
</compile_context>

<pallas_src>
import jax
import jax.numpy as jnp
from jax.experimental import pallas as pl
from jax.experimental.pallas import tpu as pltpu

C1, C2, C3 = 16, 32, 64  # conv1/conv2/conv3 output channels (fixed by the module)


# ----------------------------- in-kernel helpers ---------------------------- #

def _maxpool2x2(v):
    """MaxPool2d(2, 2) on a (Bt, H, W, C) value (C on lanes, W on sublanes)."""
    Bt, H, W, C = v.shape
    v = v.reshape(Bt, H // 2, 2, W, C)        # split the MAJOR dim H: layout no-op
    v = jnp.max(v, axis=2)
    v = v.reshape(Bt, H // 2, W // 2, 2, C)   # split the sublane dim W
    v = jnp.max(v, axis=3)
    return v


def _write_halo(pad_ref, x):
    """Write x into the interior of pad_ref and (re)zero the 1-pixel border.

    Only the thin border is rewritten each step (megacore-safe), the interior
    is fully overwritten, so no full-scratch zeroing is ever needed.
    """
    Bt, H, W, C = x.shape
    row0 = jnp.zeros((Bt, 1, W + 2, C), x.dtype)
    col0 = jnp.zeros((Bt, H, 1, C), x.dtype)
    pad_ref[:, 0:1, :, :] = row0
    pad_ref[:, H + 1:H + 2, :, :] = row0
    pad_ref[:, 1:1 + H, 0:1, :] = col0
    pad_ref[:, 1:1 + H, W + 1:W + 2, :] = col0
    pad_ref[:, 1:1 + H, 1:1 + W, :] = x


def _im2col_conv(cols_ref, w_ref, b_ref, Bt, H, W, Cin, read_tap):
    """3x3 same-conv + bias + ReLU as ONE bf16 MXU matmul with f32 accumulation.

    cols_ref: VMEM scratch (Bt*H*W, 9*Cin) f32 -- filled with 9 explicit copies.
    w_ref:    (9*Cin, Cout) bf16 weights, rows ordered (kh, kw, cin).
    b_ref:    (1, Cout) f32 bias.
    read_tap: (kh, kw) -> (Bt, H, W, Cin) f32 shifted slice of the padded input.
    """
    M = Bt * H * W
    Cout = w_ref.shape[1]
    for kh in range(3):
        for kw in range(3):
            t = kh * 3 + kw
            cols_ref[:, t * Cin:(t + 1) * Cin] = read_tap(kh, kw).reshape(M, Cin)
    acc = jnp.dot(cols_ref[...].astype(jnp.bfloat16), w_ref[...],
                  preferred_element_type=jnp.float32)
    y = jnp.maximum(acc + b_ref[...], 0.0)
    return y.reshape(Bt, H, W, Cout)


def _make_kernel(Bt, H, W):
    H2, W2 = H // 2, W // 2
    H4, W4 = H // 4, W // 4

    def kernel(x_ref, w1_ref, b1_ref, w2_ref, b2_ref, w3_ref, b3_ref, o_ref,
               cols1_ref, pad2_ref, cols2_ref, pad3_ref, cols3_ref):
        # ---- conv1: the input block is already zero-padded (Cin = 1). ----
        h = _im2col_conv(cols1_ref, w1_ref, b1_ref, Bt, H, W, 1,
                         lambda kh, kw: x_ref[:, kh:kh + H, kw:kw + W, :])
        h = _maxpool2x2(h)                                    # (Bt, H/2, W/2, 16)

        # ---- conv2: halo scratch + single MXU matmul. ----
        _write_halo(pad2_ref, h)
        h = _im2col_conv(cols2_ref, w2_ref, b2_ref, Bt, H2, W2, C1,
                         lambda kh, kw: pad2_ref[:, kh:kh + H2, kw:kw + W2, :])
        h = _maxpool2x2(h)                                    # (Bt, H/4, W/4, 32)

        # ---- conv3 ----
        _write_halo(pad3_ref, h)
        h = _im2col_conv(cols3_ref, w3_ref, b3_ref, Bt, H4, W4, C2,
                         lambda kh, kw: pad3_ref[:, kh:kh + H4, kw:kw + W4, :])
        h = _maxpool2x2(h)                                    # (Bt, H/8, W/8, 64)

        o_ref[...] = h

    return kernel


# --------------------------------- wrapper ---------------------------------- #

def _prep_w(w):
    """torch (Cout, Cin, 3, 3) -> (9*Cin, Cout) bf16, rows ordered (kh, kw, cin)."""
    cout, cin = w.shape[0], w.shape[1]
    return jnp.transpose(w, (2, 3, 1, 0)).reshape(9 * cin, cout).astype(jnp.bfloat16)


def _pick_bt(B):
    """Images per grid step: batch work per step but keep the grid >= 2 (megacore)."""
    if B <= 2:
        return 1
    for bt in (8, 4, 2):
        if B % bt == 0 and B // bt >= 2:
            return bt
    return 1


@jax.jit
def conv_base_forward(x, params):
    """x: (B, H, W) float32 -- the input the PyTorch module sees before unsqueeze."""
    B, H, W = x.shape
    assert H % 8 == 0 and W % 8 == 0, "need three exact 2x2 pools"
    Hf, Wf = H // 8, W // 8
    Bt = _pick_bt(B)

    # Raw image, zero-padded for conv1 (~1.3x bytes, NOT a 9x im2col) and given a
    # unit channel dim so channels sit on the lane axis inside the kernel.
    xp = jnp.pad(x.astype(jnp.float32), ((0, 0), (1, 1), (1, 1)))[..., None]

    w1 = _prep_w(params["w1"])                         # (9,   16)  bf16
    w2 = _prep_w(params["w2"])                         # (144, 32)  bf16
    w3 = _prep_w(params["w3"])                         # (288, 64)  bf16
    b1 = params["b1"].reshape(1, C1).astype(jnp.float32)
    b2 = params["b2"].reshape(1, C2).astype(jnp.float32)
    b3 = params["b3"].reshape(1, C3).astype(jnp.float32)

    out = pl.pallas_call(
        _make_kernel(Bt, H, W),
        out_shape=jax.ShapeDtypeStruct((B, Hf, Wf, C3), jnp.float32),
        grid=(B // Bt,),
        in_specs=[
            pl.BlockSpec((Bt, H + 2, W + 2, 1), lambda b: (b, 0, 0, 0)),  # padded image
            pl.BlockSpec((9, C1), lambda b: (0, 0)),                      # weights resident
            pl.BlockSpec((1, C1), lambda b: (0, 0)),
            pl.BlockSpec((9 * C1, C2), lambda b: (0, 0)),
            pl.BlockSpec((1, C2), lambda b: (0, 0)),
            pl.BlockSpec((9 * C2, C3), lambda b: (0, 0)),
            pl.BlockSpec((1, C3), lambda b: (0, 0)),
        ],
        out_specs=pl.BlockSpec((Bt, Hf, Wf, C3), lambda b: (b, 0, 0, 0)),
        scratch_shapes=[
            pltpu.VMEM((Bt * H * W, 9), jnp.float32),                     # conv1 im2col
            pltpu.VMEM((Bt, H // 2 + 2, W // 2 + 2, C1), jnp.float32),    # conv2 halo
            pltpu.VMEM((Bt * (H // 2) * (W // 2), 9 * C1), jnp.float32),  # conv2 im2col
            pltpu.VMEM((Bt, H // 4 + 2, W // 4 + 2, C2), jnp.float32),    # conv3 halo
            pltpu.VMEM((Bt * (H // 4) * (W // 4), 9 * C2), jnp.float32),  # conv3 im2col
        ],
        compiler_params=pltpu.CompilerParams(dimension_semantics=("parallel",)),
    )(xp, w1, b1, w2, b2, w3, b3)

    # torch.flatten(x, start_dim=1) flattens in NCHW (channel-major) order.
    return jnp.transpose(out, (0, 3, 1, 2)).reshape(B, -1)


# ------------------------- params / pure-JAX reference ---------------------- #

def init_params(key):
    """Deterministic parameter init matching ConvBase shapes (PyTorch layout)."""
    ks = jax.random.split(key, 6)

    def conv_w(k, cout, cin):
        scale = 1.0 / jnp.sqrt(cin * 9.0)
        return jax.random.uniform(k, (cout, cin, 3, 3), jnp.float32, -scale, scale)

    def conv_b(k, cout, cin):
        scale = 1.0 / jnp.sqrt(cin * 9.0)
        return jax.random.uniform(k, (cout,), jnp.float32, -scale, scale)

    return {
        "w1": conv_w(ks[0], C1, 1),   "b1": conv_b(ks[1], C1, 1),
        "w2": conv_w(ks[2], C2, C1),  "b2": conv_b(ks[3], C2, C1),
        "w3": conv_w(ks[4], C3, C2),  "b3": conv_b(ks[5], C3, C2),
    }


def reference_forward(x, params):
    """Pure-XLA f32 reference replicating the PyTorch forward exactly."""
    h = x[:, None, :, :].astype(jnp.float32)

    def conv_relu(h, w, b):
        y = jax.lax.conv_general_dilated(
            h, w, window_strides=(1, 1), padding=((1, 1), (1, 1)),
            dimension_numbers=("NCHW", "OIHW", "NCHW"),
            precision=jax.lax.Precision.HIGHEST)
        return jnp.maximum(y + b[None, :, None, None], 0.0)

    def pool(h):
        return jax.lax.reduce_window(h, -jnp.inf, jax.lax.max,
                                     (1, 1, 2, 2), (1, 1, 2, 2), "VALID")

    h = pool(conv_relu(h, params["w1"], params["b1"]))
    h = pool(conv_relu(h, params["w2"], params["b2"]))
    h = pool(conv_relu(h, params["w3"], params["b3"]))
    return h.reshape(h.shape[0], -1)


if __name__ == "__main__":
    key = jax.random.PRNGKey(0)
    pkey, xkey = jax.random.split(key)
    params = init_params(pkey)

    # Small input consistent with the module: (B, H, W) -> unsqueeze -> (B, 1, H, W)
    x = jax.random.normal(xkey, (2, 16, 16), dtype=jnp.float32)

    out = jax.block_until_ready(conv_base_forward(x, params))
    assert out.shape == (2, C3 * 2 * 2), out.shape

    ref = reference_forward(x, params)
    max_err = float(jnp.max(jnp.abs(out - ref)))
    # Matmul operands are bf16 (f32 accumulation), so allow a small numeric
    # delta vs. the pure-f32 XLA reference.
    assert max_err < 5e-2, f"mismatch vs XLA reference, max abs err = {max_err}"

    print("KERNEL_OK")
</pallas_src>

<mosaic_0001>
module attributes {stable_mosaic.version = 11 : i64} {
  func.func @kernel(%arg0: i32, %arg1: memref<1x18x18x1xf32, #tpu.memory_space<vmem>>, %arg2: memref<9x16xbf16, #tpu.memory_space<vmem>>, %arg3: memref<1x16xf32, #tpu.memory_space<vmem>>, %arg4: memref<144x32xbf16, #tpu.memory_space<vmem>>, %arg5: memref<1x32xf32, #tpu.memory_space<vmem>>, %arg6: memref<288x64xbf16, #tpu.memory_space<vmem>>, %arg7: memref<1x64xf32, #tpu.memory_space<vmem>>, %arg8: memref<1x2x2x64xf32, #tpu.memory_space<vmem>>, %arg9: memref<256x9xf32, #tpu.memory_space<vmem>>, %arg10: memref<1x10x10x16xf32, #tpu.memory_space<vmem>>, %arg11: memref<64x144xf32, #tpu.memory_space<vmem>>, %arg12: memref<1x6x6x32xf32, #tpu.memory_space<vmem>>, %arg13: memref<16x288xf32, #tpu.memory_space<vmem>>) attributes {dimension_semantics = [#tpu.dimension_semantics<parallel>], iteration_bounds = array<i64: 2>, scalar_prefetch = 0 : i64, scratch_operands = 5 : i64, tpu.core_type = #tpu.core_type<tc>, window_params = [{transform_indices = @transform_0, window_bounds = array<i64: 1, 18, 18, 1>}, {pipeline_mode = #tpu.pipeline_mode<synchronous>, transform_indices = @transform_1, window_bounds = array<i64: 9, 16>}, {pipeline_mode = #tpu.pipeline_mode<synchronous>, transform_indices = @transform_2, window_bounds = array<i64: 1, 16>}, {pipeline_mode = #tpu.pipeline_mode<synchronous>, transform_indices = @transform_3, window_bounds = array<i64: 144, 32>}, {pipeline_mode = #tpu.pipeline_mode<synchronous>, transform_indices = @transform_4, window_bounds = array<i64: 1, 32>}, {pipeline_mode = #tpu.pipeline_mode<synchronous>, transform_indices = @transform_5, window_bounds = array<i64: 288, 64>}, {pipeline_mode = #tpu.pipeline_mode<synchronous>, transform_indices = @transform_6, window_bounds = array<i64: 1, 64>}, {transform_indices = @transform_7, window_bounds = array<i64: 1, 2, 2, 64>}]} {
    %c0 = arith.constant 0 : index
    %c0_0 = arith.constant 0 : index
    %c0_1 = arith.constant 0 : index
    %c0_2 = arith.constant 0 : index
    %0 = vector.load %arg1[%c0, %c0_0, %c0_1, %c0_2] : memref<1x18x18x1xf32, #tpu.memory_space<vmem>>, vector<1x16x16x1xf32>
    %1 = vector.shape_cast %0 : vector<1x16x16x1xf32> to vector<256x1xf32>
    %c0_3 = arith.constant 0 : index
    %c0_4 = arith.constant 0 : index
    %2 = vector.load %arg9[%c0_3, %c0_4] : memref<256x9xf32, #tpu.memory_space<vmem>>, vector<256x1xf32>
    tpu.vector_store %arg9[%c0_3, %c0_4], %1 {strides = array<i32>} : memref<256x9xf32, #tpu.memory_space<vmem>>, vector<256x1xf32>,
    %c0_5 = arith.constant 0 : index
    %c0_6 = arith.constant 0 : index
    %c1 = arith.constant 1 : index
    %c0_7 = arith.constant 0 : index
    %3 = vector.load %arg1[%c0_5, %c0_6, %c1, %c0_7] : memref<1x18x18x1xf32, #tpu.memory_space<vmem>>, vector<1x16x16x1xf32>
    %4 = vector.shape_cast %3 : vector<1x16x16x1xf32> to vector<256x1xf32>
    %c0_8 = arith.constant 0 : index
    %c1_9 = arith.constant 1 : index
    %5 = vector.load %arg9[%c0_8, %c1_9] : memref<256x9xf32, #tpu.memory_space<vmem>>, vector<256x1xf32>
    tpu.vector_store %arg9[%c0_8, %c1_9], %4 {strides = array<i32>} : memref<256x9xf32, #tpu.memory_space<vmem>>, vector<256x1xf32>,
    %c0_10 = arith.constant 0 : index
    %c0_11 = arith.constant 0 : index
    %c2 = arith.constant 2 : index
    %c0_12 = arith.constant 0 : index
    %6 = vector.load %arg1[%c0_10, %c0_11, %c2, %c0_12] : memref<1x18x18x1xf32, #tpu.memory_space<vmem>>, vector<1x16x16x1xf32>
    %7 = vector.shape_cast %6 : vector<1x16x16x1xf32> to vector<256x1xf32>
    %c0_13 = arith.constant 0 : index
    %c2_14 = arith.constant 2 : index
    %8 = vector.load %arg9[%c0_13, %c2_14] : memref<256x9xf32, #tpu.memory_space<vmem>>, vector<256x1xf32>
    tpu.vector_store %arg9[%c0_13, %c2_14], %7 {strides = array<i32>} : memref<256x9xf32, #tpu.memory_space<vmem>>, vector<256x1xf32>,
    %c0_15 = arith.constant 0 : index
    %c1_16 = arith.constant 1 : index
    %c0_17 = arith.constant 0 : index
    %c0_18 = arith.constant 0 : index
    %9 = vector.load %arg1[%c0_15, %c1_16, %c0_17, %c0_18] : memref<1x18x18x1xf32, #tpu.memory_space<vmem>>, vector<1x16x16x1xf32>
    %10 = vector.shape_cast %9 : vector<1x16x16x1xf32> to vector<256x1xf32>
    %c0_19 = arith.constant 0 : index
    %c3 = arith.constant 3 : index
    %11 = vector.load %arg9[%c0_19, %c3] : memref<256x9xf32, #tpu.memory_space<vmem>>, vector<256x1xf32>
    tpu.vector_store %arg9[%c0_19, %c3], %10 {strides = array<i32>} : memref<256x9xf32, #tpu.memory_space<vmem>>, vector<256x1xf32>,
    %c0_20 = arith.constant 0 : index
    %c1_21 = arith.constant 1 : index
    %c1_22 = arith.constant 1 : index
    %c0_23 = arith.constant 0 : index
    %12 = vector.load %arg1[%c0_20, %c1_21, %c1_22, %c0_23] : memref<1x18x18x1xf32, #tpu.memory_space<vmem>>, vector<1x16x16x1xf32>
    %13 = vector.shape_cast %12 : vector<1x16x16x1xf32> to vector<256x1xf32>
    %c0_24 = arith.constant 0 : index
    %c4 = arith.constant 4 : index
    %14 = vector.load %arg9[%c0_24, %c4] : memref<256x9xf32, #tpu.memory_space<vmem>>, vector<256x1xf32>
    tpu.vector_store %arg9[%c0_24, %c4], %13 {strides = array<i32>} : memref<256x9xf32, #tpu.memory_space<vmem>>, vector<256x1xf32>,
    %c0_25 = arith.constant 0 : index
    %c1_26 = arith.constant 1 : index
    %c2_27 = arith.constant 2 : index
    %c0_28 = arith.constant 0 : index
    %15 = vector.load %arg1[%c0_25, %c1_26, %c2_27, %c0_28] : memref<1x18x18x1xf32, #tpu.memory_space<vmem>>, vector<1x16x16x1xf32>
    %16 = vector.shape_cast %15 : vector<1x16x16x1xf32> to vector<256x1xf32>
    %c0_29 = arith.constant 0 : index
    %c5 = arith.constant 5 : index
    %17 = vector.load %arg9[%c0_29, %c5] : memref<256x9xf32, #tpu.memory_space<vmem>>, vector<256x1xf32>
    tpu.vector_store %arg9[%c0_29, %c5], %16 {strides = array<i32>} : memref<256x9xf32, #tpu.memory_space<vmem>>, vector<256x1xf32>,
    %c0_30 = arith.constant 0 : index
    %c2_31 = arith.constant 2 : index
    %c0_32 = arith.constant 0 : index
    %c0_33 = arith.constant 0 : index
    %18 = vector.load %arg1[%c0_30, %c2_31, %c0_32, %c0_33] : memref<1x18x18x1xf32, #tpu.memory_space<vmem>>, vector<1x16x16x1xf32>
    %19 = vector.shape_cast %18 : vector<1x16x16x1xf32> to vector<256x1xf32>
    %c0_34 = arith.constant 0 : index
    %c6 = arith.constant 6 : index
    %20 = vector.load %arg9[%c0_34, %c6] : memref<256x9xf32, #tpu.memory_space<vmem>>, vector<256x1xf32>
    tpu.vector_store %arg9[%c0_34, %c6], %19 {strides = array<i32>} : memref<256x9xf32, #tpu.memory_space<vmem>>, vector<256x1xf32>,
    %c0_35 = arith.constant 0 : index
    %c2_36 = arith.constant 2 : index
    %c1_37 = arith.constant 1 : index
    %c0_38 = arith.constant 0 : index
    %21 = vector.load %arg1[%c0_35, %c2_36, %c1_37, %c0_38] : memref<1x18x18x1xf32, #tpu.memory_space<vmem>>, vector<1x16x16x1xf32>
    %22 = vector.shape_cast %21 : vector<1x16x16x1xf32> to vector<256x1xf32>
    %c0_39 = arith.constant 0 : index
    %c7 = arith.constant 7 : index
    %23 = vector.load %arg9[%c0_39, %c7] : memref<256x9xf32, #tpu.memory_space<vmem>>, vector<256x1xf32>
    tpu.vector_store %arg9[%c0_39, %c7], %22 {strides = array<i32>} : memref<256x9xf32, #tpu.memory_space<vmem>>, vector<256x1xf32>,
    %c0_40 = arith.constant 0 : index
    %c2_41 = arith.constant 2 : index
    %c2_42 = arith.constant 2 : index
    %c0_43 = arith.constant 0 : index
    %24 = vector.load %arg1[%c0_40, %c2_41, %c2_42, %c0_43] : memref<1x18x18x1xf32, #tpu.memory_space<vmem>>, vector<1x16x16x1xf32>
    %25 = vector.shape_cast %24 : vector<1x16x16x1xf32> to vector<256x1xf32>
    %c0_44 = arith.constant 0 : index
    %c8 = arith.constant 8 : index
    %26 = vector.load %arg9[%c0_44, %c8] : memref<256x9xf32, #tpu.memory_space<vmem>>, vector<256x1xf32>
    tpu.vector_store %arg9[%c0_44, %c8], %25 {strides = array<i32>} : memref<256x9xf32, #tpu.memory_space<vmem>>, vector<256x1xf32>,
    %c0_45 = arith.constant 0 : index
    %c0_46 = arith.constant 0 : index
    %27 = vector.load %arg9[%c0_45, %c0_46] : memref<256x9xf32, #tpu.memory_space<vmem>>, vector<256x9xf32>
    %28 = arith.truncf %27 : vector<256x9xf32> to vector<256x9xbf16>
    %c0_47 = arith.constant 0 : index
    %c0_48 = arith.constant 0 : index
    %29 = vector.load %arg2[%c0_47, %c0_48] : memref<9x16xbf16, #tpu.memory_space<vmem>>, vector<9x16xbf16>
    %cst = arith.constant dense<0.000000e+00> : vector<256x16xf32>
    %30 = tpu.matmul %28, %29, %cst {dimension_numbers = #tpu.dot_dimension_numbers<[1], [0], [0], [1], [0, 0, 1, 1], [], []>} : vector<256x9xbf16>, vector<9x16xbf16>, vector<256x16xf32> -> vector<256x16xf32>
    %c0_49 = arith.constant 0 : index
    %c0_50 = arith.constant 0 : index
    %31 = vector.load %arg3[%c0_49, %c0_50] : memref<1x16xf32, #tpu.memory_space<vmem>>, vector<1x16xf32>
    %32 = vector.broadcast %31 : vector<1x16xf32> to vector<256x16xf32>
    %33 = arith.addf %30, %32 : vector<256x16xf32>
    %cst_51 = arith.constant 0.000000e+00 : f32
    %34 = vector.broadcast %cst_51 : f32 to vector<256x16xf32>
    %35 = arith.maximumf %33, %34 : vector<256x16xf32>
    %36 = vector.shape_cast %35 : vector<256x16xf32> to vector<1x16x16x16xf32>
    %37 = vector.shape_cast %36 : vector<1x16x16x16xf32> to vector<1x8x2x16x16xf32>
    %cst_52 = arith.constant dense<0xFF800000> : vector<1x8x16x16xf32>
    %38 = vector.multi_reduction <maximumf>, %37, %cst_52 [2] : vector<1x8x2x16x16xf32> to vector<1x8x16x16xf32>
    %39 = vector.shape_cast %38 : vector<1x8x16x16xf32> to vector<1x8x8x2x16xf32>
    %cst_53 = arith.constant dense<0xFF800000> : vector<1x8x8x16xf32>
    %40 = vector.multi_reduction <maximumf>, %39, %cst_53 [3] : vector<1x8x8x2x16xf32> to vector<1x8x8x16xf32>
    %cst_54 = arith.constant 0.000000e+00 : f32
    %41 = vector.broadcast %cst_54 : f32 to vector<1x1x10x16xf32>
    %cst_55 = arith.constant 0.000000e+00 : f32
    %42 = vector.broadcast %cst_55 : f32 to vector<1x8x1x16xf32>
    %c0_56 = arith.constant 0 : index
    %c0_57 = arith.constant 0 : index
    %c0_58 = arith.constant 0 : index
    %c0_59 = arith.constant 0 : index
    %43 = vector.load %arg10[%c0_56, %c0_57, %c0_58, %c0_59] : memref<1x10x10x16xf32, #tpu.memory_space<vmem>>, vector<1x1x10x16xf32>
    tpu.vector_store %arg10[%c0_56, %c0_57, %c0_58, %c0_59], %41 {strides = array<i32>} : memref<1x10x10x16xf32, #tpu.memory_space<vmem>>, vector<1x1x10x16xf32>,
    %c0_60 = arith.constant 0 : index
    %c9 = arith.constant 9 : index
    %c0_61 = arith.constant 0 : index
    %c0_62 = arith.constant 0 : index
    %44 = vector.load %arg10[%c0_60, %c9, %c0_61, %c0_62] : memref<1x10x10x16xf32, #tpu.memory_space<vmem>>, vector<1x1x10x16xf32>
    tpu.vector_store %arg10[%c0_60, %c9, %c0_61, %c0_62], %41 {strides = array<i32>} : memref<1x10x10x16xf32, #tpu.memory_space<vmem>>, vector<1x1x10x16xf32>,
    %c0_63 = arith.constant 0 : index
    %c1_64 = arith.constant 1 : index
    %c0_65 = arith.constant 0 : index
    %c0_66 = arith.constant 0 : index
    %45 = vector.load %arg10[%c0_63, %c1_64, %c0_65, %c0_66] : memref<1x10x10x16xf32, #tpu.memory_space<vmem>>, vector<1x8x1x16xf32>
    tpu.vector_store %arg10[%c0_63, %c1_64, %c0_65, %c0_66], %42 {strides = array<i32>} : memref<1x10x10x16xf32, #tpu.memory_space<vmem>>, vector<1x8x1x16xf32>,
    %c0_67 = arith.constant 0 : index
    %c1_68 = arith.constant 1 : index
    %c9_69 = arith.constant 9 : index
    %c0_70 = arith.constant 0 : index
    %46 = vector.load %arg10[%c0_67, %c1_68, %c9_69, %c0_70] : memref<1x10x10x16xf32, #tpu.memory_space<vmem>>, vector<1x8x1x16xf32>
    tpu.vector_store %arg10[%c0_67, %c1_68, %c9_69, %c0_70], %42 {strides = array<i32>} : memref<1x10x10x16xf32, #tpu.memory_space<vmem>>, vector<1x8x1x16xf32>,
    %c0_71 = arith.constant 0 : index
    %c1_72 = arith.constant 1 : index
    %c1_73 = arith.constant 1 : index
    %c0_74 = arith.constant 0 : index
    %47 = vector.load %arg10[%c0_71, %c1_72, %c1_73, %c0_74] : memref<1x10x10x16xf32, #tpu.memory_space<vmem>>, vector<1x8x8x16xf32>
    tpu.vector_store %arg10[%c0_71, %c1_72, %c1_73, %c0_74], %40 {strides = array<i32>} : memref<1x10x10x16xf32, #tpu.memory_space<vmem>>, vector<1x8x8x16xf32>,
    %c0_75 = arith.constant 0 : index
    %c0_76 = arith.constant 0 : index
    %c0_77 = arith.constant 0 : index
    %c0_78 = arith.constant 0 : index
    %48 = vector.load %arg10[%c0_75, %c0_76, %c0_77, %c0_78] : memref<1x10x10x16xf32, #tpu.memory_space<vmem>>, vector<1x8x8x16xf32>
    %49 = vector.shape_cast %48 : vector<1x8x8x16xf32> to vector<64x16xf32>
    %c0_79 = arith.constant 0 : index
    %c0_80 = arith.constant 0 : index
    %50 = vector.load %arg11[%c0_79, %c0_80] : memref<64x144xf32, #tpu.memory_space<vmem>>, vector<64x16xf32>
    tpu.vector_store %arg11[%c0_79, %c0_80], %49 {strides = array<i32>} : memref<64x144xf32, #tpu.memory_space<vmem>>, vector<64x16xf32>,
    %c0_81 = arith.constant 0 : index
    %c0_82 = arith.constant 0 : index
    %c1_83 = arith.constant 1 : index
    %c0_84 = arith.constant 0 : index
    %51 = vector.load %arg10[%c0_81, %c0_82, %c1_83, %c0_84] : memref<1x10x10x16xf32, #tpu.memory_space<vmem>>, vector<1x8x8x16xf32>
    %52 = vector.shape_cast %51 : vector<1x8x8x16xf32> to vector<64x16xf32>
    %c0_85 = arith.constant 0 : index
    %c16 = arith.constant 16 : index
    %53 = vector.load %arg11[%c0_85, %c16] : memref<64x144xf32, #tpu.memory_space<vmem>>, vector<64x16xf32>
    tpu.vector_store %arg11[%c0_85, %c16], %52 {strides = array<i32>} : memref<64x144xf32, #tpu.memory_space<vmem>>, vector<64x16xf32>,
    %c0_86 = arith.constant 0 : index
    %c0_87 = arith.constant 0 : index
    %c2_88 = arith.constant 2 : index
    %c0_89 = arith.constant 0 : index
    %54 = vector.load %arg10[%c0_86, %c0_87, %c2_88, %c0_89] : memref<1x10x10x16xf32, #tpu.memory_space<vmem>>, vector<1x8x8x16xf32>
    %55 = vector.shape_cast %54 : vector<1x8x8x16xf32> to vector<64x16xf32>
    %c0_90 = arith.constant 0 : index
    %c32 = arith.constant 32 : index
    %56 = vector.load %arg11[%c0_90, %c32] : memref<64x144xf32, #tpu.memory_space<vmem>>, vector<64x16xf32>
    tpu.vector_store %arg11[%c0_90, %c32], %55 {strides = array<i32>} : memref<64x144xf32, #tpu.memory_space<vmem>>, vector<64x16xf32>,
    %c0_91 = arith.constant 0 : index
    %c1_92 = arith.constant 1 : index
    %c0_93 = arith.constant 0 : index
    %c0_94 = arith.constant 0 : index
    %57 = vector.load %arg10[%c0_91, %c1_92, %c0_93, %c0_94] : memref<1x10x10x16xf32, #tpu.memory_space<vmem>>, vector<1x8x8x16xf32>
    %58 = vector.shape_cast %57 : vector<1x8x8x16xf32> to vector<64x16xf32>
    %c0_95 = arith.constant 0 : index
    %c48 = arith.constant 48 : index
    %59 = vector.load %arg11[%c0_95, %c48] : memref<64x144xf32, #tpu.memory_space<vmem>>, vector<64x16xf32>
    tpu.vector_store %arg11[%c0_95, %c48], %58 {strides = array<i32>} : memref<64x144xf32, #tpu.memory_space<vmem>>, vector<64x16xf32>,
    %c0_96 = arith.constant 0 : index
    %c1_97 = arith.constant 1 : index
    %c1_98 = arith.constant 1 : index
    %c0_99 = arith.constant 0 : index
    %60 = vector.load %arg10[%c0_96, %c1_97, %c1_98, %c0_99] : memref<1x10x10x16xf32, #tpu.memory_space<vmem>>, vector<1x8x8x16xf32>
    %61 = vector.shape_cast %60 : vector<1x8x8x16xf32> to vector<64x16xf32>
    %c0_100 = arith.constant 0 : index
    %c64 = arith.constant 64 : index
    %62 = vector.load %arg11[%c0_100, %c64] : memref<64x144xf32, #tpu.memory_space<vmem>>, vector<64x16xf32>
    tpu.vector_store %arg11[%c0_100, %c64], %61 {strides = array<i32>} : memref<64x144xf32, #tpu.memory_space<vmem>>, vector<64x16xf32>,
    %c0_101 = arith.constant 0 : index
    %c1_102 = arith.constant 1 : index
    %c2_103 = arith.constant 2 : index
    %c0_104 = arith.constant 0 : index
    %63 = vector.load %arg10[%c0_101, %c1_102, %c2_103, %c0_104] : memref<1x10x10x16xf32, #tpu.memory_space<vmem>>, vector<1x8x8x16xf32>
    %64 = vector.shape_cast %63 : vector<1x8x8x16xf32> to vector<64x16xf32>
    %c0_105 = arith.constant 0 : index
    %c80 = arith.constant 80 : index
    %65 = vector.load %arg11[%c0_105, %c80] : memref<64x144xf32, #tpu.memory_space<vmem>>, vector<64x16xf32>
    tpu.vector_store %arg11[%c0_105, %c80], %64 {strides = array<i32>} : memref<64x144xf32, #tpu.memory_space<vmem>>, vector<64x16xf32>,
    %c0_106 = arith.constant 0 : index
    %c2_107 = arith.constant 2 : index
    %c0_108 = arith.constant 0 : index
    %c0_109 = arith.constant 0 : index
    %66 = vector.load %arg10[%c0_106, %c2_107, %c0_108, %c0_109] : memref<1x10x10x16xf32, #tpu.memory_space<vmem>>, vector<1x8x8x16xf32>
    %67 = vector.shape_cast %66 : vector<1x8x8x16xf32> to vector<64x16xf32>
    %c0_110 = arith.constant 0 : index
    %c96 = arith.constant 96 : index
    %68 = vector.load %arg11[%c0_110, %c96] : memref<64x144xf32, #tpu.memory_space<vmem>>, vector<64x16xf32>
    tpu.vector_store %arg11[%c0_110, %c96], %67 {strides = array<i32>} : memref<64x144xf32, #tpu.memory_space<vmem>>, vector<64x16xf32>,
    %c0_111 = arith.constant 0 : index
    %c2_112 = arith.constant 2 : index
    %c1_113 = arith.constant 1 : index
    %c0_114 = arith.constant 0 : index
    %69 = vector.load %arg10[%c0_111, %c2_112, %c1_113, %c0_114] : memref<1x10x10x16xf32, #tpu.memory_space<vmem>>, vector<1x8x8x16xf32>
    %70 = vector.shape_cast %69 : vector<1x8x8x16xf32> to vector<64x16xf32>
    %c0_115 = arith.constant 0 : index
    %c112 = arith.constant 112 : index
    %71 = vector.load %arg11[%c0_115, %c112] : memref<64x144xf32, #tpu.memory_space<vmem>>, vector<64x16xf32>
    tpu.vector_store %arg11[%c0_115, %c112], %70 {strides = array<i32>} : memref<64x144xf32, #tpu.memory_space<vmem>>, vector<64x16xf32>,
    %c0_116 = arith.constant 0 : index
    %c2_117 = arith.constant 2 : index
    %c2_118 = arith.constant 2 : index
    %c0_119 = arith.constant 0 : index
    %72 = vector.load %arg10[%c0_116, %c2_117, %c2_118, %c0_119] : memref<1x10x10x16xf32, #tpu.memory_space<vmem>>, vector<1x8x8x16xf32>
    %73 = vector.shape_cast %72 : vector<1x8x8x16xf32> to vector<64x16xf32>
    %c0_120 = arith.constant 0 : index
    %c128 = arith.constant 128 : index
    %74 = vector.load %arg11[%c0_120, %c128] : memref<64x144xf32, #tpu.memory_space<vmem>>, vector<64x16xf32>
    tpu.vector_store %arg11[%c0_120, %c128], %73 {strides = array<i32>} : memref<64x144xf32, #tpu.memory_space<vmem>>, vector<64x16xf32>,
    %c0_121 = arith.constant 0 : index
    %c0_122 = arith.constant 0 : index
    %75 = vector.load %arg11[%c0_121, %c0_122] : memref<64x144xf32, #tpu.memory_space<vmem>>, vector<64x144xf32>
    %76 = arith.truncf %75 : vector<64x144xf32> to vector<64x144xbf16>
    %c0_123 = arith.constant 0 : index
    %c0_124 = arith.constant 0 : index
    %77 = vector.load %arg4[%c0_123, %c0_124] : memref<144x32xbf16, #tpu.memory_space<vmem>>, vector<144x32xbf16>
    %cst_125 = arith.constant dense<0.000000e+00> : vector<64x32xf32>
    %78 = tpu.matmul %76, %77, %cst_125 {dimension_numbers = #tpu.dot_dimension_numbers<[1], [0], [0], [1], [0, 0, 1, 1], [], []>} : vector<64x144xbf16>, vector<144x32xbf16>, vector<64x32xf32> -> vector<64x32xf32>
    %c0_126 = arith.constant 0 : index
    %c0_127 = arith.constant 0 : index
    %79 = vector.load %arg5[%c0_126, %c0_127] : memref<1x32xf32, #tpu.memory_space<vmem>>, vector<1x32xf32>
    %80 = vector.broadcast %79 : vector<1x32xf32> to vector<64x32xf32>
    %81 = arith.addf %78, %80 : vector<64x32xf32>
    %cst_128 = arith.constant 0.000000e+00 : f32
    %82 = vector.broadcast %cst_128 : f32 to vector<64x32xf32>
    %83 = arith.maximumf %81, %82 : vector<64x32xf32>
    %84 = vector.shape_cast %83 : vector<64x32xf32> to vector<1x8x8x32xf32>
    %85 = vector.shape_cast %84 : vector<1x8x8x32xf32> to vector<1x4x2x8x32xf32>
    %cst_129 = arith.constant dense<0xFF800000> : vector<1x4x8x32xf32>
    %86 = vector.multi_reduction <maximumf>, %85, %cst_129 [2] : vector<1x4x2x8x32xf32> to vector<1x4x8x32xf32>
    %87 = vector.shape_cast %86 : vector<1x4x8x32xf32> to vector<1x4x4x2x32xf32>
    %cst_130 = arith.constant dense<0xFF800000> : vector<1x4x4x32xf32>
    %88 = vector.multi_reduction <maximumf>, %87, %cst_130 [3] : vector<1x4x4x2x32xf32> to vector<1x4x4x32xf32>
    %cst_131 = arith.constant 0.000000e+00 : f32
    %89 = vector.broadcast %cst_131 : f32 to vector<1x1x6x32xf32>
    %cst_132 = arith.constant 0.000000e+00 : f32
    %90 = vector.broadcast %cst_132 : f32 to vector<1x4x1x32xf32>
    %c0_133 = arith.constant 0 : index
    %c0_134 = arith.constant 0 : index
    %c0_135 = arith.constant 0 : index
    %c0_136 = arith.constant 0 : index
    %91 = vector.load %arg12[%c0_133, %c0_134, %c0_135, %c0_136] : memref<1x6x6x32xf32, #tpu.memory_space<vmem>>, vector<1x1x6x32xf32>
    tpu.vector_store %arg12[%c0_133, %c0_134, %c0_135, %c0_136], %89 {strides = array<i32>} : memref<1x6x6x32xf32, #tpu.memory_space<vmem>>, vector<1x1x6x32xf32>,
    %c0_137 = arith.constant 0 : index
    %c5_138 = arith.constant 5 : index
    %c0_139 = arith.constant 0 : index
    %c0_140 = arith.constant 0 : index
    %92 = vector.load %arg12[%c0_137, %c5_138, %c0_139, %c0_140] : memref<1x6x6x32xf32, #tpu.memory_space<vmem>>, vector<1x1x6x32xf32>
    tpu.vector_store %arg12[%c0_137, %c5_138, %c0_139, %c0_140], %89 {strides = array<i32>} : memref<1x6x6x32xf32, #tpu.memory_space<vmem>>, vector<1x1x6x32xf32>,
    %c0_141 = arith.constant 0 : index
    %c1_142 = arith.constant 1 : index
    %c0_143 = arith.constant 0 : index
    %c0_144 = arith.constant 0 : index
    %93 = vector.load %arg12[%c0_141, %c1_142, %c0_143, %c0_144] : memref<1x6x6x32xf32, #tpu.memory_space<vmem>>, vector<1x4x1x32xf32>
    tpu.vector_store %arg12[%c0_141, %c1_142, %c0_143, %c0_144], %90 {strides = array<i32>} : memref<1x6x6x32xf32, #tpu.memory_space<vmem>>, vector<1x4x1x32xf32>,
    %c0_145 = arith.constant 0 : index
    %c1_146 = arith.constant 1 : index
    %c5_147 = arith.constant 5 : index
    %c0_148 = arith.constant 0 : index
    %94 = vector.load %arg12[%c0_145, %c1_146, %c5_147, %c0_148] : memref<1x6x6x32xf32, #tpu.memory_space<vmem>>, vector<1x4x1x32xf32>
    tpu.vector_store %arg12[%c0_145, %c1_146, %c5_147, %c0_148], %90 {strides = array<i32>} : memref<1x6x6x32xf32, #tpu.memory_space<vmem>>, vector<1x4x1x32xf32>,
    %c0_149 = arith.constant 0 : index
    %c1_150 = arith.constant 1 : index
    %c1_151 = arith.constant 1 : index
    %c0_152 = arith.constant 0 : index
    %95 = vector.load %arg12[%c0_149, %c1_150, %c1_151, %c0_152] : memref<1x6x6x32xf32, #tpu.memory_space<vmem>>, vector<1x4x4x32xf32>
    tpu.vector_store %arg12[%c0_149, %c1_150, %c1_151, %c0_152], %88 {strides = array<i32>} : memref<1x6x6x32xf32, #tpu.memory_space<vmem>>, vector<1x4x4x32xf32>,
    %c0_153 = arith.constant 0 : index
    %c0_154 = arith.constant 0 : index
    %c0_155 = arith.constant 0 : index
    %c0_156 = arith.constant 0 : index
    %96 = vector.load %arg12[%c0_153, %c0_154, %c0_155, %c0_156] : memref<1x6x6x32xf32, #tpu.memory_space<vmem>>, vector<1x4x4x32xf32>
    %97 = vector.shape_cast %96 : vector<1x4x4x32xf32> to vector<16x32xf32>
    %c0_157 = arith.constant 0 : index
    %c0_158 = arith.constant 0 : index
    %98 = vector.load %arg13[%c0_157, %c0_158] : memref<16x288xf32, #tpu.memory_space<vmem>>, vector<16x32xf32>
    tpu.vector_store %arg13[%c0_157, %c0_158], %97 {strides = array<i32>} : memref<16x288xf32, #tpu.memory_space<vmem>>, vector<16x32xf32>,
    %c0_159 = arith.constant 0 : index
    %c0_160 = arith.constant 0 : index
    %c1_161 = arith.constant 1 : index
    %c0_162 = arith.constant 0 : index
    %99 = vector.load %arg12[%c0_159, %c0_160, %c1_161, %c0_162] : memref<1x6x6x32xf32, #tpu.memory_space<vmem>>, vector<1x4x4x32xf32>
    %100 = vector.shape_cast %99 : vector<1x4x4x32xf32> to vector<16x32xf32>
    %c0_163 = arith.constant 0 : index
    %c32_164 = arith.constant 32 : index
    %101 = vector.load %arg13[%c0_163, %c32_164] : memref<16x288xf32, #tpu.memory_space<vmem>>, vector<16x32xf32>
    tpu.vector_store %arg13[%c0_163, %c32_164], %100 {strides = array<i32>} : memref<16x288xf32, #tpu.memory_space<vmem>>, vector<16x32xf32>,
    %c0_165 = arith.constant 0 : index
    %c0_166 = arith.constant 0 : index
    %c2_167 = arith.constant 2 : index
    %c0_168 = arith.constant 0 : index
    %102 = vector.load %arg12[%c0_165, %c0_166, %c2_167, %c0_168] : memref<1x6x6x32xf32, #tpu.memory_space<vmem>>, vector<1x4x4x32xf32>
    %103 = vector.shape_cast %102 : vector<1x4x4x32xf32> to vector<16x32xf32>
    %c0_169 = arith.constant 0 : index
    %c64_170 = arith.constant 64 : index
    %104 = vector.load %arg13[%c0_169, %c64_170] : memref<16x288xf32, #tpu.memory_space<vmem>>, vector<16x32xf32>
    tpu.vector_store %arg13[%c0_169, %c64_170], %103 {strides = array<i32>} : memref<16x288xf32, #tpu.memory_space<vmem>>, vector<16x32xf32>,
    %c0_171 = arith.constant 0 : index
    %c1_172 = arith.constant 1 : index
    %c0_173 = arith.constant 0 : index
    %c0_174 = arith.constant 0 : index
    %105 = vector.load %arg12[%c0_171, %c1_172, %c0_173, %c0_174] : memref<1x6x6x32xf32, #tpu.memory_space<vmem>>, vector<1x4x4x32xf32>
    %106 = vector.shape_cast %105 : vector<1x4x4x32xf32> to vector<16x32xf32>
    %c0_175 = arith.constant 0 : index
    %c96_176 = arith.constant 96 : index
    %107 = vector.load %arg13[%c0_175, %c96_176] : memref<16x288xf32, #tpu.memory_space<vmem>>, vector<16x32xf32>
    tpu.vector_store %arg13[%c0_175, %c96_176], %106 {strides = array<i32>} : memref<16x288xf32, #tpu.memory_space<vmem>>, vector<16x32xf32>,
    %c0_177 = arith.constant 0 : index
    %c1_178 = arith.constant 1 : index
    %c1_179 = arith.constant 1 : index
    %c0_180 = arith.constant 0 : index
    %108 = vector.load %arg12[%c0_177, %c1_178, %c1_179, %c0_180] : memref<1x6x6x32xf32, #tpu.memory_space<vmem>>, vector<1x4x4x32xf32>
    %109 = vector.shape_cast %108 : vector<1x4x4x32xf32> to vector<16x32xf32>
    %c0_181 = arith.constant 0 : index
    %c128_182 = arith.constant 128 : index
    %110 = vector.load %arg13[%c0_181, %c128_182] : memref<16x288xf32, #tpu.memory_space<vmem>>, vector<16x32xf32>
    tpu.vector_store %arg13[%c0_181, %c128_182], %109 {strides = array<i32>} : memref<16x288xf32, #tpu.memory_space<vmem>>, vector<16x32xf32>,
    %c0_183 = arith.constant 0 : index
    %c1_184 = arith.constant 1 : index
    %c2_185 = arith.constant 2 : index
    %c0_186 = arith.constant 0 : index
    %111 = vector.load %arg12[%c0_183, %c1_184, %c2_185, %c0_186] : memref<1x6x6x32xf32, #tpu.memory_space<vmem>>, vector<1x4x4x32xf32>
    %112 = vector.shape_cast %111 : vector<1x4x4x32xf32> to vector<16x32xf32>
    %c0_187 = arith.constant 0 : index
    %c160 = arith.constant 160 : index
    %113 = vector.load %arg13[%c0_187, %c160] : memref<16x288xf32, #tpu.memory_space<vmem>>, vector<16x32xf32>
    tpu.vector_store %arg13[%c0_187, %c160], %112 {strides = array<i32>} : memref<16x288xf32, #tpu.memory_space<vmem>>, vector<16x32xf32>,
    %c0_188 = arith.constant 0 : index
    %c2_189 = arith.constant 2 : index
    %c0_190 = arith.constant 0 : index
    %c0_191 = arith.constant 0 : index
    %114 = vector.load %arg12[%c0_188, %c2_189, %c0_190, %c0_191] : memref<1x6x6x32xf32, #tpu.memory_space<vmem>>, vector<1x4x4x32xf32>
    %115 = vector.shape_cast %114 : vector<1x4x4x32xf32> to vector<16x32xf32>
    %c0_192 = arith.constant 0 : index
    %c192 = arith.constant 192 : index
    %116 = vector.load %arg13[%c0_192, %c192] : memref<16x288xf32, #tpu.memory_space<vmem>>, vector<16x32xf32>
    tpu.vector_store %arg13[%c0_192, %c192], %115 {strides = array<i32>} : memref<16x288xf32, #tpu.memory_space<vmem>>, vector<16x32xf32>,
    %c0_193 = arith.constant 0 : index
    %c2_194 = arith.constant 2 : index
    %c1_195 = arith.constant 1 : index
    %c0_196 = arith.constant 0 : index
    %117 = vector.load %arg12[%c0_193, %c2_194, %c1_195, %c0_196] : memref<1x6x6x32xf32, #tpu.memory_space<vmem>>, vector<1x4x4x32xf32>
    %118 = vector.shape_cast %117 : vector<1x4x4x32xf32> to vector<16x32xf32>
    %c0_197 = arith.constant 0 : index
    %c224 = arith.constant 224 : index
    %119 = vector.load %arg13[%c0_197, %c224] : memref<16x288xf32, #tpu.memory_space<vmem>>, vector<16x32xf32>
    tpu.vector_store %arg13[%c0_197, %c224], %118 {strides = array<i32>} : memref<16x288xf32, #tpu.memory_space<vmem>>, vector<16x32xf32>,
    %c0_198 = arith.constant 0 : index
    %c2_199 = arith.constant 2 : index
    %c2_200 = arith.constant 2 : index
    %c0_201 = arith.constant 0 : index
    %120 = vector.load %arg12[%c0_198, %c2_199, %c2_200, %c0_201] : memref<1x6x6x32xf32, #tpu.memory_space<vmem>>, vector<1x4x4x32xf32>
    %121 = vector.shape_cast %120 : vector<1x4x4x32xf32> to vector<16x32xf32>
    %c0_202 = arith.constant 0 : index
    %c256 = arith.constant 256 : index
    %122 = vector.load %arg13[%c0_202, %c256] : memref<16x288xf32, #tpu.memory_space<vmem>>, vector<16x32xf32>
    tpu.vector_store %arg13[%c0_202, %c256], %121 {strides = array<i32>} : memref<16x288xf32, #tpu.memory_space<vmem>>, vector<16x32xf32>,
    %c0_203 = arith.constant 0 : index
    %c0_204 = arith.constant 0 : index
    %123 = vector.load %arg13[%c0_203, %c0_204] : memref<16x288xf32, #tpu.memory_space<vmem>>, vector<16x288xf32>
    %124 = arith.truncf %123 : vector<16x288xf32> to vector<16x288xbf16>
    %c0_205 = arith.constant 0 : index
    %c0_206 = arith.constant 0 : index
    %125 = vector.load %arg6[%c0_205, %c0_206] : memref<288x64xbf16, #tpu.memory_space<vmem>>, vector<288x64xbf16>
    %cst_207 = arith.constant dense<0.000000e+00> : vector<16x64xf32>
    %126 = tpu.matmul %124, %125, %cst_207 {dimension_numbers = #tpu.dot_dimension_numbers<[1], [0], [0], [1], [0, 0, 1, 1], [], []>} : vector<16x288xbf16>, vector<288x64xbf16>, vector<16x64xf32> -> vector<16x64xf32>
    %c0_208 = arith.constant 0 : index
    %c0_209 = arith.constant 0 : index
    %127 = vector.load %arg7[%c0_208, %c0_209] : memref<1x64xf32, #tpu.memory_space<vmem>>, vector<1x64xf32>
    %128 = vector.broadcast %127 : vector<1x64xf32> to vector<16x64xf32>
    %129 = arith.addf %126, %128 : vector<16x64xf32>
    %cst_210 = arith.constant 0.000000e+00 : f32
    %130 = vector.broadcast %cst_210 : f32 to vector<16x64xf32>
    %131 = arith.maximumf %129, %130 : vector<16x64xf32>
    %132 = vector.shape_cast %131 : vector<16x64xf32> to vector<1x4x4x64xf32>
    %133 = vector.shape_cast %132 : vector<1x4x4x64xf32> to vector<1x2x2x4x64xf32>
    %cst_211 = arith.constant dense<0xFF800000> : vector<1x2x4x64xf32>
    %134 = vector.multi_reduction <maximumf>, %133, %cst_211 [2] : vector<1x2x2x4x64xf32> to vector<1x2x4x64xf32>
    %135 = vector.shape_cast %134 : vector<1x2x4x64xf32> to vector<1x2x2x2x64xf32>
    %cst_212 = arith.constant dense<0xFF800000> : vector<1x2x2x64xf32>
    %136 = vector.multi_reduction <maximumf>, %135, %cst_212 [3] : vector<1x2x2x2x64xf32> to vector<1x2x2x64xf32>
    %c0_213 = arith.constant 0 : index
    %c0_214 = arith.constant 0 : index
    %c0_215 = arith.constant 0 : index
    %c0_216 = arith.constant 0 : index
    %137 = vector.load %arg8[%c0_213, %c0_214, %c0_215, %c0_216] : memref<1x2x2x64xf32, #tpu.memory_space<vmem>>, vector<1x2x2x64xf32>
    tpu.vector_store %arg8[%c0_213, %c0_214, %c0_215, %c0_216], %136 {strides = array<i32>} : memref<1x2x2x64xf32, #tpu.memory_space<vmem>>, vector<1x2x2x64xf32>,
    return
  }
  func.func @transform_0(%arg0: i32) -> (i32, i32, i32, i32) {
    %c0_i32 = arith.constant 0 : i32
    %c0_i32_0 = arith.constant 0 : i32
    %c0_i32_1 = arith.constant 0 : i32
    %c0_i32_2 = arith.constant 0 : i32
    return %arg0, %c0_i32, %c0_i32_0, %c0_i32_1 : i32, i32, i32, i32
  }
  func.func @transform_1(%arg0: i32) -> (i32, i32) {
    %c0_i32 = arith.constant 0 : i32
    %c0_i32_0 = arith.constant 0 : i32
    %c0_i32_1 = arith.constant 0 : i32
    return %c0_i32, %c0_i32_0 : i32, i32
  }
  func.func @transform_2(%arg0: i32) -> (i32, i32) {
    %c0_i32 = arith.constant 0 : i32
    %c0_i32_0 = arith.constant 0 : i32
    %c0_i32_1 = arith.constant 0 : i32
    return %c0_i32, %c0_i32_0 : i32, i32
  }
  func.func @transform_3(%arg0: i32) -> (i32, i32) {
    %c0_i32 = arith.constant 0 : i32
    %c0_i32_0 = arith.constant 0 : i32
    %c0_i32_1 = arith.constant 0 : i32
    return %c0_i32, %c0_i32_0 : i32, i32
  }
  func.func @transform_4(%arg0: i32) -> (i32, i32) {
    %c0_i32 = arith.constant 0 : i32
    %c0_i32_0 = arith.constant 0 : i32
    %c0_i32_1 = arith.constant 0 : i32
    return %c0_i32, %c0_i32_0 : i32, i32
  }
  func.func @transform_5(%arg0: i32) -> (i32, i32) {
    %c0_i32 = arith.constant 0 : i32
    %c0_i32_0 = arith.constant 0 : i32
    %c0_i32_1 = arith.constant 0 : i32
    return %c0_i32, %c0_i32_0 : i32, i32
  }
  func.func @transform_6(%arg0: i32) -> (i32, i32) {
    %c0_i32 = arith.constant 0 : i32
    %c0_i32_0 = arith.constant 0 : i32
    %c0_i32_1 = arith.constant 0 : i32
    return %c0_i32, %c0_i32_0 : i32, i32
  }
  func.func @transform_7(%arg0: i32) -> (i32, i32, i32, i32) {
    %c0_i32 = arith.constant 0 : i32
    %c0_i32_0 = arith.constant 0 : i32
    %c0_i32_1 = arith.constant 0 : i32
    %c0_i32_2 = arith.constant 0 : i32
    return %arg0, %c0_i32, %c0_i32_0, %c0_i32_1 : i32, i32, i32, i32
  }
}

</mosaic_0001>

<bundles_post_ra>
// kernel: conv_base_forward.1
= control target key start
LH: loop header
LB: loop body
LE: loop exit
PB: predicated region body
PF: predicated region fallthrough
CT: control target
= control target key end

     0   :  { %s5061_s24 = smov 0   ;;  %s6709_s0 = inlined_call_operand.vmem [shape: f32[2,18,18,1], index: 0, kind: input, shape index: {}]   ;;  %s6710_s1 = inlined_call_operand.vmem [shape: bf16[9,16], index: 1, kind: input, shape index: {}]   ;;  %s6711_s2 = inlined_call_operand.vmem [shape: f32[1,16], index: 2, kind: input, shape index: {}]   ;;  %s6712_s3 = inlined_call_operand.vmem [shape: bf16[144,32], index: 3, kind: input, shape index: {}]   ;;  %s6713_s4 = inlined_call_operand.vmem [shape: f32[1,32], index: 4, kind: input, shape index: {}]   ;;  %s6714_s5 = inlined_call_operand.vmem [shape: bf16[288,64], index: 5, kind: input, shape index: {}]   ;;  %s6715_s6 = inlined_call_operand.vmem [shape: f32[1,64], index: 6, kind: input, shape index: {}]   ;;  %s6716_s7 = inlined_call_operand.vmem [shape: f32[2,2,2,64], index: 7, kind: output, shape index: {}]  }
   0x1 LB: > { %s4577_s25 = sadd.s32 4294967295, %s4999_s24   ;;  %p4581_p0 = scmp.ge.s32.totalorder %s4999_s24, 1  ;;  %s4999_s24 = sphi %s5061_s24, %s17_s24  }
   0x2   : > { %p237_p1 = scmp.lt.s32.totalorder %s4999_s24, 3 }
   0x4   : > { %p238_p2 = pnand %p4581_p0, %p237_p1 }
   0x5   : > { %p269_p3 = scmp.lt.s32.totalorder (!%p238_p2), %s4577_s25, 1  ;;  %s5001_s30 = smov (!%p238_p2), 1  }
   0x6   : > { %241 = sbr.rel (%p238_p2) target bundleno = 1629 (0x65d), region = 48  ;;  %s5002_s8 = smov (!%p238_p2), 2  }
   0x7   : > { %s5003_s9 = smov (!%p238_p2), 3   ;;  %s5004_s10 = smov (!%p238_p2), 4  }
   0x8   : > { %s5005_s11 = smov (!%p238_p2), 5   ;;  %s5006_s12 = smov (!%p238_p2), 6  }
   0x9   : > { %s5007_s13 = smov (!%p238_p2), 7   ;;  %s5009_s16 = smov (!%p238_p2), 8  }
   0xa   : > { %s5012_s19 = smov (!%p238_p2), 16   ;;  %s5013_s20 = smov (!%p238_p2), 32  }
   0xb   : > { %s6820_s25 = smov (!%p269_p3, %s4577_s25), 1  ;;  %vm312_vm0 = vcmask 7168   ;;  %vm2002_vm1 = vcmask 1043456   ;;  %v4945_v30 = vld [vmem:[%s6710_s1] sm:$0x1f]   ;;  %vm2003_vm2 = vcmask 1044480  }
   0xc   : > { %s4916_s26 = smul.u32 432, %s6820_s25  ;;  %v5008_v31 = vmov 65535   ;;  %vm505_vm3 = vcmask 15368   ;;  %vm6723_vm4 = vcmask 23568   ;;  %vm6722_vm5 = vcmask 31768   ;;  %s5015_s23 = smov 48  }
   0xd   : > { %v2004_v32 = vsel %vm2002_vm1, 4294967295, %v5008_v31  ;;  %vm6720_vm6 = vcmask 39968   ;;  %vm1278_vm7 = vcmask 48168   ;;  %vm1472_vm8 = vcmask 56368   ;;  %s5016_s28 = smov 64   ;;  %s5019_s14 = smov 112  }
   0xe   : > { %s5075_s29 = scalar_lea.vmem %s6709_s0, %s4916_s26  ;;  %v2005_v33 = vsel %vm2003_vm2, %v2004_v32, 0  ;;  %vm1665_vm9 = vcmask 64568   ;;  %vm1858_vm10 = vcmask 72768   ;;  %vm1953_vm11 = vcmask 72704  }
   0xf   : > { %v347_v0 = vld [vmem:[%s5075_s29 + $0x19] sm:$0xff]  ;;  %v345_v1 = vld [vmem:[%s5075_s29 + $0x1] sm:$0xff]  ;;  %v346_v3 = vld [vmem:[%s5075_s29 + $0x9] sm:$0xff]  ;;  %v2007_v34 = vand.u32 %v4945_v30, %v2005_v33  ;;  %vm2202_vm12 = vcmask 130048   ;;  %vm6721_vm13 = vcmask 123904   ;;  %vm3058_vm14 = vcmask 122880  }
  0x10   : > { %413 = vrot.lane.b32.xlu1 %v347_v0, %s5001_s30  ;;  %409 = vrot.lane.b32.xlu0 %v345_v1, %s5001_s30  ;;  %v348_v2 = vld [vmem:[%s5075_s29 + $0x21] sm:$0xff]  ;;  %v4585_v5 = vld [vmem:[%s5075_s29 + $0x18] sm:$0xff]  ;;  %vm6719_vm15 = vcmask 1041409   ;;  %vm6717_vm1 = vcmask 1042434   ;;  %vm6718_vm2 = vcmask 1043459  }
  0x11   : > { %v4586_v4 = vld [vmem:[%s5075_s29 + $0x20] sm:$0xff]  ;;  %v4588_v6 = vld [vmem:[%s5075_s29 + $0x38] sm:$0xff]  ;;  %v4587_v7 = vld [vmem:[%s5075_s29 + $0x30] sm:$0xff]  ;;  %315 = vst.msk [vmem:[#allocation2 + $0x10] sm:$0xff] %vm312_vm0, %v4585_v5  ;;  %4874 = vmatprep.subr.bf16.mxu0 %v2007_v34 }
  0x12   : > { %316 = vst.msk [vmem:[#allocation2 + $0x18] sm:$0xff] %vm312_vm0, %v4586_v4  ;;  %318 = vst.msk [vmem:[#allocation2 + $0x28] sm:$0xff] %vm312_vm0, %v4588_v6  ;;  %v539_v8 = vld [vmem:[%s5075_s29 + $0xa] sm:$0xff]  ;;  %v538_v9 = vld [vmem:[%s5075_s29 + $0x2] sm:$0xff]  ;;  %4875 = vmatpush3.bf16.msra.mxu0 %v2007_v34 }
  0x13   : > { %317 = vst.msk [vmem:[#allocation2 + $0x20] sm:$0xff] %vm312_vm0, %v4587_v7  ;;  %v5096_v10 = vld [vmem:[%s5075_s29 + $0x50] sm:$0xff]  ;;  %v5099_v11 = vld [vmem:[%s5075_s29 + $0x48] sm:$0xff]  ;;  %v5109_v13 = vld [vmem:[%s5075_s29 + $0x60] sm:$0xff] }
  0x14   : > { %415 = vrot.lane.b32.xlu1 %v348_v2, %s5001_s30  ;;  %411 = vrot.lane.b32.xlu0 %v346_v3, %s5001_s30  ;;  %320 = vst.msk [vmem:[#allocation2 + $0x38] sm:$0xff] %vm312_vm0, %v5096_v10  ;;  %319 = vst.msk [vmem:[#allocation2 + $0x30] sm:$0xff] %vm312_vm0, %v5099_v11  ;;  %v5106_v12 = vld [vmem:[%s5075_s29 + $0x68] sm:$0xff]  ;;  %v540_v15 = vld [vmem:[%s5075_s29 + $0x1a] sm:$0xff] }
  0x15   : > { %v541_v14 = vld [vmem:[%s5075_s29 + $0x22] sm:$0xff]  ;;  %322 = vst.msk [vmem:[#allocation2 + $0x48] sm:$0xff] %vm312_vm0, %v5106_v12  ;;  %321 = vst.msk [vmem:[#allocation2 + $0x40] sm:$0xff] %vm312_vm0, %v5109_v13  ;;  %v5123_v17 = vld [vmem:[%s5075_s29 + $0x78] sm:$0xff] }
  0x16   : > { %v5120_v16 = vld [vmem:[%s5075_s29 + $0x80] sm:$0xff]  ;;  %323 = vst.msk [vmem:[#allocation2 + $0x50] sm:$0xff] %vm312_vm0, %v5123_v17  ;;  %v281_v19 = vld [vmem:[%s5075_s29 + $0x8] sm:$0xff]  ;;  %v5138_v20 = vld [vmem:[%s5075_s29 + $0x98] sm:$0xff] }
  0x17   : > { %v280_v18 = vld [vmem:[%s5075_s29] sm:$0xff]  ;;  %324 = vst.msk [vmem:[#allocation2 + $0x58] sm:$0xff] %vm312_vm0, %v5120_v16  ;;  %314 = vst.msk [vmem:[#allocation2 + $0x8] sm:$0xff] %vm312_vm0, %v281_v19  ;;  %v5141_v21 = vld [vmem:[%s5075_s29 + $0x90] sm:$0xff] }
  0x18   : > { %604 = vrot.lane.b32.xlu1 %v539_v8, %s5002_s8  ;;  %602 = vrot.lane.b32.xlu0 %v538_v9, %s5002_s8  ;;  %313 = vst.msk [vmem:[#allocation2] sm:$0xff] %vm312_vm0, %v280_v18  ;;  %326 = vst.msk [vmem:[#allocation2 + $0x68] sm:$0xff] %vm312_vm0, %v5138_v20  ;;  %v4620_v22 = vld [vmem:[%s5075_s29 + $0x39] sm:$0xff]  ;;  %v4619_v23 = vld [vmem:[%s5075_s29 + $0x31] sm:$0xff] }
  0x19   : > { %325 = vst.msk [vmem:[#allocation2 + $0x60] sm:$0xff] %vm312_vm0, %v5141_v21  ;;  %v4652_v24 = vld [vmem:[%s5075_s29 + $0x3a] sm:$0xff]  ;;  %v4651_v25 = vld [vmem:[%s5075_s29 + $0x32] sm:$0xff]  ;;  %v5167_v27 = vld [vmem:[%s5075_s29 + $0xa8] sm:$0xff] }
  0x1a   : > { %v5164_v26 = vld [vmem:[%s5075_s29 + $0xb0] sm:$0xff]  ;;  %327 = vst.msk [vmem:[#allocation2 + $0x70] sm:$0xff] %vm312_vm0, %v5167_v27  ;;  %v5205_v37 = vld [vmem:[%s5075_s29 + $0xc8] sm:$0xff]  ;;  %v5208_v38 = vld [vmem:[%s5075_s29 + $0xc0] sm:$0xff] }
  0x1b   : > { %328 = vst.msk [vmem:[#allocation2 + $0x78] sm:$0xff] %vm312_vm0, %v5164_v26  ;;  %v4716_v28 = vld [vmem:[%s5075_s29 + $0x51] sm:$0xff]  ;;  %v4715_v29 = vld [vmem:[%s5075_s29 + $0x49] sm:$0xff]  ;;  %330 = vst.msk [vmem:[#allocation2 + $0x88] sm:$0xff] %vm312_vm0, %v5205_v37 }
  0x1c   : > { %608 = vrot.lane.b32.xlu1 %v541_v14, %s5002_s8  ;;  %606 = vrot.lane.b32.xlu0 %v540_v15, %s5002_s8  ;;  %v4748_v35 = vld [vmem:[%s5075_s29 + $0x52] sm:$0xff]  ;;  %v4747_v36 = vld [vmem:[%s5075_s29 + $0x4a] sm:$0xff]  ;;  %329 = vst.msk [vmem:[#allocation2 + $0x80] sm:$0xff] %vm312_vm0, %v5208_v38 }
  0x1d   : > { %v4624_v39 = vld [vmem:[%s5075_s29 + $0x69] sm:$0xff]  ;;  %v4623_v40 = vld [vmem:[%s5075_s29 + $0x61] sm:$0xff]  ;;  %v5238_v44 = vld [vmem:[%s5075_s29 + $0xd8] sm:$0xff] }
  0x1e   : > { %v4656_v41 = vld [vmem:[%s5075_s29 + $0x6a] sm:$0xff]  ;;  %v4655_v42 = vld [vmem:[%s5075_s29 + $0x62] sm:$0xff]  ;;  %331 = vst.msk [vmem:[#allocation2 + $0x90] sm:$0xff] %vm312_vm0, %v5238_v44  ;;  %v5254_v46 = vld [vmem:[%s5075_s29 + $0x79] sm:$0xff] }
  0x1f   : > { %v5235_v43 = vld [vmem:[%s5075_s29 + $0xe0] sm:$0xff]  ;;  %v5307_v3 = vld [vmem:[%s5075_s29 + $0xf8] sm:$0xff] }
  0x20   : > { %798 = vrot.lane.b32.xlu1 %v4586_v4, %s5003_s9  ;;  %796 = vrot.lane.b32.xlu0 %v4585_v5, %s5003_s9  ;;  %332 = vst.msk [vmem:[#allocation2 + $0x98] sm:$0xff] %vm312_vm0, %v5235_v43  ;;  %v5251_v45 = vld [vmem:[%s5075_s29 + $0x81] sm:$0xff]  ;;  %v5310_v4 = vld [vmem:[%s5075_s29 + $0xf0] sm:$0xff]  ;;  %334 = vst.msk [vmem:[#allocation2 + $0xa8] sm:$0xff] %vm312_vm0, %v5307_v3 }
  0x21   : > { %v5271_v53 = vld [vmem:[%s5075_s29 + $0x82] sm:$0xff]  ;;  %v5274_v54 = vld [vmem:[%s5075_s29 + $0x7a] sm:$0xff]  ;;  %333 = vst.msk [vmem:[#allocation2 + $0xa0] sm:$0xff] %vm312_vm0, %v5310_v4  ;;  %v5330_v8 = vld [vmem:[%s5075_s29 + $0x91] sm:$0xff] }
  0x24   : > { %802 = vrot.lane.b32.xlu1 %v4588_v6, %s5003_s9  ;;  %800 = vrot.lane.b32.xlu0 %v4587_v7, %s5003_s9 }
  0x28   : > { %991 = vrot.lane.b32.xlu1 %v348_v2, %s5004_s10  ;;  %989 = vrot.lane.b32.xlu0 %v347_v0, %s5004_s10 }
  0x2c   : > { %995 = vrot.lane.b32.xlu1 %v4620_v22, %s5004_s10  ;;  %993 = vrot.lane.b32.xlu0 %v4619_v23, %s5004_s10 }
  0x30   : > { %1184 = vrot.lane.b32.xlu1 %v541_v14, %s5005_s11  ;;  %1182 = vrot.lane.b32.xlu0 %v540_v15, %s5005_s11  ;;  %v5348_v14 = vld [vmem:[%s5075_s29 + $0x92] sm:$0xff] }
  0x34   : > { %1188 = vrot.lane.b32.xlu1 %v4652_v24, %s5005_s11  ;;  %1186 = vrot.lane.b32.xlu0 %v4651_v25, %s5005_s11 }
  0x38   : > { %1378 = vrot.lane.b32.xlu1 %v4588_v6, %s5006_s12  ;;  %1376 = vrot.lane.b32.xlu0 %v4587_v7, %s5006_s12  ;;  %v5327_v7 = vld [vmem:[%s5075_s29 + $0x99] sm:$0xff] }
  0x3c   : > { %1382 = vrot.lane.b32.xlu1 %v5096_v10, %s5006_s12  ;;  %1380 = vrot.lane.b32.xlu0 %v5099_v11, %s5006_s12 }
  0x40   : > { %1571 = vrot.lane.b32.xlu1 %v4620_v22, %s5007_s13  ;;  %1569 = vrot.lane.b32.xlu0 %v4619_v23, %s5007_s13 }
  0x44   : > { %1575 = vrot.lane.b32.xlu1 %v4716_v28, %s5007_s13  ;;  %1573 = vrot.lane.b32.xlu0 %v4715_v29, %s5007_s13 }
  0x48   : > { %1764 = vrot.lane.b32.xlu1 %v4652_v24, %s5009_s16  ;;  %1762 = vrot.lane.b32.xlu0 %v4651_v25, %s5009_s16 }
  0x4c   : > { %419 = vrot.lane.b32.xlu1 %v4620_v22, %s5001_s30  ;;  %417 = vrot.lane.b32.xlu0 %v4619_v23, %s5001_s30  ;;  %v5365_v23 = vld [vmem:[%s5075_s29 + $0x110] sm:$0xff] }
  0x4d   : > { %336 = vst.msk [vmem:[#allocation2 + $0xb8] sm:$0xff] %vm312_vm0, %v5365_v23 }
  0x50   : > { %1768 = vrot.lane.b32.xlu1 %v4748_v35, %s5009_s16  ;;  %1766 = vrot.lane.b32.xlu0 %v4747_v36, %s5009_s16 }
  0x54   : > { %423 = vrot.lane.b32.xlu1 %v4716_v28, %s5001_s30  ;;  %421 = vrot.lane.b32.xlu0 %v4715_v29, %s5001_s30 }
  0x58   : > { %612 = vrot.lane.b32.xlu1 %v4652_v24, %s5002_s8  ;;  %610 = vrot.lane.b32.xlu0 %v4651_v25, %s5002_s8  ;;  %v5368_v24 = vld [vmem:[%s5075_s29 + $0x108] sm:$0xff]  ;;  %v5385_v25 = vld [vmem:[%s5075_s29 + $0xb1] sm:$0xff] }
  0x59   : > { %335 = vst.msk [vmem:[#allocation2 + $0xb0] sm:$0xff] %vm312_vm0, %v5368_v24 }
  0x5c   : > { %616 = vrot.lane.b32.xlu1 %v4748_v35, %s5002_s8  ;;  %614 = vrot.lane.b32.xlu0 %v4747_v36, %s5002_s8 }
  0x60   : > { %806 = vrot.lane.b32.xlu1 %v5096_v10, %s5003_s9  ;;  %804 = vrot.lane.b32.xlu0 %v5099_v11, %s5003_s9 }
  0x64   : > { %810 = vrot.lane.b32.xlu1 %v5106_v12, %s5003_s9  ;;  %808 = vrot.lane.b32.xlu0 %v5109_v13, %s5003_s9 }
  0x68   : > { %999 = vrot.lane.b32.xlu1 %v4716_v28, %s5004_s10  ;;  %997 = vrot.lane.b32.xlu0 %v4715_v29, %s5004_s10  ;;  %v5388_v28 = vld [vmem:[%s5075_s29 + $0xa9] sm:$0xff] }
  0x6c   : > { %1003 = vrot.lane.b32.xlu1 %v4624_v39, %s5004_s10  ;;  %1001 = vrot.lane.b32.xlu0 %v4623_v40, %s5004_s10 }
  0x70   : > { %1192 = vrot.lane.b32.xlu1 %v4748_v35, %s5005_s11  ;;  %1190 = vrot.lane.b32.xlu0 %v4747_v36, %s5005_s11 }
  0x74   : > { %1196 = vrot.lane.b32.xlu1 %v4656_v41, %s5005_s11  ;;  %1194 = vrot.lane.b32.xlu0 %v4655_v42, %s5005_s11 }
  0x78   : > { %1386 = vrot.lane.b32.xlu1 %v5106_v12, %s5006_s12  ;;  %1384 = vrot.lane.b32.xlu0 %v5109_v13, %s5006_s12  ;;  %v5345_v13 = vld [vmem:[%s5075_s29 + $0x9a] sm:$0xff] }
  0x7c   : > { %1390 = vrot.lane.b32.xlu1 %v5120_v16, %s5006_s12  ;;  %1388 = vrot.lane.b32.xlu0 %v5123_v17, %s5006_s12 }
  0x80   : > { %1579 = vrot.lane.b32.xlu1 %v4624_v39, %s5007_s13  ;;  %1577 = vrot.lane.b32.xlu0 %v4623_v40, %s5007_s13 }
  0x82   : > { %v414_v47 = vpop.permute.xlu1 %413  ;;  %v410_v48 = vpop.permute.xlu0 %409 }
  0x83   : > { %508 = vst.msk [vmem:[#allocation2 + $0x10] sm:$0xff] %vm505_vm3, %v414_v47  ;;  %506 = vst.msk [vmem:[#allocation2] sm:$0xff] %vm505_vm3, %v410_v48 }
  0x84   : > { %1583 = vrot.lane.b32.xlu1 %v5251_v45, %s5007_s13  ;;  %1581 = vrot.lane.b32.xlu0 %v5254_v46, %s5007_s13 }
  0x86   : > { %v416_v49 = vpop.permute.xlu1 %415  ;;  %v412_v50 = vpop.permute.xlu0 %411 }
  0x87   : > { %509 = vst.msk [vmem:[#allocation2 + $0x18] sm:$0xff] %vm505_vm3, %v416_v49  ;;  %507 = vst.msk [vmem:[#allocation2 + $0x8] sm:$0xff] %vm505_vm3, %v412_v50 }
  0x88   : > { %1772 = vrot.lane.b32.xlu1 %v4656_v41, %s5009_s16  ;;  %1770 = vrot.lane.b32.xlu0 %v4655_v42, %s5009_s16 }
  0x8a   : > { %v605_v51 = vpop.permute.xlu1 %604  ;;  %v603_v52 = vpop.permute.xlu0 %602 }
  0x8b   : > { %700 = vst.msk [vmem:[#allocation2 + $0x8] sm:$0xff] %vm6723_vm4, %v605_v51  ;;  %699 = vst.msk [vmem:[#allocation2] sm:$0xff] %vm6723_vm4, %v603_v52 }
  0x8c   : > { %427 = vrot.lane.b32.xlu1 %v4624_v39, %s5001_s30  ;;  %425 = vrot.lane.b32.xlu0 %v4623_v40, %s5001_s30 }
  0x8e   : > { %v609_v55 = vpop.permute.xlu1 %608  ;;  %v607_v56 = vpop.permute.xlu0 %606 }
  0x8f   : > { %702 = vst.msk [vmem:[#allocation2 + $0x18] sm:$0xff] %vm6723_vm4, %v609_v55  ;;  %701 = vst.msk [vmem:[#allocation2 + $0x10] sm:$0xff] %vm6723_vm4, %v607_v56 }
  0x90   : > { %1776 = vrot.lane.b32.xlu1 %v5271_v53, %s5009_s16  ;;  %1774 = vrot.lane.b32.xlu0 %v5274_v54, %s5009_s16 }
  0x92   : > { %v799_v57 = vpop.permute.xlu1 %798  ;;  %v797_v58 = vpop.permute.xlu0 %796 }
  0x93   : > { %894 = vst.msk [vmem:[#allocation2 + $0x8] sm:$0xff] %vm6722_vm5, %v799_v57  ;;  %893 = vst.msk [vmem:[#allocation2] sm:$0xff] %vm6722_vm5, %v797_v58 }
  0x94   : > { %431 = vrot.lane.b32.xlu1 %v5251_v45, %s5001_s30  ;;  %429 = vrot.lane.b32.xlu0 %v5254_v46, %s5001_s30 }
  0x96   : > { %v803_v59 = vpop.permute.xlu1 %802  ;;  %v801_v60 = vpop.permute.xlu0 %800 }
  0x97   : > { %896 = vst.msk [vmem:[#allocation2 + $0x18] sm:$0xff] %vm6722_vm5, %v803_v59  ;;  %895 = vst.msk [vmem:[#allocation2 + $0x10] sm:$0xff] %vm6722_vm5, %v801_v60 }
  0x98   : > { %620 = vrot.lane.b32.xlu1 %v4656_v41, %s5002_s8  ;;  %618 = vrot.lane.b32.xlu0 %v4655_v42, %s5002_s8 }
  0x9a   : > { %v992_v61 = vpop.permute.xlu1 %991  ;;  %v990_v62 = vpop.permute.xlu0 %989 }
  0x9b   : > { %1087 = vst.msk [vmem:[#allocation2 + $0x8] sm:$0xff] %vm6720_vm6, %v992_v61  ;;  %1086 = vst.msk [vmem:[#allocation2] sm:$0xff] %vm6720_vm6, %v990_v62 }
  0x9c   : > { %624 = vrot.lane.b32.xlu1 %v5271_v53, %s5002_s8  ;;  %622 = vrot.lane.b32.xlu0 %v5274_v54, %s5002_s8 }
  0x9e   : > { %v996_v63 = vpop.permute.xlu1 %995  ;;  %v994_v0 = vpop.permute.xlu0 %993 }
  0x9f   : > { %1089 = vst.msk [vmem:[#allocation2 + $0x18] sm:$0xff] %vm6720_vm6, %v996_v63  ;;  %1088 = vst.msk [vmem:[#allocation2 + $0x10] sm:$0xff] %vm6720_vm6, %v994_v0 }
  0xa0   : > { %814 = vrot.lane.b32.xlu1 %v5120_v16, %s5003_s9  ;;  %812 = vrot.lane.b32.xlu0 %v5123_v17, %s5003_s9 }
  0xa2   : > { %v1185_v1 = vpop.permute.xlu1 %1184  ;;  %v1183_v2 = vpop.permute.xlu0 %1182 }
  0xa3   : > { %1280 = vst.msk [vmem:[#allocation2 + $0x8] sm:$0xff] %vm1278_vm7, %v1185_v1  ;;  %1279 = vst.msk [vmem:[#allocation2] sm:$0xff] %vm1278_vm7, %v1183_v2  ;;  %v5467_v1 = vld [vmem:[%s5075_s29 + $0xca] sm:$0xff]  ;;  %v5470_v2 = vld [vmem:[%s5075_s29 + $0xc2] sm:$0xff] }
  0xa4   : > { %818 = vrot.lane.b32.xlu1 %v5138_v20, %s5003_s9  ;;  %816 = vrot.lane.b32.xlu0 %v5141_v21, %s5003_s9 }
  0xa6   : > { %v1189_v5 = vpop.permute.xlu1 %1188  ;;  %v1187_v6 = vpop.permute.xlu0 %1186 }
  0xa7   : > { %1282 = vst.msk [vmem:[#allocation2 + $0x18] sm:$0xff] %vm1278_vm7, %v1189_v5  ;;  %1281 = vst.msk [vmem:[#allocation2 + $0x10] sm:$0xff] %vm1278_vm7, %v1187_v6 }
  0xa8   : > { %1007 = vrot.lane.b32.xlu1 %v5251_v45, %s5004_s10  ;;  %1005 = vrot.lane.b32.xlu0 %v5254_v46, %s5004_s10  ;;  %v4756_v45 = vld [vmem:[%s5075_s29 + $0xb2] sm:$0xff]  ;;  %v4755_v46 = vld [vmem:[%s5075_s29 + $0xaa] sm:$0xff] }
  0xaa   : > { %v1379_v9 = vpop.permute.xlu1 %1378  ;;  %v1377_v10 = vpop.permute.xlu0 %1376 }
  0xab   : > { %1474 = vst.msk [vmem:[#allocation2 + $0x8] sm:$0xff] %vm1472_vm8, %v1379_v9  ;;  %1473 = vst.msk [vmem:[#allocation2] sm:$0xff] %vm1472_vm8, %v1377_v10 }
  0xac   : > { %1011 = vrot.lane.b32.xlu1 %v5327_v7, %s5004_s10  ;;  %1009 = vrot.lane.b32.xlu0 %v5330_v8, %s5004_s10 }
  0xae   : > { %v1383_v11 = vpop.permute.xlu1 %1382  ;;  %v1381_v12 = vpop.permute.xlu0 %1380 }
  0xaf   : > { %1476 = vst.msk [vmem:[#allocation2 + $0x18] sm:$0xff] %vm1472_vm8, %v1383_v11  ;;  %1475 = vst.msk [vmem:[#allocation2 + $0x10] sm:$0xff] %vm1472_vm8, %v1381_v12 }
  0xb0   : > { %1200 = vrot.lane.b32.xlu1 %v5271_v53, %s5005_s11  ;;  %1198 = vrot.lane.b32.xlu0 %v5274_v54, %s5005_s11 }
  0xb2   : > { %v1572_v15 = vpop.permute.xlu1 %1571  ;;  %v1570_v16 = vpop.permute.xlu0 %1569 }
  0xb3   : > { %1667 = vst.msk [vmem:[#allocation2 + $0x8] sm:$0xff] %vm1665_vm9, %v1572_v15  ;;  %1666 = vst.msk [vmem:[#allocation2] sm:$0xff] %vm1665_vm9, %v1570_v16 }
  0xb4   : > { %1204 = vrot.lane.b32.xlu1 %v5345_v13, %s5005_s11  ;;  %1202 = vrot.lane.b32.xlu0 %v5348_v14, %s5005_s11 }
  0xb6   : > { %v1576_v17 = vpop.permute.xlu1 %1575  ;;  %v1574_v18 = vpop.permute.xlu0 %1573 }
  0xb7   : > { %1669 = vst.msk [vmem:[#allocation2 + $0x18] sm:$0xff] %vm1665_vm9, %v1576_v17  ;;  %1668 = vst.msk [vmem:[#allocation2 + $0x10] sm:$0xff] %vm1665_vm9, %v1574_v18 }
  0xb8   : > { %1394 = vrot.lane.b32.xlu1 %v5138_v20, %s5006_s12  ;;  %1392 = vrot.lane.b32.xlu0 %v5141_v21, %s5006_s12 }
  0xba   : > { %v1765_v19 = vpop.permute.xlu1 %1764  ;;  %v1763_v22 = vpop.permute.xlu0 %1762 }
  0xbb   : > { %1860 = vst.msk [vmem:[#allocation2 + $0x8] sm:$0xff] %vm1858_vm10, %v1765_v19  ;;  %1859 = vst.msk [vmem:[#allocation2] sm:$0xff] %vm1858_vm10, %v1763_v22 }
  0xbc   : > { %1398 = vrot.lane.b32.xlu1 %v5164_v26, %s5006_s12  ;;  %1396 = vrot.lane.b32.xlu0 %v5167_v27, %s5006_s12 }
  0xbe   : > { %v420_v20 = vpop.permute.xlu1 %419  ;;  %v418_v21 = vpop.permute.xlu0 %417 }
  0xbf   : > { %511 = vst.msk [vmem:[#allocation2 + $0x28] sm:$0xff] %vm505_vm3, %v420_v20  ;;  %510 = vst.msk [vmem:[#allocation2 + $0x20] sm:$0xff] %vm505_vm3, %v418_v21 }
  0xc0   : > { %1587 = vrot.lane.b32.xlu1 %v5327_v7, %s5007_s13  ;;  %1585 = vrot.lane.b32.xlu0 %v5330_v8, %s5007_s13 }
  0xc2   : > { %v1769_v29 = vpop.permute.xlu1 %1768  ;;  %v1767_v30 = vpop.permute.xlu0 %1766  ;;  %v1891_v31 = vld [vmem:[#allocation2] sm:$0xff]  ;;  %v1892_v32 = vld [vmem:[#allocation2 + $0x8] sm:$0xff] }
  0xc3   : > { %1862 = vst.msk [vmem:[#allocation2 + $0x18] sm:$0xff] %vm1858_vm10, %v1769_v29  ;;  %1861 = vst.msk [vmem:[#allocation2 + $0x10] sm:$0xff] %vm1858_vm10, %v1767_v30  ;;  %v1923_v33 = vpack.c.bf16 %v1892_v32, %v1891_v31  ;;  %v4760_v29 = vld [vmem:[%s5075_s29 + $0xe2] sm:$0xff]  ;;  %v4759_v30 = vld [vmem:[%s5075_s29 + $0xda] sm:$0xff] }
  0xc4   : > { %1591 = vrot.lane.b32.xlu1 %v5385_v25, %s5007_s13  ;;  %1589 = vrot.lane.b32.xlu0 %v5388_v28, %s5007_s13 }
  0xc5   : > { %4876 = vmatprep.mubr.msk.bf16.mxu0 %vm1953_vm11, %v1923_v33 }
  0xc6   : > { %v424_v34 = vpop.permute.xlu1 %423  ;;  %v422_v35 = vpop.permute.xlu0 %421 }
  0xc7   : > { %513 = vst.msk [vmem:[#allocation2 + $0x38] sm:$0xff] %vm505_vm3, %v424_v34  ;;  %512 = vst.msk [vmem:[#allocation2 + $0x30] sm:$0xff] %vm505_vm3, %v422_v35 }
  0xc8   : > { %1780 = vrot.lane.b32.xlu1 %v5345_v13, %s5009_s16  ;;  %1778 = vrot.lane.b32.xlu0 %v5348_v14, %s5009_s16 }
  0xca   : > { %v613_v36 = vpop.permute.xlu1 %612  ;;  %v611_v39 = vpop.permute.xlu0 %610  ;;  %v1893_v40 = vld [vmem:[#allocation2 + $0x10] sm:$0xff]  ;;  %v1894_v41 = vld [vmem:[#allocation2 + $0x18] sm:$0xff] }
  0xcb   : > { %704 = vst.msk [vmem:[#allocation2 + $0x28] sm:$0xff] %vm6723_vm4, %v613_v36  ;;  %703 = vst.msk [vmem:[#allocation2 + $0x20] sm:$0xff] %vm6723_vm4, %v611_v39  ;;  %v1924_v42 = vpack.c.bf16 %v1894_v41, %v1893_v40 }
  0xcc   : > { %435 = vrot.lane.b32.xlu1 %v5327_v7, %s5001_s30  ;;  %433 = vrot.lane.b32.xlu0 %v5330_v8, %s5001_s30 }
  0xcd   : > { %4877 = vmatmul.mubr.msk.bf16.vlgmr.msra.gmra.mxu0 %vm1953_vm11, %v1924_v42 }
  0xce   : > { %v617_v47 = vpop.permute.xlu1 %616  ;;  %v615_v48 = vpop.permute.xlu0 %614 }
  0xcf   : > { %706 = vst.msk [vmem:[#allocation2 + $0x38] sm:$0xff] %vm6723_vm4, %v617_v47  ;;  %705 = vst.msk [vmem:[#allocation2 + $0x30] sm:$0xff] %vm6723_vm4, %v615_v48 }
  0xd0   : > { %1784 = vrot.lane.b32.xlu1 %v4756_v45, %s5009_s16  ;;  %1782 = vrot.lane.b32.xlu0 %v4755_v46, %s5009_s16 }
  0xd2   : > { %v807_v49 = vpop.permute.xlu1 %806  ;;  %v805_v50 = vpop.permute.xlu0 %804 }
  0xd3   : > { %898 = vst.msk [vmem:[#allocation2 + $0x28] sm:$0xff] %vm6722_vm5, %v807_v49  ;;  %897 = vst.msk [vmem:[#allocation2 + $0x20] sm:$0xff] %vm6722_vm5, %v805_v50 }
  0xd4   : > { %439 = vrot.lane.b32.xlu1 %v5385_v25, %s5001_s30  ;;  %437 = vrot.lane.b32.xlu0 %v5388_v28, %s5001_s30 }
  0xd6   : > { %v811_v51 = vpop.permute.xlu1 %810  ;;  %v809_v52 = vpop.permute.xlu0 %808 }
  0xd7   : > { %900 = vst.msk [vmem:[#allocation2 + $0x38] sm:$0xff] %vm6722_vm5, %v811_v51  ;;  %899 = vst.msk [vmem:[#allocation2 + $0x30] sm:$0xff] %vm6722_vm5, %v809_v52 }
  0xd8   : > { %628 = vrot.lane.b32.xlu1 %v5345_v13, %s5002_s8  ;;  %626 = vrot.lane.b32.xlu0 %v5348_v14, %s5002_s8 }
  0xda   : > { %v1000_v53 = vpop.permute.xlu1 %999  ;;  %v998_v54 = vpop.permute.xlu0 %997 }
  0xdb   : > { %1091 = vst.msk [vmem:[#allocation2 + $0x28] sm:$0xff] %vm6720_vm6, %v1000_v53  ;;  %1090 = vst.msk [vmem:[#allocation2 + $0x20] sm:$0xff] %vm6720_vm6, %v998_v54  ;;  %v5579_v53 = vld [vmem:[%s5075_s29 + $0xfa] sm:$0xff]  ;;  %v5582_v54 = vld [vmem:[%s5075_s29 + $0xf2] sm:$0xff] }
  0xdc   : > { %632 = vrot.lane.b32.xlu1 %v4756_v45, %s5002_s8  ;;  %630 = vrot.lane.b32.xlu0 %v4755_v46, %s5002_s8 }
  0xde   : > { %v1004_v55 = vpop.permute.xlu1 %1003  ;;  %v1002_v56 = vpop.permute.xlu0 %1001 }
  0xdf   : > { %1093 = vst.msk [vmem:[#allocation2 + $0x38] sm:$0xff] %vm6720_vm6, %v1004_v55  ;;  %1092 = vst.msk [vmem:[#allocation2 + $0x30] sm:$0xff] %vm6720_vm6, %v1002_v56 }
  0xe0   : > { %822 = vrot.lane.b32.xlu1 %v5164_v26, %s5003_s9  ;;  %820 = vrot.lane.b32.xlu0 %v5167_v27, %s5003_s9  ;;  %v5451_v26 = vld [vmem:[%s5075_s29 + $0xc9] sm:$0xff]  ;;  %v5454_v27 = vld [vmem:[%s5075_s29 + $0xc1] sm:$0xff] }
  0xe2   : > { %v1193_v57 = vpop.permute.xlu1 %1192  ;;  %v1191_v58 = vpop.permute.xlu0 %1190 }
  0xe3   : > { %1284 = vst.msk [vmem:[#allocation2 + $0x28] sm:$0xff] %vm1278_vm7, %v1193_v57  ;;  %1283 = vst.msk [vmem:[#allocation2 + $0x20] sm:$0xff] %vm1278_vm7, %v1191_v58  ;;  %v5010_v57 = vmov 0.0  }
  0xe4   : > { %826 = vrot.lane.b32.xlu1 %v5205_v37, %s5003_s9  ;;  %824 = vrot.lane.b32.xlu0 %v5208_v38, %s5003_s9  ;;  %3052 = vst.msk [vmem:[#allocation3] sm:$0xff] %vm2202_vm12, %v5010_v57  ;;  %3055 = vst.msk [vmem:[#allocation3 + $0x90] sm:$0xff] %vm2202_vm12, %v5010_v57 }
  0xe5   : > { %3053 = vst.msk [vmem:[#allocation3 + $0x8] sm:$0x3] %vm6721_vm13, %v5010_v57  ;;  %3056 = vst.msk [vmem:[#allocation3 + $0x98] sm:$0x3] %vm6721_vm13, %v5010_v57 }
  0xe6   : > { %v1197_v59 = vpop.permute.xlu1 %1196  ;;  %v1195_v60 = vpop.permute.xlu0 %1194  ;;  %3067 = vst.msk [vmem:[#allocation3 + $0x19] sm:$0x1] %vm3058_vm14, %v5010_v57  ;;  %3059 = vst.msk [vmem:[#allocation3 + $0x10] sm:$0x1] %vm3058_vm14, %v5010_v57 }
  0xe7   : > { %1286 = vst.msk [vmem:[#allocation2 + $0x38] sm:$0xff] %vm1278_vm7, %v1197_v59  ;;  %1285 = vst.msk [vmem:[#allocation2 + $0x30] sm:$0xff] %vm1278_vm7, %v1195_v60 }
  0xe8   : > { %1015 = vrot.lane.b32.xlu1 %v5385_v25, %s5004_s10  ;;  %1013 = vrot.lane.b32.xlu0 %v5388_v28, %s5004_s10  ;;  %3060 = vst.msk [vmem:[#allocation3 + $0x20] sm:$0x1] %vm3058_vm14, %v5010_v57  ;;  %3061 = vst.msk [vmem:[#allocation3 + $0x30] sm:$0x1] %vm3058_vm14, %v5010_v57 }
  0xe9   : > { %3062 = vst.msk [vmem:[#allocation3 + $0x40] sm:$0x1] %vm3058_vm14, %v5010_v57  ;;  %3063 = vst.msk [vmem:[#allocation3 + $0x50] sm:$0x1] %vm3058_vm14, %v5010_v57 }
  0xea   : > { %v1387_v61 = vpop.permute.xlu1 %1386  ;;  %v1385_v62 = vpop.permute.xlu0 %1384  ;;  %3064 = vst.msk [vmem:[#allocation3 + $0x60] sm:$0x1] %vm3058_vm14, %v5010_v57  ;;  %3065 = vst.msk [vmem:[#allocation3 + $0x70] sm:$0x1] %vm3058_vm14, %v5010_v57 }
  0xeb   : > { %1478 = vst.msk [vmem:[#allocation2 + $0x28] sm:$0xff] %vm1472_vm8, %v1387_v61  ;;  %1477 = vst.msk [vmem:[#allocation2 + $0x20] sm:$0xff] %vm1472_vm8, %v1385_v62 }
  0xec   : > { %1019 = vrot.lane.b32.xlu1 %v5451_v26, %s5004_s10  ;;  %1017 = vrot.lane.b32.xlu0 %v5454_v27, %s5004_s10  ;;  %3066 = vst.msk [vmem:[#allocation3 + $0x80] sm:$0x1] %vm3058_vm14, %v5010_v57  ;;  %3068 = vst.msk [vmem:[#allocation3 + $0x29] sm:$0x1] %vm3058_vm14, %v5010_v57 }
  0xed   : > { %3069 = vst.msk [vmem:[#allocation3 + $0x39] sm:$0x1] %vm3058_vm14, %v5010_v57  ;;  %3070 = vst.msk [vmem:[#allocation3 + $0x49] sm:$0x1] %vm3058_vm14, %v5010_v57 }
  0xee   : > { %v1391_v63 = vpop.permute.xlu1 %1390  ;;  %v1389_v0 = vpop.permute.xlu0 %1388  ;;  %3071 = vst.msk [vmem:[#allocation3 + $0x59] sm:$0x1] %vm3058_vm14, %v5010_v57  ;;  %3072 = vst.msk [vmem:[#allocation3 + $0x69] sm:$0x1] %vm3058_vm14, %v5010_v57 }
  0xef   : > { %1480 = vst.msk [vmem:[#allocation2 + $0x38] sm:$0xff] %vm1472_vm8, %v1391_v63  ;;  %1479 = vst.msk [vmem:[#allocation2 + $0x30] sm:$0xff] %vm1472_vm8, %v1389_v0 }
  0xf0   : > { %1208 = vrot.lane.b32.xlu1 %v4756_v45, %s5005_s11  ;;  %1206 = vrot.lane.b32.xlu0 %v4755_v46, %s5005_s11  ;;  %3073 = vst.msk [vmem:[#allocation3 + $0x79] sm:$0x1] %vm3058_vm14, %v5010_v57  ;;  %3074 = vst.msk [vmem:[#allocation3 + $0x89] sm:$0x1] %vm3058_vm14, %v5010_v57  ;;  %vm3145_vm14 = vcmask 1044484  }
  0xf2   : > { %v1580_v5 = vpop.permute.xlu1 %1579  ;;  %v1578_v6 = vpop.permute.xlu0 %1577 }
  0xf3   : > { %1671 = vst.msk [vmem:[#allocation2 + $0x28] sm:$0xff] %vm1665_vm9, %v1580_v5  ;;  %1670 = vst.msk [vmem:[#allocation2 + $0x20] sm:$0xff] %vm1665_vm9, %v1578_v6 }
  0xf4   : > { %1212 = vrot.lane.b32.xlu1 %v5467_v1, %s5005_s11  ;;  %1210 = vrot.lane.b32.xlu0 %v5470_v2, %s5005_s11 }
  0xf6   : > { %v1584_v7 = vpop.permute.xlu1 %1583  ;;  %v1582_v8 = vpop.permute.xlu0 %1581 }
  0xf7   : > { %1673 = vst.msk [vmem:[#allocation2 + $0x38] sm:$0xff] %vm1665_vm9, %v1584_v7  ;;  %1672 = vst.msk [vmem:[#allocation2 + $0x30] sm:$0xff] %vm1665_vm9, %v1582_v8 }
  0xf8   : > { %1402 = vrot.lane.b32.xlu1 %v5205_v37, %s5006_s12  ;;  %1400 = vrot.lane.b32.xlu0 %v5208_v38, %s5006_s12  ;;  %v5497_v37 = vld [vmem:[%s5075_s29 + $0xe1] sm:$0xff]  ;;  %v5500_v38 = vld [vmem:[%s5075_s29 + $0xd9] sm:$0xff] }
  0xfa   : > { %v1773_v9 = vpop.permute.xlu1 %1772  ;;  %v1771_v10 = vpop.permute.xlu0 %1770 }
  0xfb   : > { %1864 = vst.msk [vmem:[#allocation2 + $0x28] sm:$0xff] %vm1858_vm10, %v1773_v9  ;;  %1863 = vst.msk [vmem:[#allocation2 + $0x20] sm:$0xff] %vm1858_vm10, %v1771_v10 }
  0xfc   : > { %1406 = vrot.lane.b32.xlu1 %v5235_v43, %s5006_s12  ;;  %1404 = vrot.lane.b32.xlu0 %v5238_v44, %s5006_s12 }
  0xfe   : > { %v428_v11 = vpop.permute.xlu1 %427  ;;  %v426_v12 = vpop.permute.xlu0 %425 }
  0xff   : > { %515 = vst.msk [vmem:[#allocation2 + $0x48] sm:$0xff] %vm505_vm3, %v428_v11  ;;  %514 = vst.msk [vmem:[#allocation2 + $0x40] sm:$0xff] %vm505_vm3, %v426_v12  ;;  %v4764_v12 = vld [vmem:[%s5075_s29 + $0x112] sm:$0xff] }
 0x100   : > { %1595 = vrot.lane.b32.xlu1 %v5451_v26, %s5007_s13  ;;  %1593 = vrot.lane.b32.xlu0 %v5454_v27, %s5007_s13 }
 0x102   : > { %v1777_v13 = vpop.permute.xlu1 %1776  ;;  %v1775_v14 = vpop.permute.xlu0 %1774  ;;  %v1895_v15 = vld [vmem:[#allocation2 + $0x20] sm:$0xff]  ;;  %v1896_v16 = vld [vmem:[#allocation2 + $0x28] sm:$0xff] }
 0x103   : > { %1866 = vst.msk [vmem:[#allocation2 + $0x38] sm:$0xff] %vm1858_vm10, %v1777_v13  ;;  %1865 = vst.msk [vmem:[#allocation2 + $0x30] sm:$0xff] %vm1858_vm10, %v1775_v14  ;;  %v1925_v17 = vpack.c.bf16 %v1896_v16, %v1895_v15 }
 0x104   : > { %1599 = vrot.lane.b32.xlu1 %v5497_v37, %s5007_s13  ;;  %1597 = vrot.lane.b32.xlu0 %v5500_v38, %s5007_s13 }
 0x105   : > { %4880 = vmatprep.mubr.msk.bf16.mxu0 %vm1953_vm11, %v1925_v17 }
 0x106   : > { %v432_v18 = vpop.permute.xlu1 %431  ;;  %v430_v19 = vpop.permute.xlu0 %429 }
 0x107   : > { %517 = vst.msk [vmem:[#allocation2 + $0x58] sm:$0xff] %vm505_vm3, %v432_v18  ;;  %516 = vst.msk [vmem:[#allocation2 + $0x50] sm:$0xff] %vm505_vm3, %v430_v19 }
 0x108   : > { %1788 = vrot.lane.b32.xlu1 %v5467_v1, %s5009_s16  ;;  %1786 = vrot.lane.b32.xlu0 %v5470_v2, %s5009_s16 }
 0x10a   : > { %v621_v22 = vpop.permute.xlu1 %620  ;;  %v619_v20 = vpop.permute.xlu0 %618  ;;  %v1897_v21 = vld [vmem:[#allocation2 + $0x30] sm:$0xff]  ;;  %v1898_v25 = vld [vmem:[#allocation2 + $0x38] sm:$0xff] }
 0x10b   : > { %708 = vst.msk [vmem:[#allocation2 + $0x48] sm:$0xff] %vm6723_vm4, %v621_v22  ;;  %707 = vst.msk [vmem:[#allocation2 + $0x40] sm:$0xff] %vm6723_vm4, %v619_v20  ;;  %v1926_v28 = vpack.c.bf16 %v1898_v25, %v1897_v21  ;;  %v4608_v21 = vld [vmem:[%s5075_s29 + $0x128] sm:$0xff]  ;;  %v4607_v25 = vld [vmem:[%s5075_s29 + $0x120] sm:$0xff] }
 0x10c   : > { %443 = vrot.lane.b32.xlu1 %v5451_v26, %s5001_s30  ;;  %441 = vrot.lane.b32.xlu0 %v5454_v27, %s5001_s30 }
 0x10d   : > { %4881 = vmatmul.mubr.msk.bf16.gmra.mxu0 %vm1953_vm11, %v1926_v28 }
 0x10e   : > { %v625_v31 = vpop.permute.xlu1 %624  ;;  %v623_v32 = vpop.permute.xlu0 %622 }
 0x10f   : > { %710 = vst.msk [vmem:[#allocation2 + $0x58] sm:$0xff] %vm6723_vm4, %v625_v31  ;;  %709 = vst.msk [vmem:[#allocation2 + $0x50] sm:$0xff] %vm6723_vm4, %v623_v32 }
 0x110   : > { %1792 = vrot.lane.b32.xlu1 %v4760_v29, %s5009_s16  ;;  %1790 = vrot.lane.b32.xlu0 %v4759_v30, %s5009_s16 }
 0x112   : > { %v815_v33 = vpop.permute.xlu1 %814  ;;  %v813_v34 = vpop.permute.xlu0 %812 }
 0x113   : > { %902 = vst.msk [vmem:[#allocation2 + $0x48] sm:$0xff] %vm6722_vm5, %v815_v33  ;;  %901 = vst.msk [vmem:[#allocation2 + $0x40] sm:$0xff] %vm6722_vm5, %v813_v34 }
 0x114   : > { %447 = vrot.lane.b32.xlu1 %v5497_v37, %s5001_s30  ;;  %445 = vrot.lane.b32.xlu0 %v5500_v38, %s5001_s30 }
 0x116   : > { %v819_v35 = vpop.permute.xlu1 %818  ;;  %v817_v36 = vpop.permute.xlu0 %816 }
 0x117   : > { %904 = vst.msk [vmem:[#allocation2 + $0x58] sm:$0xff] %vm6722_vm5, %v819_v35  ;;  %903 = vst.msk [vmem:[#allocation2 + $0x50] sm:$0xff] %vm6722_vm5, %v817_v36  ;;  %v5731_v36 = vld [vmem:[%s5075_s29 + $0x12a] sm:$0xff] }
 0x118   : > { %636 = vrot.lane.b32.xlu1 %v5467_v1, %s5002_s8  ;;  %634 = vrot.lane.b32.xlu0 %v5470_v2, %s5002_s8 }
 0x11a   : > { %v1008_v39 = vpop.permute.xlu1 %1007  ;;  %v1006_v40 = vpop.permute.xlu0 %1005 }
 0x11b   : > { %1095 = vst.msk [vmem:[#allocation2 + $0x48] sm:$0xff] %vm6720_vm6, %v1008_v39  ;;  %1094 = vst.msk [vmem:[#allocation2 + $0x40] sm:$0xff] %vm6720_vm6, %v1006_v40  ;;  %v5734_v39 = vld [vmem:[%s5075_s29 + $0x122] sm:$0xff] }
 0x11c   : > { %640 = vrot.lane.b32.xlu1 %v4760_v29, %s5002_s8  ;;  %638 = vrot.lane.b32.xlu0 %v4759_v30, %s5002_s8 }
 0x11e   : > { %v1012_v41 = vpop.permute.xlu1 %1011  ;;  %v1010_v42 = vpop.permute.xlu0 %1009 }
 0x11f   : > { %1097 = vst.msk [vmem:[#allocation2 + $0x58] sm:$0xff] %vm6720_vm6, %v1012_v41  ;;  %1096 = vst.msk [vmem:[#allocation2 + $0x50] sm:$0xff] %vm6720_vm6, %v1010_v42 }
 0x120   : > { %830 = vrot.lane.b32.xlu1 %v5235_v43, %s5003_s9  ;;  %828 = vrot.lane.b32.xlu0 %v5238_v44, %s5003_s9  ;;  %v5563_v43 = vld [vmem:[%s5075_s29 + $0xf9] sm:$0xff]  ;;  %v5566_v44 = vld [vmem:[%s5075_s29 + $0xf1] sm:$0xff] }
 0x122   : > { %v1201_v45 = vpop.permute.xlu1 %1200  ;;  %v1199_v46 = vpop.permute.xlu0 %1198 }
 0x123   : > { %1288 = vst.msk [vmem:[#allocation2 + $0x48] sm:$0xff] %vm1278_vm7, %v1201_v45  ;;  %1287 = vst.msk [vmem:[#allocation2 + $0x40] sm:$0xff] %vm1278_vm7, %v1199_v46  ;;  %v5747_v46 = vld [vmem:[%s5075_s29 + $0x140] sm:$0xff] }
 0x124   : > { %834 = vrot.lane.b32.xlu1 %v5307_v3, %s5003_s9  ;;  %832 = vrot.lane.b32.xlu0 %v5310_v4, %s5003_s9 }
 0x126   : > { %v1205_v47 = vpop.permute.xlu1 %1204  ;;  %v1203_v48 = vpop.permute.xlu0 %1202 }
 0x127   : > { %1290 = vst.msk [vmem:[#allocation2 + $0x58] sm:$0xff] %vm1278_vm7, %v1205_v47  ;;  %1289 = vst.msk [vmem:[#allocation2 + $0x50] sm:$0xff] %vm1278_vm7, %v1203_v48  ;;  %v5750_v47 = vld [vmem:[%s5075_s29 + $0x138] sm:$0xff] }
 0x128   : > { %1023 = vrot.lane.b32.xlu1 %v5497_v37, %s5004_s10  ;;  %1021 = vrot.lane.b32.xlu0 %v5500_v38, %s5004_s10  ;;  %v4763_v37 = vld [vmem:[%s5075_s29 + $0x10a] sm:$0xff] }
 0x12a   : > { %v1395_v49 = vpop.permute.xlu1 %1394  ;;  %v1393_v50 = vpop.permute.xlu0 %1392 }
 0x12b   : > { %1482 = vst.msk [vmem:[#allocation2 + $0x48] sm:$0xff] %vm1472_vm8, %v1395_v49  ;;  %1481 = vst.msk [vmem:[#allocation2 + $0x40] sm:$0xff] %vm1472_vm8, %v1393_v50  ;;  %v305_v50 = vld [vmem:[%s5075_s29 + $0x128] sm:$0xff] }
 0x12c   : > { %1027 = vrot.lane.b32.xlu1 %v5563_v43, %s5004_s10  ;;  %1025 = vrot.lane.b32.xlu0 %v5566_v44, %s5004_s10  ;;  %338 = vst.msk [vmem:[#allocation2 + $0xc8] sm:$0xff] %vm312_vm0, %v305_v50 }
 0x12e   : > { %v1399_v51 = vpop.permute.xlu1 %1398  ;;  %v1397_v52 = vpop.permute.xlu0 %1396 }
 0x12f   : > { %1484 = vst.msk [vmem:[#allocation2 + $0x58] sm:$0xff] %vm1472_vm8, %v1399_v51  ;;  %1483 = vst.msk [vmem:[#allocation2 + $0x50] sm:$0xff] %vm1472_vm8, %v1397_v52  ;;  %v304_v51 = vld [vmem:[%s5075_s29 + $0x120] sm:$0xff] }
 0x130   : > { %1216 = vrot.lane.b32.xlu1 %v4760_v29, %s5005_s11  ;;  %1214 = vrot.lane.b32.xlu0 %v4759_v30, %s5005_s11  ;;  %337 = vst.msk [vmem:[#allocation2 + $0xc0] sm:$0xff] %vm312_vm0, %v304_v51  ;;  %v5769_v52 = vld [vmem:[%s5075_s29 + $0x141] sm:$0xff] }
 0x132   : > { %v1588_v55 = vpop.permute.xlu1 %1587  ;;  %v1586_v56 = vpop.permute.xlu0 %1585 }
 0x133   : > { %1675 = vst.msk [vmem:[#allocation2 + $0x48] sm:$0xff] %vm1665_vm9, %v1588_v55  ;;  %1674 = vst.msk [vmem:[#allocation2 + $0x40] sm:$0xff] %vm1665_vm9, %v1586_v56 }
 0x134   : > { %1220 = vrot.lane.b32.xlu1 %v5579_v53, %s5005_s11  ;;  %1218 = vrot.lane.b32.xlu0 %v5582_v54, %s5005_s11 }
 0x136   : > { %v1592_v58 = vpop.permute.xlu1 %1591  ;;  %v1590_v59 = vpop.permute.xlu0 %1589 }
 0x137   : > { %1677 = vst.msk [vmem:[#allocation2 + $0x58] sm:$0xff] %vm1665_vm9, %v1592_v58  ;;  %1676 = vst.msk [vmem:[#allocation2 + $0x50] sm:$0xff] %vm1665_vm9, %v1590_v59 }
 0x138   : > { %1410 = vrot.lane.b32.xlu1 %v5307_v3, %s5006_s12  ;;  %1408 = vrot.lane.b32.xlu0 %v5310_v4, %s5006_s12  ;;  %v5649_v3 = vld [vmem:[%s5075_s29 + $0x111] sm:$0xff]  ;;  %v5652_v4 = vld [vmem:[%s5075_s29 + $0x109] sm:$0xff] }
 0x13a   : > { %v1781_v60 = vpop.permute.xlu1 %1780  ;;  %v1779_v26 = vpop.permute.xlu0 %1778 }
 0x13b   : > { %1868 = vst.msk [vmem:[#allocation2 + $0x48] sm:$0xff] %vm1858_vm10, %v1781_v60  ;;  %1867 = vst.msk [vmem:[#allocation2 + $0x40] sm:$0xff] %vm1858_vm10, %v1779_v26 }
 0x13c   : > { %1414 = vrot.lane.b32.xlu1 %v5365_v23, %s5006_s12  ;;  %1412 = vrot.lane.b32.xlu0 %v5368_v24, %s5006_s12 }
 0x13e   : > { %v436_v27 = vpop.permute.xlu1 %435  ;;  %v434_v61 = vpop.permute.xlu0 %433 }
 0x13f   : > { %519 = vst.msk [vmem:[#allocation2 + $0x68] sm:$0xff] %vm505_vm3, %v436_v27  ;;  %518 = vst.msk [vmem:[#allocation2 + $0x60] sm:$0xff] %vm505_vm3, %v434_v61  ;;  %v307_v27 = vld [vmem:[%s5075_s29 + $0x140] sm:$0xff]  ;;  %v306_v61 = vld [vmem:[%s5075_s29 + $0x138] sm:$0xff] }
 0x140   : > { %1603 = vrot.lane.b32.xlu1 %v5563_v43, %s5007_s13  ;;  %1601 = vrot.lane.b32.xlu0 %v5566_v44, %s5007_s13  ;;  %340 = vst.msk [vmem:[#allocation2 + $0xd8] sm:$0xff] %vm312_vm0, %v307_v27  ;;  %339 = vst.msk [vmem:[#allocation2 + $0xd0] sm:$0xff] %vm312_vm0, %v306_v61 }
 0x142   : > { %v1785_v62 = vpop.permute.xlu1 %1784  ;;  %v1783_v63 = vpop.permute.xlu0 %1782  ;;  %v1899_v0 = vld [vmem:[#allocation2 + $0x40] sm:$0xff]  ;;  %v1900_v1 = vld [vmem:[#allocation2 + $0x48] sm:$0xff] }
 0x143   : > { %1870 = vst.msk [vmem:[#allocation2 + $0x58] sm:$0xff] %vm1858_vm10, %v1785_v62  ;;  %1869 = vst.msk [vmem:[#allocation2 + $0x50] sm:$0xff] %vm1858_vm10, %v1783_v63  ;;  %v1927_v2 = vpack.c.bf16 %v1900_v1, %v1899_v0  ;;  %v5796_v0 = vld [vmem:[%s6711_s2] ss:$0 sm:$0xff] }
 0x144   : > { %1607 = vrot.lane.b32.xlu1 %v5649_v3, %s5007_s13  ;;  %1605 = vrot.lane.b32.xlu0 %v5652_v4, %s5007_s13 }
 0x145   : > { %4884 = vmatprep.mubr.msk.bf16.mxu0 %vm1953_vm11, %v1927_v2  ;;  %v5011_v2 = vmov 1983009808  }
 0x146   : > { %v440_v5 = vpop.permute.xlu1 %439  ;;  %v438_v6 = vpop.permute.xlu0 %437 }
 0x147   : > { %521 = vst.msk [vmem:[#allocation2 + $0x78] sm:$0xff] %vm505_vm3, %v440_v5  ;;  %520 = vst.msk [vmem:[#allocation2 + $0x70] sm:$0xff] %vm505_vm3, %v438_v6  ;;  %v2269_v5 = vunpack.c.l.s4 %v5011_v2  ;;  %v2271_v6 = vlaneseq }
 0x148   : > { %1796 = vrot.lane.b32.xlu1 %v5579_v53, %s5009_s16  ;;  %1794 = vrot.lane.b32.xlu0 %v5582_v54, %s5009_s16 }
 0x14a   : > { %v629_v7 = vpop.permute.xlu1 %628  ;;  %v627_v8 = vpop.permute.xlu0 %626  ;;  %v1901_v9 = vld [vmem:[#allocation2 + $0x50] sm:$0xff]  ;;  %v1902_v10 = vld [vmem:[#allocation2 + $0x58] sm:$0xff] }
 0x14b   : > { %712 = vst.msk [vmem:[#allocation2 + $0x68] sm:$0xff] %vm6723_vm4, %v629_v7  ;;  %711 = vst.msk [vmem:[#allocation2 + $0x60] sm:$0xff] %vm6723_vm4, %v627_v8  ;;  %v1928_v11 = vpack.c.bf16 %v1902_v10, %v1901_v9  ;;  %v5804_v8 = vld [vmem:[%s5075_s29 + $0x142] sm:$0xff]  ;;  %v5807_v9 = vld [vmem:[%s5075_s29 + $0x13a] sm:$0xff] }
 0x14c   : > { %451 = vrot.lane.b32.xlu1 %v5563_v43, %s5001_s30  ;;  %449 = vrot.lane.b32.xlu0 %v5566_v44, %s5001_s30 }
 0x14d   : > { %4885 = vmatmul.mubr.msk.bf16.gmra.mxu0 %vm1953_vm11, %v1928_v11 }
 0x14e   : > { %v633_v38 = vpop.permute.xlu1 %632  ;;  %v631_v13 = vpop.permute.xlu0 %630 }
 0x14f   : > { %714 = vst.msk [vmem:[#allocation2 + $0x78] sm:$0xff] %vm6723_vm4, %v633_v38  ;;  %713 = vst.msk [vmem:[#allocation2 + $0x70] sm:$0xff] %vm6723_vm4, %v631_v13  ;;  %v2270_v38 = vunpack.c.0.s8 %v2269_v5  ;;  %v2272_v13 = vshrl.u32 %v2271_v6, 7 }
 0x150   : > { %1800 = vrot.lane.b32.xlu1 %v4764_v12, %s5009_s16  ;;  %1798 = vrot.lane.b32.xlu0 %v4763_v37, %s5009_s16 }
 0x152   : > { %v823_v14 = vpop.permute.xlu1 %822  ;;  %v821_v15 = vpop.permute.xlu0 %820 }
 0x153   : > { %906 = vst.msk [vmem:[#allocation2 + $0x68] sm:$0xff] %vm6722_vm5, %v823_v14  ;;  %905 = vst.msk [vmem:[#allocation2 + $0x60] sm:$0xff] %vm6722_vm5, %v821_v15 }
 0x154   : > { %455 = vrot.lane.b32.xlu1 %v5649_v3, %s5001_s30  ;;  %453 = vrot.lane.b32.xlu0 %v5652_v4, %s5001_s30 }
 0x156   : > { %v827_v16 = vpop.permute.xlu1 %826  ;;  %v825_v17 = vpop.permute.xlu0 %824 }
 0x157   : > { %908 = vst.msk [vmem:[#allocation2 + $0x78] sm:$0xff] %vm6722_vm5, %v827_v16  ;;  %907 = vst.msk [vmem:[#allocation2 + $0x70] sm:$0xff] %vm6722_vm5, %v825_v17 }
 0x158   : > { %644 = vrot.lane.b32.xlu1 %v5579_v53, %s5002_s8  ;;  %642 = vrot.lane.b32.xlu0 %v5582_v54, %s5002_s8  ;;  %v5772_v53 = vld [vmem:[%s5075_s29 + $0x139] sm:$0xff] }
 0x15a   : > { %v1016_v18 = vpop.permute.xlu1 %1015  ;;  %v1014_v19 = vpop.permute.xlu0 %1013 }
 0x15b   : > { %1099 = vst.msk [vmem:[#allocation2 + $0x68] sm:$0xff] %vm6720_vm6, %v1016_v18  ;;  %1098 = vst.msk [vmem:[#allocation2 + $0x60] sm:$0xff] %vm6720_vm6, %v1014_v19 }
 0x15c   : > { %648 = vrot.lane.b32.xlu1 %v4764_v12, %s5002_s8  ;;  %646 = vrot.lane.b32.xlu0 %v4763_v37, %s5002_s8 }
 0x15e   : > { %v1020_v22 = vpop.permute.xlu1 %1019  ;;  %v1018_v20 = vpop.permute.xlu0 %1017 }
 0x15f   : > { %1101 = vst.msk [vmem:[#allocation2 + $0x78] sm:$0xff] %vm6720_vm6, %v1020_v22  ;;  %1100 = vst.msk [vmem:[#allocation2 + $0x70] sm:$0xff] %vm6720_vm6, %v1018_v20  ;;  %v5818_v20 = vsub.s32 %v2270_v38, %v2272_v13 }
 0x160   : > { %838 = vrot.lane.b32.xlu1 %v5365_v23, %s5003_s9  ;;  %836 = vrot.lane.b32.xlu0 %v5368_v24, %s5003_s9  ;;  %v5715_v23 = vld [vmem:[%s5075_s29 + $0x129] sm:$0xff]  ;;  %v5718_v24 = vld [vmem:[%s5075_s29 + $0x121] sm:$0xff] }
 0x162   : > { %v1209_v28 = vpop.permute.xlu1 %1208  ;;  %v1207_v29 = vpop.permute.xlu0 %1206 }
 0x163   : > { %1292 = vst.msk [vmem:[#allocation2 + $0x68] sm:$0xff] %vm1278_vm7, %v1209_v28  ;;  %1291 = vst.msk [vmem:[#allocation2 + $0x60] sm:$0xff] %vm1278_vm7, %v1207_v29 }
 0x164   : > { %842 = vrot.lane.b32.xlu1 %v4608_v21, %s5003_s9  ;;  %840 = vrot.lane.b32.xlu0 %v4607_v25, %s5003_s9 }
 0x166   : > { %v1213_v30 = vpop.permute.xlu1 %1212  ;;  %v1211_v31 = vpop.permute.xlu0 %1210 }
 0x167   : > { %1294 = vst.msk [vmem:[#allocation2 + $0x78] sm:$0xff] %vm1278_vm7, %v1213_v30  ;;  %1293 = vst.msk [vmem:[#allocation2 + $0x70] sm:$0xff] %vm1278_vm7, %v1211_v31 }
 0x168   : > { %1031 = vrot.lane.b32.xlu1 %v5649_v3, %s5004_s10  ;;  %1029 = vrot.lane.b32.xlu0 %v5652_v4, %s5004_s10 }
 0x16a   : > { %v1403_v32 = vpop.permute.xlu1 %1402  ;;  %v1401_v33 = vpop.permute.xlu0 %1400 }
 0x16b   : > { %1486 = vst.msk [vmem:[#allocation2 + $0x68] sm:$0xff] %vm1472_vm8, %v1403_v32  ;;  %1485 = vst.msk [vmem:[#allocation2 + $0x60] sm:$0xff] %vm1472_vm8, %v1401_v33 }
 0x16c   : > { %1035 = vrot.lane.b32.xlu1 %v5715_v23, %s5004_s10  ;;  %1033 = vrot.lane.b32.xlu0 %v5718_v24, %s5004_s10 }
 0x16e   : > { %v1407_v34 = vpop.permute.xlu1 %1406  ;;  %v1405_v35 = vpop.permute.xlu0 %1404 }
 0x16f   : > { %1488 = vst.msk [vmem:[#allocation2 + $0x78] sm:$0xff] %vm1472_vm8, %v1407_v34  ;;  %1487 = vst.msk [vmem:[#allocation2 + $0x70] sm:$0xff] %vm1472_vm8, %v1405_v35 }
 0x170   : > { %1224 = vrot.lane.b32.xlu1 %v4764_v12, %s5005_s11  ;;  %1222 = vrot.lane.b32.xlu0 %v4763_v37, %s5005_s11 }
 0x172   : > { %v1596_v40 = vpop.permute.xlu1 %1595  ;;  %v1594_v41 = vpop.permute.xlu0 %1593 }
 0x173   : > { %1679 = vst.msk [vmem:[#allocation2 + $0x68] sm:$0xff] %vm1665_vm9, %v1596_v40  ;;  %1678 = vst.msk [vmem:[#allocation2 + $0x60] sm:$0xff] %vm1665_vm9, %v1594_v41 }
 0x174   : > { %1228 = vrot.lane.b32.xlu1 %v5731_v36, %s5005_s11  ;;  %1226 = vrot.lane.b32.xlu0 %v5734_v39, %s5005_s11 }
 0x176   : > { %v1600_v42 = vpop.permute.xlu1 %1599  ;;  %v1598_v45 = vpop.permute.xlu0 %1597 }
 0x177   : > { %1681 = vst.msk [vmem:[#allocation2 + $0x78] sm:$0xff] %vm1665_vm9, %v1600_v42  ;;  %1680 = vst.msk [vmem:[#allocation2 + $0x70] sm:$0xff] %vm1665_vm9, %v1598_v45 }
 0x178   : > { %1418 = vrot.lane.b32.xlu1 %v4608_v21, %s5006_s12  ;;  %1416 = vrot.lane.b32.xlu0 %v4607_v25, %s5006_s12 }
 0x17a   : > { %v1789_v48 = vpop.permute.xlu1 %1788  ;;  %v1787_v43 = vpop.permute.xlu0 %1786 }
 0x17b   : > { %1872 = vst.msk [vmem:[#allocation2 + $0x68] sm:$0xff] %vm1858_vm10, %v1789_v48  ;;  %1871 = vst.msk [vmem:[#allocation2 + $0x60] sm:$0xff] %vm1858_vm10, %v1787_v43 }
 0x17c   : > { %1422 = vrot.lane.b32.xlu1 %v5747_v46, %s5006_s12  ;;  %1420 = vrot.lane.b32.xlu0 %v5750_v47, %s5006_s12 }
 0x17e   : > { %v444_v44 = vpop.permute.xlu1 %443  ;;  %v442_v49 = vpop.permute.xlu0 %441 }
 0x17f   : > { %523 = vst.msk [vmem:[#allocation2 + $0x88] sm:$0xff] %vm505_vm3, %v444_v44  ;;  %522 = vst.msk [vmem:[#allocation2 + $0x80] sm:$0xff] %vm505_vm3, %v442_v49 }
 0x180   : > { %1611 = vrot.lane.b32.xlu1 %v5715_v23, %s5007_s13  ;;  %1609 = vrot.lane.b32.xlu0 %v5718_v24, %s5007_s13 }
 0x182   : > { %v1793_v54 = vpop.permute.xlu1 %1792  ;;  %v1791_v55 = vpop.permute.xlu0 %1790  ;;  %v1903_v56 = vld [vmem:[#allocation2 + $0x60] sm:$0xff]  ;;  %v1904_v58 = vld [vmem:[#allocation2 + $0x68] sm:$0xff] }
 0x183   : > { %1874 = vst.msk [vmem:[#allocation2 + $0x78] sm:$0xff] %vm1858_vm10, %v1793_v54  ;;  %1873 = vst.msk [vmem:[#allocation2 + $0x70] sm:$0xff] %vm1858_vm10, %v1791_v55  ;;  %v1929_v59 = vpack.c.bf16 %v1904_v58, %v1903_v56 }
 0x184   : > { %1615 = vrot.lane.b32.xlu1 %v5769_v52, %s5007_s13  ;;  %1613 = vrot.lane.b32.xlu0 %v5772_v53, %s5007_s13 }
 0x185   : > { %4888 = vmatprep.mubr.msk.bf16.mxu0 %vm1953_vm11, %v1929_v59 }
 0x186   : > { %v448_v60 = vpop.permute.xlu1 %447  ;;  %v446_v26 = vpop.permute.xlu0 %445 }
 0x187   : > { %525 = vst.msk [vmem:[#allocation2 + $0x98] sm:$0xff] %vm505_vm3, %v448_v60  ;;  %524 = vst.msk [vmem:[#allocation2 + $0x90] sm:$0xff] %vm505_vm3, %v446_v26 }
 0x188   : > { %1804 = vrot.lane.b32.xlu1 %v5731_v36, %s5009_s16  ;;  %1802 = vrot.lane.b32.xlu0 %v5734_v39, %s5009_s16 }
 0x18a   : > { %v637_v3 = vpop.permute.xlu1 %636  ;;  %v635_v4 = vpop.permute.xlu0 %634  ;;  %v1905_v62 = vld [vmem:[#allocation2 + $0x70] sm:$0xff]  ;;  %v1906_v63 = vld [vmem:[#allocation2 + $0x78] sm:$0xff] }
 0x18b   : > { %716 = vst.msk [vmem:[#allocation2 + $0x88] sm:$0xff] %vm6723_vm4, %v637_v3  ;;  %715 = vst.msk [vmem:[#allocation2 + $0x80] sm:$0xff] %vm6723_vm4, %v635_v4  ;;  %v1930_v1 = vpack.c.bf16 %v1906_v63, %v1905_v62 }
 0x18c   : > { %459 = vrot.lane.b32.xlu1 %v5715_v23, %s5001_s30  ;;  %457 = vrot.lane.b32.xlu0 %v5718_v24, %s5001_s30 }
 0x18d   : > { %v4878_v7 = vpop.f32.mrf.mxu0  ;;  %4889 = vmatmul.mubr.msk.bf16.gmra.mxu0 %vm1953_vm11, %v1930_v1 }
 0x18e   : > { %v2052_v10 = vadd.f32 %v4878_v7, %v5796_v0  ;;  %v641_v11 = vpop.permute.xlu1 %640  ;;  %v639_v12 = vpop.permute.xlu0 %638 }
 0x18f   : > { %718 = vst.msk [vmem:[#allocation2 + $0x98] sm:$0xff] %vm6723_vm4, %v641_v11  ;;  %717 = vst.msk [vmem:[#allocation2 + $0x90] sm:$0xff] %vm6723_vm4, %v639_v12  ;;  %v2043_v37 = vpop.f32.mrf.mxu0 }
 0x190   : > { %v2172_v14 = vmax.f32 %v2052_v10, 0.0  ;;  %v2044_v15 = vadd.f32 %v5796_v0, %v2043_v37  ;;  %1808 = vrot.lane.b32.xlu1 %v5804_v8, %s5009_s16  ;;  %1806 = vrot.lane.b32.xlu0 %v5807_v9, %s5009_s16 }
 0x191   : > { %v4879_v16 = vpop.f32.mrf.mxu0 }
 0x192   : > { %v2170_v17 = vmax.f32 %v2044_v15, 0.0  ;;  %v2055_v18 = vadd.f32 %v4879_v16, %v5796_v0  ;;  %v831_v19 = vpop.permute.xlu1 %830  ;;  %v829_v22 = vpop.permute.xlu0 %828  ;;  %v2204_v25 = vsel %vm2202_vm12, %v2172_v14, -inf  ;;  %v5862_v14 = vld [vmem:[%s5075_s29 + $0x158] sm:$0xff]  ;;  %v5865_v15 = vld [vmem:[%s5075_s29 + $0x150] sm:$0xff] }
 0x193   : > { %910 = vst.msk [vmem:[#allocation2 + $0x88] sm:$0xff] %vm6722_vm5, %v831_v19  ;;  %909 = vst.msk [vmem:[#allocation2 + $0x80] sm:$0xff] %vm6722_vm5, %v829_v22  ;;  %v2046_v21 = vpop.f32.mrf.mxu0 }
 0x194   : > { %v2203_v28 = vsel %vm2202_vm12, %v2170_v17, -inf  ;;  %v2173_v29 = vmax.f32 %v2055_v18, 0.0  ;;  %v2047_v30 = vadd.f32 %v5796_v0, %v2046_v21  ;;  %463 = vrot.lane.b32.xlu1 %v5769_v52, %s5001_s30  ;;  %461 = vrot.lane.b32.xlu0 %v5772_v53, %s5001_s30 }
 0x195   : > { %v2205_v31 = vmax.f32 %v2203_v28, %v2204_v25 }
 0x196   : > { %v2171_v23 = vmax.f32 %v2047_v30, 0.0  ;;  %v835_v24 = vpop.permute.xlu1 %834  ;;  %v833_v32 = vpop.permute.xlu0 %832  ;;  %v2207_v35 = vsel %vm2202_vm12, %v2173_v29, -inf }
 0x197   : > { %v2267_v33 = vcombine.high %v2205_v31, %v2205_v31  ;;  %v2274_v34 = vrot.slane %v2205_v31, %v5818_v20  ;;  %912 = vst.msk [vmem:[#allocation2 + $0x98] sm:$0xff] %vm6722_vm5, %v835_v24  ;;  %911 = vst.msk [vmem:[#allocation2 + $0x90] sm:$0xff] %vm6722_vm5, %v833_v32 }
 0x198   : > { %v2206_v40 = vsel %vm2202_vm12, %v2171_v23, -inf  ;;  %652 = vrot.lane.b32.xlu1 %v5731_v36, %s5002_s8  ;;  %650 = vrot.lane.b32.xlu0 %v5734_v39, %s5002_s8 }
 0x199   : > { %v2281_v41 = vrot.slane %v2267_v33, %v5818_v20  ;;  %v2282_v42 = vcombine.high %v2274_v34, %v2274_v34  ;;  %v2604_v45 = vsel %vm6721_vm13, %v2274_v34, -inf  ;;  %v2208_v48 = vmax.f32 %v2206_v40, %v2207_v35 }
 0x19a   : > { %v2605_v43 = vrot.slane %v2604_v45, 4  ;;  %v1024_v44 = vpop.permute.xlu1 %1023  ;;  %v1022_v49 = vpop.permute.xlu0 %1021 }
 0x19b   : > { %v2283_v50 = vcombine.high %v2281_v41, %v2281_v41  ;;  %v2611_v51 = vsel %vm6721_vm13, %v2282_v42, -inf  ;;  %v2618_v54 = vsel %vm6721_vm13, %v2281_v41, -inf  ;;  %v2284_v55 = vcombine.high %v2208_v48, %v2208_v48  ;;  %1103 = vst.msk [vmem:[#allocation2 + $0x88] sm:$0xff] %vm6720_vm6, %v1024_v44  ;;  %1102 = vst.msk [vmem:[#allocation2 + $0x80] sm:$0xff] %vm6720_vm6, %v1022_v49 }
 0x19c   : > { %v2606_v36 = vmax.f32 %v2604_v45, %v2605_v43  ;;  %v2612_v39 = vrot.slane %v2611_v51, 4  ;;  %v2619_v56 = vrot.slane %v2618_v54, 4  ;;  %v2291_v58 = vrot.slane %v2208_v48, %v5818_v20  ;;  %656 = vrot.lane.b32.xlu1 %v5804_v8, %s5002_s8  ;;  %654 = vrot.lane.b32.xlu0 %v5807_v9, %s5002_s8 }
 0x19d   : > { %v2625_v59 = vsel %vm6721_vm13, %v2283_v50, -inf  ;;  %v2298_v60 = vrot.slane %v2284_v55, %v5818_v20 }
 0x19e   : > { %v2607_v26 = vrot.slane %v2606_v36, 2  ;;  %v2613_v27 = vmax.f32 %v2611_v51, %v2612_v39  ;;  %v2620_v61 = vmax.f32 %v2618_v54, %v2619_v56  ;;  %v2626_v3 = vrot.slane %v2625_v59, 4  ;;  %v1028_v4 = vpop.permute.xlu1 %1027  ;;  %v1026_v62 = vpop.permute.xlu0 %1025  ;;  %v5882_v56 = vld [vmem:[%s5075_s29 + $0x159] sm:$0xff] }
 0x19f   : > { %v2299_v63 = vcombine.high %v2291_v58, %v2291_v58  ;;  %v2300_v1 = vcombine.high %v2298_v60, %v2298_v60  ;;  %v2632_v2 = vsel %vm6721_vm13, %v2291_v58, -inf  ;;  %v2646_v5 = vsel %vm6721_vm13, %v2298_v60, -inf  ;;  %1105 = vst.msk [vmem:[#allocation2 + $0x98] sm:$0xff] %vm6720_vm6, %v1028_v4  ;;  %1104 = vst.msk [vmem:[#allocation2 + $0x90] sm:$0xff] %vm6720_vm6, %v1026_v62  ;;  %v5885_v58 = vld [vmem:[%s5075_s29 + $0x151] sm:$0xff] }
 0x1a0   : > { %v2608_v6 = vmax.f32 %v2606_v36, %v2607_v26  ;;  %v2614_v7 = vrot.slane %v2613_v27, 2  ;;  %v2621_v10 = vrot.slane %v2620_v61, 2  ;;  %v2627_v11 = vmax.f32 %v2625_v59, %v2626_v3  ;;  %846 = vrot.lane.b32.xlu1 %v5747_v46, %s5003_s9  ;;  %844 = vrot.lane.b32.xlu0 %v5750_v47, %s5003_s9 }
 0x1a1   : > { %v2633_v12 = vrot.slane %v2632_v2, 4  ;;  %v2639_v37 = vsel %vm6721_vm13, %v2299_v63, -inf  ;;  %v2647_v38 = vrot.slane %v2646_v5, 4  ;;  %v2653_v13 = vsel %vm6721_vm13, %v2300_v1, -inf }
 0x1a2   : > { %v2609_v16 = vrot.slane %v2608_v6, 1  ;;  %v2615_v17 = vmax.f32 %v2613_v27, %v2614_v7  ;;  %v2622_v18 = vmax.f32 %v2620_v61, %v2621_v10  ;;  %v2628_v19 = vrot.slane %v2627_v11, 2  ;;  %v1217_v22 = vpop.permute.xlu1 %1216  ;;  %v1215_v21 = vpop.permute.xlu0 %1214  ;;  %v5905_v10 = vld [vmem:[%s5075_s29 + $0x15a] sm:$0xff] }
 0x1a3   : > { %v2634_v46 = vmax.f32 %v2632_v2, %v2633_v12  ;;  %v2640_v25 = vrot.slane %v2639_v37, 4  ;;  %v2648_v28 = vmax.f32 %v2646_v5, %v2647_v38  ;;  %v2654_v47 = vrot.slane %v2653_v13, 4  ;;  %1296 = vst.msk [vmem:[#allocation2 + $0x88] sm:$0xff] %vm1278_vm7, %v1217_v22  ;;  %1295 = vst.msk [vmem:[#allocation2 + $0x80] sm:$0xff] %vm1278_vm7, %v1215_v21  ;;  %v5924_v38 = vld [vmem:[%s5075_s29 + $0x170] sm:$0xff] }
 0x1a4   : > { %v2616_v29 = vrot.slane %v2615_v17, 1  ;;  %v2623_v30 = vrot.slane %v2622_v18, 1  ;;  %v2629_v31 = vmax.f32 %v2627_v11, %v2628_v19  ;;  %850 = vrot.lane.b32.xlu1 %v5862_v14, %s5003_s9  ;;  %848 = vrot.lane.b32.xlu0 %v5865_v15, %s5003_s9  ;;  %v2610_v34 = vmax.f32 %v2608_v6, %v2609_v16  ;;  %v5908_v11 = vld [vmem:[%s5075_s29 + $0x152] sm:$0xff] }
 0x1a5   : > { %v2635_v23 = vrot.slane %v2634_v46, 2  ;;  %v2641_v24 = vmax.f32 %v2639_v37, %v2640_v25  ;;  %v2649_v32 = vrot.slane %v2648_v28, 2  ;;  %v2655_v33 = vmax.f32 %v2653_v13, %v2654_v47  ;;  %v5927_v13 = vld [vmem:[%s5075_s29 + $0x168] sm:$0xff]  ;;  %v309_v19 = vld [vmem:[%s5075_s29 + $0x158] sm:$0xff]  ;;  %v308_v22 = vld [vmem:[%s5075_s29 + $0x150] sm:$0xff] }
 0x1a6   : > { %v2617_v35 = vmax.f32 %v2615_v17, %v2616_v29  ;;  %v2624_v40 = vmax.f32 %v2622_v18, %v2623_v30  ;;  %v2630_v41 = vrot.slane %v2629_v31, 1  ;;  %v1221_v42 = vpop.permute.xlu1 %1220  ;;  %v1219_v45 = vpop.permute.xlu0 %1218  ;;  %342 = vst.msk [vmem:[#allocation2 + $0xe8] sm:$0xff] %vm312_vm0, %v309_v19  ;;  %341 = vst.msk [vmem:[#allocation2 + $0xe0] sm:$0xff] %vm312_vm0, %v308_v22  ;;  %v5950_v21 = vld [vmem:[%s5075_s29 + $0x171] sm:$0xff] }
 0x1a7   : > { %v2636_v48 = vmax.f32 %v2634_v46, %v2635_v23  ;;  %v2642_v43 = vrot.slane %v2641_v24, 2  ;;  %v2650_v44 = vmax.f32 %v2648_v28, %v2649_v32  ;;  %v2656_v49 = vrot.slane %v2655_v33, 2  ;;  %1298 = vst.msk [vmem:[#allocation2 + $0x98] sm:$0xff] %vm1278_vm7, %v1221_v42  ;;  %1297 = vst.msk [vmem:[#allocation2 + $0x90] sm:$0xff] %vm1278_vm7, %v1219_v45  ;;  %v5953_v46 = vld [vmem:[%s5075_s29 + $0x169] sm:$0xff]  ;;  %v5980_v45 = vld [vmem:[%s5075_s29 + $0x172] sm:$0xff] }
 0x1a8   : > { %v2631_v50 = vmax.f32 %v2629_v31, %v2630_v41  ;;  %v3140_v51 = vsel %vm6719_vm15, %v2617_v35, %v2610_v34  ;;  %1039 = vrot.lane.b32.xlu1 %v5769_v52, %s5004_s10  ;;  %1037 = vrot.lane.b32.xlu0 %v5772_v53, %s5004_s10  ;;  %vm3151_vm15 = vcmask 1047559   ;;  %v310_v32 = vld [vmem:[%s5075_s29 + $0x168] sm:$0xff] }
 0x1a9   : > { %v3142_v54 = vsel %vm6717_vm1, %v2624_v40, %v3140_v51  ;;  %v2637_v55 = vrot.slane %v2636_v48, 1  ;;  %v2643_v36 = vmax.f32 %v2641_v24, %v2642_v43  ;;  %v2651_v39 = vrot.slane %v2650_v44, 1  ;;  %v311_v24 = vld [vmem:[%s5075_s29 + $0x170] sm:$0xff]  ;;  %343 = vst.msk [vmem:[#allocation2 + $0xf0] sm:$0xff] %vm312_vm0, %v310_v32 }
 0x1aa   : > { %v2657_v59 = vmax.f32 %v2655_v33, %v2656_v49  ;;  %v3144_v60 = vsel %vm6718_vm2, %v2631_v50, %v3142_v54  ;;  %v1411_v26 = vpop.permute.xlu1 %1410  ;;  %v1409_v27 = vpop.permute.xlu0 %1408  ;;  %vm3147_vm1 = vcmask 1045509   ;;  %vm3149_vm2 = vcmask 1046534   ;;  %344 = vst.msk [vmem:[#allocation2 + $0xf8] sm:$0xff] %vm312_vm0, %v311_v24 }
 0x1ab   : > { %v2638_v61 = vmax.f32 %v2636_v48, %v2637_v55  ;;  %v2644_v52 = vrot.slane %v2643_v36, 1  ;;  %1490 = vst.msk [vmem:[#allocation2 + $0x88] sm:$0xff] %vm1472_vm8, %v1411_v26  ;;  %1489 = vst.msk [vmem:[#allocation2 + $0x80] sm:$0xff] %vm1472_vm8, %v1409_v27  ;;  %v2652_v53 = vmax.f32 %v2650_v44, %v2651_v39  ;;  %v5983_v48 = vld [vmem:[%s5075_s29 + $0x16a] sm:$0xff]  ;;  %vm6725_vm0 = vcmask 1041409  }
 0x1ac   : > { %v2658_v3 = vrot.slane %v2657_v59, 1  ;;  %1043 = vrot.lane.b32.xlu1 %v5882_v56, %s5004_s10  ;;  %1041 = vrot.lane.b32.xlu0 %v5885_v58, %s5004_s10 }
 0x1ad   : > { %v2645_v4 = vmax.f32 %v2643_v36, %v2644_v52  ;;  %v3146_v62 = vsel %vm3145_vm14, %v2638_v61, %v3144_v60 }
 0x1ae   : > { %v2659_v63 = vmax.f32 %v2657_v59, %v2658_v3  ;;  %v1415_v1 = vpop.permute.xlu1 %1414  ;;  %v1413_v2 = vpop.permute.xlu0 %1412 }
 0x1af   : > { %v3148_v5 = vsel %vm3147_vm1, %v2645_v4, %v3146_v62  ;;  %1492 = vst.msk [vmem:[#allocation2 + $0x98] sm:$0xff] %vm1472_vm8, %v1415_v1  ;;  %1491 = vst.msk [vmem:[#allocation2 + $0x90] sm:$0xff] %vm1472_vm8, %v1413_v2 }
 0x1b0   : > { %v3150_v6 = vsel %vm3149_vm2, %v2652_v53, %v3148_v5  ;;  %1232 = vrot.lane.b32.xlu1 %v5804_v8, %s5005_s11  ;;  %1230 = vrot.lane.b32.xlu0 %v5807_v9, %s5005_s11 }
 0x1b1   : > { %v3152_v7 = vsel %vm3151_vm15, %v2659_v63, %v3150_v6 }
 0x1b2   : > { %3210 = vst.msk [vmem:[#allocation3 + $0x11] sm:$0xff] %vm2202_vm12, %v3152_v7  ;;  %v1604_v12 = vpop.permute.xlu1 %1603  ;;  %v1602_v37 = vpop.permute.xlu0 %1601 }
 0x1b3   : > { %1683 = vst.msk [vmem:[#allocation2 + $0x88] sm:$0xff] %vm1665_vm9, %v1604_v12  ;;  %1682 = vst.msk [vmem:[#allocation2 + $0x80] sm:$0xff] %vm1665_vm9, %v1602_v37 }
 0x1b4   : > { %1236 = vrot.lane.b32.xlu1 %v5905_v10, %s5005_s11  ;;  %1234 = vrot.lane.b32.xlu0 %v5908_v11, %s5005_s11 }
 0x1b6   : > { %v1608_v8 = vpop.permute.xlu1 %1607  ;;  %v1606_v9 = vpop.permute.xlu0 %1605 }
 0x1b7   : > { %1685 = vst.msk [vmem:[#allocation2 + $0x98] sm:$0xff] %vm1665_vm9, %v1608_v8  ;;  %1684 = vst.msk [vmem:[#allocation2 + $0x90] sm:$0xff] %vm1665_vm9, %v1606_v9 }
 0x1b8   : > { %1426 = vrot.lane.b32.xlu1 %v5862_v14, %s5006_s12  ;;  %1424 = vrot.lane.b32.xlu0 %v5865_v15, %s5006_s12 }
 0x1b9   : > { %v5929_v16 = vld [vmem:[#allocation3 + $0x10] sm:$0xff] }
 0x1ba   : > { %v1797_v17 = vpop.permute.xlu1 %1796  ;;  %v1795_v18 = vpop.permute.xlu0 %1794  ;;  %3227 = vst.msk [vmem:[#allocation4 + $0x10] sm:$0xff] %vm2202_vm12, %v5929_v16 }
 0x1bb   : > { %1876 = vst.msk [vmem:[#allocation2 + $0x88] sm:$0xff] %vm1858_vm10, %v1797_v17  ;;  %1875 = vst.msk [vmem:[#allocation2 + $0x80] sm:$0xff] %vm1858_vm10, %v1795_v18 }
 0x1bc   : > { %1430 = vrot.lane.b32.xlu1 %v5924_v38, %s5006_s12  ;;  %1428 = vrot.lane.b32.xlu0 %v5927_v13, %s5006_s12 }
 0x1be   : > { %v452_v14 = vpop.permute.xlu1 %451  ;;  %v450_v15 = vpop.permute.xlu0 %449 }
 0x1bf   : > { %527 = vst.msk [vmem:[#allocation2 + $0xa8] sm:$0xff] %vm505_vm3, %v452_v14  ;;  %526 = vst.msk [vmem:[#allocation2 + $0xa0] sm:$0xff] %vm505_vm3, %v450_v15 }
 0x1c0   : > { %1619 = vrot.lane.b32.xlu1 %v5882_v56, %s5007_s13  ;;  %1617 = vrot.lane.b32.xlu0 %v5885_v58, %s5007_s13 }
 0x1c2   : > { %v1801_v25 = vpop.permute.xlu1 %1800  ;;  %v1799_v28 = vpop.permute.xlu0 %1798  ;;  %v1907_v47 = vld [vmem:[#allocation2 + $0x80] sm:$0xff]  ;;  %v1908_v29 = vld [vmem:[#allocation2 + $0x88] sm:$0xff] }
 0x1c3   : > { %1878 = vst.msk [vmem:[#allocation2 + $0x98] sm:$0xff] %vm1858_vm10, %v1801_v25  ;;  %1877 = vst.msk [vmem:[#allocation2 + $0x90] sm:$0xff] %vm1858_vm10, %v1799_v28  ;;  %v1931_v30 = vpack.c.bf16 %v1908_v29, %v1907_v47 }
 0x1c4   : > { %1623 = vrot.lane.b32.xlu1 %v5950_v21, %s5007_s13  ;;  %1621 = vrot.lane.b32.xlu0 %v5953_v46, %s5007_s13 }
 0x1c5   : > { %4892 = vmatprep.mubr.msk.bf16.mxu0 %vm1953_vm11, %v1931_v30 }
 0x1c6   : > { %v456_v31 = vpop.permute.xlu1 %455  ;;  %v454_v23 = vpop.permute.xlu0 %453 }
 0x1c7   : > { %529 = vst.msk [vmem:[#allocation2 + $0xb8] sm:$0xff] %vm505_vm3, %v456_v31  ;;  %528 = vst.msk [vmem:[#allocation2 + $0xb0] sm:$0xff] %vm505_vm3, %v454_v23 }
 0x1c8   : > { %1812 = vrot.lane.b32.xlu1 %v5905_v10, %s5009_s16  ;;  %1810 = vrot.lane.b32.xlu0 %v5908_v11, %s5009_s16 }
 0x1ca   : > { %v645_v33 = vpop.permute.xlu1 %644  ;;  %v643_v34 = vpop.permute.xlu0 %642  ;;  %v1909_v35 = vld [vmem:[#allocation2 + $0x90] sm:$0xff]  ;;  %v1910_v40 = vld [vmem:[#allocation2 + $0x98] sm:$0xff] }
 0x1cb   : > { %720 = vst.msk [vmem:[#allocation2 + $0xa8] sm:$0xff] %vm6723_vm4, %v645_v33  ;;  %719 = vst.msk [vmem:[#allocation2 + $0xa0] sm:$0xff] %vm6723_vm4, %v643_v34  ;;  %v1932_v41 = vpack.c.bf16 %v1910_v40, %v1909_v35 }
 0x1cc   : > { %467 = vrot.lane.b32.xlu1 %v5882_v56, %s5001_s30  ;;  %465 = vrot.lane.b32.xlu0 %v5885_v58, %s5001_s30 }
 0x1cd   : > { %v4882_v42 = vpop.f32.mrf.mxu0  ;;  %4893 = vmatmul.mubr.msk.bf16.gmra.mxu0 %vm1953_vm11, %v1932_v41 }
 0x1ce   : > { %v2068_v43 = vadd.f32 %v4882_v42, %v5796_v0  ;;  %v649_v44 = vpop.permute.xlu1 %648  ;;  %v647_v49 = vpop.permute.xlu0 %646 }
 0x1cf   : > { %722 = vst.msk [vmem:[#allocation2 + $0xb8] sm:$0xff] %vm6723_vm4, %v649_v44  ;;  %721 = vst.msk [vmem:[#allocation2 + $0xb0] sm:$0xff] %vm6723_vm4, %v647_v49  ;;  %v2059_v50 = vpop.f32.mrf.mxu0 }
 0x1d0   : > { %v2176_v51 = vmax.f32 %v2068_v43, 0.0  ;;  %v2060_v54 = vadd.f32 %v5796_v0, %v2059_v50  ;;  %1816 = vrot.lane.b32.xlu1 %v5980_v45, %s5009_s16  ;;  %1814 = vrot.lane.b32.xlu0 %v5983_v48, %s5009_s16 }
 0x1d1   : > { %v4883_v55 = vpop.f32.mrf.mxu0 }
 0x1d2   : > { %v2174_v36 = vmax.f32 %v2060_v54, 0.0  ;;  %v2071_v39 = vadd.f32 %v4883_v55, %v5796_v0  ;;  %v839_v56 = vpop.permute.xlu1 %838  ;;  %v837_v58 = vpop.permute.xlu0 %836  ;;  %v2210_v60 = vsel %vm2202_vm12, %v2176_v51, -inf  ;;  %v6036_v54 = vld [vmem:[%s5075_s29 + $0x188] sm:$0xff]  ;;  %v6039_v55 = vld [vmem:[%s5075_s29 + $0x180] sm:$0xff] }
 0x1d3   : > { %914 = vst.msk [vmem:[#allocation2 + $0xa8] sm:$0xff] %vm6722_vm5, %v839_v56  ;;  %913 = vst.msk [vmem:[#allocation2 + $0xa0] sm:$0xff] %vm6722_vm5, %v837_v58  ;;  %v2062_v59 = vpop.f32.mrf.mxu0 }
 0x1d4   : > { %v2209_v26 = vsel %vm2202_vm12, %v2174_v36, -inf  ;;  %v2177_v27 = vmax.f32 %v2071_v39, 0.0  ;;  %v2063_v61 = vadd.f32 %v5796_v0, %v2062_v59  ;;  %471 = vrot.lane.b32.xlu1 %v5950_v21, %s5001_s30  ;;  %469 = vrot.lane.b32.xlu0 %v5953_v46, %s5001_s30 }
 0x1d5   : > { %v2211_v52 = vmax.f32 %v2209_v26, %v2210_v60 }
 0x1d6   : > { %v2175_v53 = vmax.f32 %v2063_v61, 0.0  ;;  %v843_v3 = vpop.permute.xlu1 %842  ;;  %v841_v4 = vpop.permute.xlu0 %840  ;;  %v2213_v1 = vsel %vm2202_vm12, %v2177_v27, -inf }
 0x1d7   : > { %v2301_v62 = vcombine.high %v2211_v52, %v2211_v52  ;;  %v2308_v63 = vrot.slane %v2211_v52, %v5818_v20  ;;  %916 = vst.msk [vmem:[#allocation2 + $0xb8] sm:$0xff] %vm6722_vm5, %v843_v3  ;;  %915 = vst.msk [vmem:[#allocation2 + $0xb0] sm:$0xff] %vm6722_vm5, %v841_v4 }
 0x1d8   : > { %v2212_v2 = vsel %vm2202_vm12, %v2175_v53, -inf  ;;  %660 = vrot.lane.b32.xlu1 %v5905_v10, %s5002_s8  ;;  %658 = vrot.lane.b32.xlu0 %v5908_v11, %s5002_s8 }
 0x1d9   : > { %v2315_v5 = vrot.slane %v2301_v62, %v5818_v20  ;;  %v2316_v6 = vcombine.high %v2308_v63, %v2308_v63  ;;  %v2660_v7 = vsel %vm6721_vm13, %v2308_v63, -inf  ;;  %v2214_v12 = vmax.f32 %v2212_v2, %v2213_v1 }
 0x1da   : > { %v2661_v37 = vrot.slane %v2660_v7, 4  ;;  %v1032_v8 = vpop.permute.xlu1 %1031  ;;  %v1030_v9 = vpop.permute.xlu0 %1029 }
 0x1db   : > { %v2317_v17 = vcombine.high %v2315_v5, %v2315_v5  ;;  %v2667_v18 = vsel %vm6721_vm13, %v2316_v6, -inf  ;;  %v2674_v14 = vsel %vm6721_vm13, %v2315_v5, -inf  ;;  %v2318_v15 = vcombine.high %v2214_v12, %v2214_v12  ;;  %1107 = vst.msk [vmem:[#allocation2 + $0xa8] sm:$0xff] %vm6720_vm6, %v1032_v8  ;;  %1106 = vst.msk [vmem:[#allocation2 + $0xa0] sm:$0xff] %vm6720_vm6, %v1030_v9 }
 0x1dc   : > { %v2662_v10 = vmax.f32 %v2660_v7, %v2661_v37  ;;  %v2668_v11 = vrot.slane %v2667_v18, 4  ;;  %v2675_v19 = vrot.slane %v2674_v14, 4  ;;  %v2325_v22 = vrot.slane %v2214_v12, %v5818_v20  ;;  %664 = vrot.lane.b32.xlu1 %v5980_v45, %s5002_s8  ;;  %662 = vrot.lane.b32.xlu0 %v5983_v48, %s5002_s8  ;;  %s5017_s8 = smov 80  }
 0x1dd   : > { %v2681_v25 = vsel %vm6721_vm13, %v2317_v17, -inf  ;;  %v2332_v28 = vrot.slane %v2318_v15, %v5818_v20 }
 0x1de   : > { %v2663_v47 = vrot.slane %v2662_v10, 2  ;;  %v2669_v29 = vmax.f32 %v2667_v18, %v2668_v11  ;;  %v2676_v30 = vmax.f32 %v2674_v14, %v2675_v19  ;;  %v2682_v31 = vrot.slane %v2681_v25, 4  ;;  %v1036_v23 = vpop.permute.xlu1 %1035  ;;  %v1034_v24 = vpop.permute.xlu0 %1033 }
 0x1df   : > { %v2333_v32 = vcombine.high %v2325_v22, %v2325_v22  ;;  %v2334_v33 = vcombine.high %v2332_v28, %v2332_v28  ;;  %v2688_v34 = vsel %vm6721_vm13, %v2325_v22, -inf  ;;  %v2702_v35 = vsel %vm6721_vm13, %v2332_v28, -inf  ;;  %1109 = vst.msk [vmem:[#allocation2 + $0xb8] sm:$0xff] %vm6720_vm6, %v1036_v23  ;;  %1108 = vst.msk [vmem:[#allocation2 + $0xb0] sm:$0xff] %vm6720_vm6, %v1034_v24  ;;  %v4648_v22 = vld [vmem:[%s5075_s29 + $0x189] sm:$0xff] }
 0x1e0   : > { %v2664_v40 = vmax.f32 %v2662_v10, %v2663_v47  ;;  %v2670_v41 = vrot.slane %v2669_v29, 2  ;;  %v2677_v42 = vrot.slane %v2676_v30, 2  ;;  %v2683_v43 = vmax.f32 %v2681_v25, %v2682_v31  ;;  %854 = vrot.lane.b32.xlu1 %v5924_v38, %s5003_s9  ;;  %852 = vrot.lane.b32.xlu0 %v5927_v13, %s5003_s9  ;;  %v4647_v25 = vld [vmem:[%s5075_s29 + $0x181] sm:$0xff] }
 0x1e1   : > { %v2689_v44 = vrot.slane %v2688_v34, 4  ;;  %v2695_v49 = vsel %vm6721_vm13, %v2333_v32, -inf  ;;  %v2703_v50 = vrot.slane %v2702_v35, 4  ;;  %v2709_v51 = vsel %vm6721_vm13, %v2334_v33, -inf }
 0x1e2   : > { %v2665_v36 = vrot.slane %v2664_v40, 1  ;;  %v2671_v39 = vmax.f32 %v2669_v29, %v2670_v41  ;;  %v2678_v56 = vmax.f32 %v2676_v30, %v2677_v42  ;;  %v2684_v58 = vrot.slane %v2683_v43, 2  ;;  %v1225_v59 = vpop.permute.xlu1 %1224  ;;  %v1223_v60 = vpop.permute.xlu0 %1222 }
 0x1e3   : > { %v2690_v38 = vmax.f32 %v2688_v34, %v2689_v44  ;;  %v2696_v26 = vrot.slane %v2695_v49, 4  ;;  %v2704_v27 = vmax.f32 %v2702_v35, %v2703_v50  ;;  %v2710_v13 = vrot.slane %v2709_v51, 4  ;;  %1300 = vst.msk [vmem:[#allocation2 + $0xa8] sm:$0xff] %vm1278_vm7, %v1225_v59  ;;  %1299 = vst.msk [vmem:[#allocation2 + $0xa0] sm:$0xff] %vm1278_vm7, %v1223_v60  ;;  %v4679_v44 = vld [vmem:[%s5075_s29 + $0x182] sm:$0xff] }
 0x1e4   : > { %v2672_v61 = vrot.slane %v2671_v39, 1  ;;  %v2679_v52 = vrot.slane %v2678_v56, 1  ;;  %v2685_v53 = vmax.f32 %v2683_v43, %v2684_v58  ;;  %858 = vrot.lane.b32.xlu1 %v6036_v54, %s5003_s9  ;;  %856 = vrot.lane.b32.xlu0 %v6039_v55, %s5003_s9  ;;  %v2666_v1 = vmax.f32 %v2664_v40, %v2665_v36  ;;  %v4680_v43 = vld [vmem:[%s5075_s29 + $0x18a] sm:$0xff]  ;;  %v4711_v36 = vld [vmem:[%s5075_s29 + $0x198] sm:$0xff] }
 0x1e5   : > { %v2691_v3 = vrot.slane %v2690_v38, 2  ;;  %v2697_v4 = vmax.f32 %v2695_v49, %v2696_v26  ;;  %v2705_v62 = vrot.slane %v2704_v27, 2  ;;  %v2711_v63 = vmax.f32 %v2709_v51, %v2710_v13  ;;  %v4712_v51 = vld [vmem:[%s5075_s29 + $0x1a0] sm:$0xff] }
 0x1e6   : > { %v2673_v2 = vmax.f32 %v2671_v39, %v2672_v61  ;;  %v2680_v5 = vmax.f32 %v2678_v56, %v2679_v52  ;;  %v2686_v6 = vrot.slane %v2685_v53, 1  ;;  %v1229_v7 = vpop.permute.xlu1 %1228  ;;  %v1227_v12 = vpop.permute.xlu0 %1226  ;;  %vm6726_vm6 = vcmask 1042434   ;;  %v4744_v60 = vld [vmem:[%s5075_s29 + $0x1a1] sm:$0xff] }
 0x1e7   : > { %v2692_v37 = vmax.f32 %v2690_v38, %v2691_v3  ;;  %v2698_v8 = vrot.slane %v2697_v4, 2  ;;  %v2706_v9 = vmax.f32 %v2704_v27, %v2705_v62  ;;  %v2712_v17 = vrot.slane %v2711_v63, 2  ;;  %1302 = vst.msk [vmem:[#allocation2 + $0xb8] sm:$0xff] %vm1278_vm7, %v1229_v7  ;;  %1301 = vst.msk [vmem:[#allocation2 + $0xb0] sm:$0xff] %vm1278_vm7, %v1227_v12  ;;  %v4743_v38 = vld [vmem:[%s5075_s29 + $0x199] sm:$0xff]  ;;  %v4776_v62 = vld [vmem:[%s5075_s29 + $0x1a2] sm:$0xff] }
 0x1e8   : > { %v2687_v18 = vmax.f32 %v2685_v53, %v2686_v6  ;;  %v3153_v14 = vsel %vm6725_vm0, %v2673_v2, %v2666_v1  ;;  %1047 = vrot.lane.b32.xlu1 %v5950_v21, %s5004_s10  ;;  %1045 = vrot.lane.b32.xlu0 %v5953_v46, %s5004_s10  ;;  %vm6727_vm13 = vcmask 1043459   ;;  %v3218_v52 = vld [vmem:[#allocation3] sm:$0xff] }
 0x1e9   : > { %v3154_v15 = vsel %vm6726_vm6, %v2680_v5, %v3153_v14  ;;  %v2693_v10 = vrot.slane %v2692_v37, 1  ;;  %v2699_v11 = vmax.f32 %v2697_v4, %v2698_v8  ;;  %v2707_v19 = vrot.slane %v2706_v9, 1  ;;  %3226 = vst.msk [vmem:[#allocation4] sm:$0xff] %vm2202_vm12, %v3218_v52  ;;  %v3235_v14 = vld [vmem:[#allocation3 + $0x11] sm:$0xff] }
 0x1ea   : > { %v2713_v28 = vmax.f32 %v2711_v63, %v2712_v17  ;;  %v3155_v47 = vsel %vm6727_vm13, %v2687_v18, %v3154_v15  ;;  %v1419_v29 = vpop.permute.xlu1 %1418  ;;  %v1417_v30 = vpop.permute.xlu0 %1416  ;;  %v4775_v63 = vld [vmem:[%s5075_s29 + $0x19a] sm:$0xff]  ;;  %vm6728_vm6 = vcmask 123904  }
 0x1eb   : > { %v2694_v31 = vmax.f32 %v2692_v37, %v2693_v10  ;;  %v2700_v23 = vrot.slane %v2699_v11, 1  ;;  %1494 = vst.msk [vmem:[#allocation2 + $0xa8] sm:$0xff] %vm1472_vm8, %v1419_v29  ;;  %1493 = vst.msk [vmem:[#allocation2 + $0xa0] sm:$0xff] %vm1472_vm8, %v1417_v30  ;;  %v2708_v21 = vmax.f32 %v2706_v9, %v2707_v19  ;;  %v3234_v37 = vld [vmem:[#allocation3 + $0x1] sm:$0xff]  ;;  %v6131_v30 = vld [vmem:[#allocation3 + $0x12] sm:$0xff] }
 0x1ec   : > { %v2714_v46 = vrot.slane %v2713_v28, 1  ;;  %1051 = vrot.lane.b32.xlu1 %v4648_v22, %s5004_s10  ;;  %1049 = vrot.lane.b32.xlu0 %v4647_v25, %s5004_s10  ;;  %v3283_v19 = vld [vmem:[#allocation3 + $0x2] sm:$0xff]  ;;  %vm6729_vm13 = vmmov %vm6728_vm6 }
 0x1ed   : > { %v2701_v24 = vmax.f32 %v2699_v11, %v2700_v23  ;;  %v3156_v32 = vsel %vm3145_vm14, %v2694_v31, %v3155_v47  ;;  %vm6730_vm0 = vmmov %vm6728_vm6 }
 0x1ee   : > { %v2715_v33 = vmax.f32 %v2713_v28, %v2714_v46  ;;  %v1423_v34 = vpop.permute.xlu1 %1422  ;;  %v1421_v35 = vpop.permute.xlu0 %1420 }
 0x1ef   : > { %v3157_v40 = vsel %vm3147_vm1, %v2701_v24, %v3156_v32  ;;  %1496 = vst.msk [vmem:[#allocation2 + $0xb8] sm:$0xff] %vm1472_vm8, %v1423_v34  ;;  %1495 = vst.msk [vmem:[#allocation2 + $0xb0] sm:$0xff] %vm1472_vm8, %v1421_v35  ;;  %v4946_v35 = vld [vmem:[%s6712_s3 + $0x38] sm:$0xff]  }
 0x1f0   : > { %v3158_v41 = vsel %vm3149_vm2, %v2708_v21, %v3157_v40  ;;  %1240 = vrot.lane.b32.xlu1 %v5980_v45, %s5005_s11  ;;  %1238 = vrot.lane.b32.xlu0 %v5983_v48, %s5005_s11 }
 0x1f1   : > { %v3159_v42 = vsel %vm3151_vm15, %v2715_v33, %v3158_v41 }
 0x1f2   : > { %3211 = vst.msk [vmem:[#allocation3 + $0x21] sm:$0xff] %vm2202_vm12, %v3159_v42  ;;  %v1612_v49 = vpop.permute.xlu1 %1611  ;;  %v1610_v50 = vpop.permute.xlu0 %1609 }
 0x1f3   : > { %1687 = vst.msk [vmem:[#allocation2 + $0xa8] sm:$0xff] %vm1665_vm9, %v1612_v49  ;;  %1686 = vst.msk [vmem:[#allocation2 + $0xa0] sm:$0xff] %vm1665_vm9, %v1610_v50 }
 0x1f4   : > { %1244 = vrot.lane.b32.xlu1 %v4680_v43, %s5005_s11  ;;  %1242 = vrot.lane.b32.xlu0 %v4679_v44, %s5005_s11  ;;  %s5018_s11 = smov 96  }
 0x1f6   : > { %v1616_v45 = vpop.permute.xlu1 %1615  ;;  %v1614_v48 = vpop.permute.xlu0 %1613 }
 0x1f7   : > { %1689 = vst.msk [vmem:[#allocation2 + $0xb8] sm:$0xff] %vm1665_vm9, %v1616_v45  ;;  %1688 = vst.msk [vmem:[#allocation2 + $0xb0] sm:$0xff] %vm1665_vm9, %v1614_v48 }
 0x1f8   : > { %1434 = vrot.lane.b32.xlu1 %v6036_v54, %s5006_s12  ;;  %1432 = vrot.lane.b32.xlu0 %v6039_v55, %s5006_s12 }
 0x1f9   : > { %v6087_v39 = vld [vmem:[#allocation3 + $0x20] sm:$0xff] }
 0x1fa   : > { %v6089_v56 = vld [vmem:[#allocation3 + $0x22] sm:$0xff]  ;;  %v1805_v58 = vpop.permute.xlu1 %1804  ;;  %v1803_v59 = vpop.permute.xlu0 %1802  ;;  %3228 = vst.msk [vmem:[#allocation4 + $0x20] sm:$0xff] %vm2202_vm12, %v6087_v39 }
 0x1fb   : > { %3586 = vst.msk [vmem:[#allocation4 + $0x8] sm:$0xff] %vm2202_vm12, %v6089_v56 }
 0x1fc   : > { %1880 = vst.msk [vmem:[#allocation2 + $0xa8] sm:$0xff] %vm1858_vm10, %v1805_v58  ;;  %1879 = vst.msk [vmem:[#allocation2 + $0xa0] sm:$0xff] %vm1858_vm10, %v1803_v59  ;;  %1438 = vrot.lane.b32.xlu1 %v4712_v51, %s5006_s12  ;;  %1436 = vrot.lane.b32.xlu0 %v4711_v36, %s5006_s12  ;;  %v4947_v58 = vld [vmem:[%s6712_s3 + $0x30] sm:$0xff]  }
 0x1fe   : > { %v460_v54 = vpop.permute.xlu1 %459  ;;  %v458_v55 = vpop.permute.xlu0 %457 }
 0x1ff   : > { %531 = vst.msk [vmem:[#allocation2 + $0xc8] sm:$0xff] %vm505_vm3, %v460_v54  ;;  %530 = vst.msk [vmem:[#allocation2 + $0xc0] sm:$0xff] %vm505_vm3, %v458_v55 }
 0x200   : > { %1627 = vrot.lane.b32.xlu1 %v4648_v22, %s5007_s13  ;;  %1625 = vrot.lane.b32.xlu0 %v4647_v25, %s5007_s13 }
 0x202   : > { %v1809_v26 = vpop.permute.xlu1 %1808  ;;  %v1807_v27 = vpop.permute.xlu0 %1806 }
 0x203   : > { %v1911_v13 = vld [vmem:[#allocation2 + $0xa0] sm:$0xff]  ;;  %v1912_v61 = vld [vmem:[#allocation2 + $0xa8] sm:$0xff]  ;;  %1882 = vst.msk [vmem:[#allocation2 + $0xb8] sm:$0xff] %vm1858_vm10, %v1809_v26  ;;  %1881 = vst.msk [vmem:[#allocation2 + $0xb0] sm:$0xff] %vm1858_vm10, %v1807_v27 }
 0x204   : > { %v1933_v53 = vpack.c.bf16 %v1912_v61, %v1911_v13  ;;  %1631 = vrot.lane.b32.xlu1 %v4744_v60, %s5007_s13  ;;  %1629 = vrot.lane.b32.xlu0 %v4743_v38, %s5007_s13  ;;  %v6162_v60 = vld [vmem:[#allocation3 + $0x21] sm:$0xff] }
 0x206   : > { %4896 = vmatprep.mubr.msk.bf16.mxu0 %vm1953_vm11, %v1933_v53  ;;  %v464_v3 = vpop.permute.xlu1 %463  ;;  %v462_v4 = vpop.permute.xlu0 %461 }
 0x207   : > { %533 = vst.msk [vmem:[#allocation2 + $0xd8] sm:$0xff] %vm505_vm3, %v464_v3  ;;  %532 = vst.msk [vmem:[#allocation2 + $0xd0] sm:$0xff] %vm505_vm3, %v462_v4 }
 0x208   : > { %1820 = vrot.lane.b32.xlu1 %v4680_v43, %s5009_s16  ;;  %1818 = vrot.lane.b32.xlu0 %v4679_v44, %s5009_s16 }
 0x20a   : > { %v653_v1 = vpop.permute.xlu1 %652  ;;  %v651_v2 = vpop.permute.xlu0 %650  ;;  %v1913_v5 = vld [vmem:[#allocation2 + $0xb0] sm:$0xff]  ;;  %v1914_v6 = vld [vmem:[#allocation2 + $0xb8] sm:$0xff] }
 0x20b   : > { %724 = vst.msk [vmem:[#allocation2 + $0xc8] sm:$0xff] %vm6723_vm4, %v653_v1  ;;  %723 = vst.msk [vmem:[#allocation2 + $0xc0] sm:$0xff] %vm6723_vm4, %v651_v2  ;;  %v1934_v7 = vpack.c.bf16 %v1914_v6, %v1913_v5  ;;  %v4948_v2 = vld [vmem:[%s6712_s3 + $0x28] sm:$0xff]  }
 0x20c   : > { %1824 = vrot.lane.b32.xlu1 %v4776_v62, %s5009_s16  ;;  %1822 = vrot.lane.b32.xlu0 %v4775_v63, %s5009_s16 }
 0x20d   : > { %v4886_v12 = vpop.f32.mrf.mxu0  ;;  %4897 = vmatmul.mubr.msk.bf16.gmra.mxu0 %vm1953_vm11, %v1934_v7 }
 0x20e   : > { %v2084_v8 = vadd.f32 %v4886_v12, %v5796_v0  ;;  %v657_v9 = vpop.permute.xlu1 %656  ;;  %v655_v17 = vpop.permute.xlu0 %654 }
 0x20f   : > { %726 = vst.msk [vmem:[#allocation2 + $0xd8] sm:$0xff] %vm6723_vm4, %v657_v9  ;;  %725 = vst.msk [vmem:[#allocation2 + $0xd0] sm:$0xff] %vm6723_vm4, %v655_v17  ;;  %v2075_v18 = vpop.f32.mrf.mxu0 }
 0x210   : > { %v2180_v15 = vmax.f32 %v2084_v8, 0.0  ;;  %v2076_v10 = vadd.f32 %v5796_v0, %v2075_v18  ;;  %3250 = vrot.lane.b32.xlu0 %v3234_v37, %s5012_s19  ;;  %3252 = vrot.lane.b32.xlu1 %v3235_v14, %s5012_s19  ;;  %vm6736_vm4 = vmmov %vm6730_vm0 }
 0x211   : > { %v4887_v11 = vpop.f32.mrf.mxu0 }
 0x212   : > { %v2178_v22 = vmax.f32 %v2076_v10, 0.0  ;;  %v2087_v25 = vadd.f32 %v4887_v11, %v5796_v0  ;;  %v847_v28 = vpop.permute.xlu1 %846  ;;  %v845_v47 = vpop.permute.xlu0 %844  ;;  %v2216_v31 = vsel %vm2202_vm12, %v2180_v15, -inf }
 0x213   : > { %918 = vst.msk [vmem:[#allocation2 + $0xc8] sm:$0xff] %vm6722_vm5, %v847_v28  ;;  %917 = vst.msk [vmem:[#allocation2 + $0xc0] sm:$0xff] %vm6722_vm5, %v845_v47  ;;  %v2078_v29 = vpop.f32.mrf.mxu0 }
 0x214   : > { %v2215_v23 = vsel %vm2202_vm12, %v2178_v22, -inf  ;;  %v2181_v21 = vmax.f32 %v2087_v25, 0.0  ;;  %v2079_v46 = vadd.f32 %v5796_v0, %v2078_v29  ;;  %3299 = vrot.lane.b32.xlu0 %v3283_v19, %s5013_s20  ;;  %3301 = vrot.lane.b32.xlu1 %v6131_v30, %s5013_s20  ;;  %v5014_v0 = vmov 0   ;;  %v4949_v29 = vld [vmem:[%s6712_s3 + $0x20] sm:$0xff]  }
 0x215   : > { %v2217_v24 = vmax.f32 %v2215_v23, %v2216_v31  ;;  %3709 = vmatprep.subr.bf16.mxu1 %v5014_v0 }
 0x216   : > { %v2179_v32 = vmax.f32 %v2079_v46, 0.0  ;;  %v851_v33 = vpop.permute.xlu1 %850  ;;  %v849_v34 = vpop.permute.xlu0 %848  ;;  %v2219_v42 = vsel %vm2202_vm12, %v2181_v21, -inf  ;;  %3710 = vmatpush1.bf16.msra.mxu1 %v4946_v35 }
 0x217   : > { %v2335_v40 = vcombine.high %v2217_v24, %v2217_v24  ;;  %v2342_v41 = vrot.slane %v2217_v24, %v5818_v20  ;;  %920 = vst.msk [vmem:[#allocation2 + $0xd8] sm:$0xff] %vm6722_vm5, %v851_v33  ;;  %919 = vst.msk [vmem:[#allocation2 + $0xd0] sm:$0xff] %vm6722_vm5, %v849_v34  ;;  %3711 = vmatprep.subr.bf16.mxu1 %v5014_v0  ;;  %vm6731_vm5 = vcmask 39968  }
 0x218   : > { %v2218_v43 = vsel %vm2202_vm12, %v2179_v32, -inf  ;;  %3348 = vrot.lane.b32.xlu0 %v5929_v16, %s5015_s23  ;;  %3350 = vrot.lane.b32.xlu1 %v6087_v39, %s5015_s23 }
 0x219   : > { %v2349_v44 = vrot.slane %v2335_v40, %v5818_v20  ;;  %v2350_v49 = vcombine.high %v2342_v41, %v2342_v41  ;;  %v2716_v50 = vsel %vm6728_vm6, %v2342_v41, -inf  ;;  %v2220_v45 = vmax.f32 %v2218_v43, %v2219_v42  ;;  %vm6732_vm6 = vmmov %vm6731_vm5 }
 0x21a   : > { %v2717_v48 = vrot.slane %v2716_v50, 4  ;;  %v1040_v51 = vpop.permute.xlu1 %1039  ;;  %v1038_v36 = vpop.permute.xlu0 %1037  ;;  %3712 = vmatpush1.bf16.msra.mxu1 %v4947_v58 }
 0x21b   : > { %v2351_v16 = vcombine.high %v2349_v44, %v2349_v44  ;;  %v2723_v59 = vsel %vm6729_vm13, %v2350_v49, -inf  ;;  %v2730_v54 = vsel %vm6730_vm0, %v2349_v44, -inf  ;;  %v2352_v55 = vcombine.high %v2220_v45, %v2220_v45  ;;  %1111 = vst.msk [vmem:[#allocation2 + $0xc8] sm:$0xff] %vm6731_vm5, %v1040_v51  ;;  %vm6733_vm13 = vmmov %vm6730_vm0  ;;  %3713 = vmatprep.subr.bf16.mxu1 %v5014_v0 }
 0x21c   : > { %1110 = vst.msk [vmem:[#allocation2 + $0xc0] sm:$0xff] %vm6732_vm6, %v1038_v36  ;;  %v2718_v38 = vmax.f32 %v2716_v50, %v2717_v48  ;;  %v2724_v26 = vrot.slane %v2723_v59, 4  ;;  %v2731_v27 = vrot.slane %v2730_v54, 4  ;;  %v2359_v13 = vrot.slane %v2220_v45, %v5818_v20  ;;  %3397 = vrot.lane.b32.xlu0 %v3235_v14, %s5016_s28  ;;  %3399 = vrot.lane.b32.xlu1 %v6162_v60, %s5016_s28  ;;  %vm6734_vm5 = vmmov %vm6730_vm0  ;;  %v4950_v45 = vld [vmem:[%s6712_s3 + $0x18] sm:$0xff]  }
 0x21d   : > { %v2737_v61 = vsel %vm6733_vm13, %v2351_v16, -inf  ;;  %v2366_v52 = vrot.slane %v2352_v55, %v5818_v20  ;;  %vm6735_vm13 = vmmov %vm6732_vm6 }
 0x21e   : > { %v2719_v53 = vrot.slane %v2718_v38, 2  ;;  %v2725_v3 = vmax.f32 %v2723_v59, %v2724_v26  ;;  %v2732_v4 = vmax.f32 %v2730_v54, %v2731_v27  ;;  %v2738_v62 = vrot.slane %v2737_v61, 4  ;;  %v1044_v63 = vpop.permute.xlu1 %1043  ;;  %v1042_v1 = vpop.permute.xlu0 %1041  ;;  %3714 = vmatpush1.bf16.msra.mxu1 %v4948_v2 }
 0x21f   : > { %v2367_v5 = vcombine.high %v2359_v13, %v2359_v13  ;;  %v2368_v6 = vcombine.high %v2366_v52, %v2366_v52  ;;  %v2744_v7 = vsel %vm6734_vm5, %v2359_v13, -inf  ;;  %v2758_v12 = vsel %vm6730_vm0, %v2366_v52, -inf  ;;  %1113 = vst.msk [vmem:[#allocation2 + $0xd8] sm:$0xff] %vm6732_vm6, %v1044_v63  ;;  %vm6737_vm5 = vmmov %vm6730_vm0  ;;  %3715 = vmatprep.subr.bf16.mxu1 %v5014_v0  ;;  %v4951_v52 = vld [vmem:[%s6712_s3 + $0x10] sm:$0xff]  }
 0x220   : > { %1112 = vst.msk [vmem:[#allocation2 + $0xd0] sm:$0xff] %vm6735_vm13, %v1042_v1  ;;  %v2720_v37 = vmax.f32 %v2718_v38, %v2719_v53  ;;  %v2726_v8 = vrot.slane %v2725_v3, 2  ;;  %v2733_v9 = vrot.slane %v2732_v4, 2  ;;  %v2739_v17 = vmax.f32 %v2737_v61, %v2738_v62  ;;  %3446 = vrot.lane.b32.xlu0 %v6131_v30, %s5017_s8  ;;  %3448 = vrot.lane.b32.xlu1 %v6089_v56, %s5017_s8 }
 0x221   : > { %v2745_v18 = vrot.slane %v2744_v7, 4  ;;  %v2751_v14 = vsel %vm6736_vm4, %v2367_v5, -inf  ;;  %v2759_v15 = vrot.slane %v2758_v12, 4  ;;  %v2765_v10 = vsel %vm6737_vm5, %v2368_v6, -inf }
 0x222   : > { %v2721_v11 = vrot.slane %v2720_v37, 1  ;;  %v2727_v19 = vmax.f32 %v2725_v3, %v2726_v8  ;;  %v2734_v22 = vmax.f32 %v2732_v4, %v2733_v9  ;;  %v2740_v25 = vrot.slane %v2739_v17, 2  ;;  %v1233_v28 = vpop.permute.xlu1 %1232  ;;  %v1231_v47 = vpop.permute.xlu0 %1230  ;;  %3716 = vmatpush1.bf16.msra.mxu1 %v4949_v29 }
 0x223   : > { %v2746_v30 = vmax.f32 %v2744_v7, %v2745_v18  ;;  %v2752_v31 = vrot.slane %v2751_v14, 4  ;;  %v2760_v23 = vmax.f32 %v2758_v12, %v2759_v15  ;;  %v2766_v21 = vrot.slane %v2765_v10, 4  ;;  %1304 = vst.msk [vmem:[#allocation2 + $0xc8] sm:$0xff] %vm1278_vm7, %v1233_v28  ;;  %1303 = vst.msk [vmem:[#allocation2 + $0xc0] sm:$0xff] %vm1278_vm7, %v1231_v47  ;;  %3717 = vmatprep.subr.bf16.mxu1 %v5014_v0  ;;  %v4952_v7 = vld [vmem:[%s6712_s3 + $0x8] sm:$0xff]  }
 0x224   : > { %v2728_v46 = vrot.slane %v2727_v19, 1  ;;  %v2735_v24 = vrot.slane %v2734_v22, 1  ;;  %v2741_v32 = vmax.f32 %v2739_v17, %v2740_v25  ;;  %3496 = vrot.lane.b32.xlu0 %v6087_v39, %s5018_s11  ;;  %v2722_v41 = vmax.f32 %v2720_v37, %v2721_v11  ;;  %v4953_v17 = vld [vmem:[%s6712_s3] sm:$0xff]   ;;  %v3595_v28 = vld [vmem:[#allocation4 + $0x8] sm:$0xff] }
 0x225   : > { %v2747_v33 = vrot.slane %v2746_v30, 2  ;;  %v2753_v34 = vmax.f32 %v2751_v14, %v2752_v31  ;;  %v2761_v35 = vrot.slane %v2760_v23, 2  ;;  %v2767_v40 = vmax.f32 %v2765_v10, %v2766_v21 }
 0x226   : > { %v2729_v42 = vmax.f32 %v2727_v19, %v2728_v46  ;;  %v2736_v43 = vmax.f32 %v2734_v22, %v2735_v24  ;;  %v2742_v44 = vrot.slane %v2741_v32, 1  ;;  %v1237_v49 = vpop.permute.xlu1 %1236  ;;  %v1235_v50 = vpop.permute.xlu0 %1234  ;;  %vm6738_vm4 = vcmask 1041409   ;;  %3718 = vmatpush1.bf16.msra.mxu1 %v4950_v45 }
 0x227   : > { %v2748_v48 = vmax.f32 %v2746_v30, %v2747_v33  ;;  %v2754_v51 = vrot.slane %v2753_v34, 2  ;;  %v2762_v39 = vmax.f32 %v2760_v23, %v2761_v35  ;;  %v2768_v36 = vrot.slane %v2767_v40, 2  ;;  %1306 = vst.msk [vmem:[#allocation2 + $0xd8] sm:$0xff] %vm1278_vm7, %v1237_v49  ;;  %1305 = vst.msk [vmem:[#allocation2 + $0xd0] sm:$0xff] %vm1278_vm7, %v1235_v50  ;;  %3719 = vmatprep.subr.bf16.mxu1 %v5014_v0 }
 0x228   : > { %v2743_v58 = vmax.f32 %v2741_v32, %v2742_v44  ;;  %v3160_v16 = vsel %vm6738_vm4, %v2729_v42, %v2722_v41  ;;  %3545 = vrot.lane.b32.xlu0 %v6162_v60, %s5019_s14  ;;  %vm6739_vm0 = vcmask 1042434   ;;  %vm6740_vm6 = vcmask 1043459  }
 0x229   : > { %v3161_v59 = vsel %vm6739_vm0, %v2736_v43, %v3160_v16  ;;  %v2749_v54 = vrot.slane %v2748_v48, 1  ;;  %v2755_v55 = vmax.f32 %v2753_v34, %v2754_v51  ;;  %v2763_v38 = vrot.slane %v2762_v39, 1  ;;  %v6262_v43 = vld [vmem:[%s6711_s2] ss:$0 sm:$0xff] }
 0x22a   : > { %v2769_v26 = vmax.f32 %v2767_v40, %v2768_v36  ;;  %v3162_v27 = vsel %vm6740_vm6, %v2743_v58, %v3161_v59  ;;  %v1427_v13 = vpop.permute.xlu1 %1426  ;;  %v1425_v61 = vpop.permute.xlu0 %1424  ;;  %3720 = vmatpush1.bf16.msra.mxu1 %v4951_v52  ;;  %vm6741_vm13 = vcmask 23568   ;;  %vm6745_vm0 = vcmask 31768  }
 0x22b   : > { %v2750_v53 = vmax.f32 %v2748_v48, %v2749_v54  ;;  %v2756_v3 = vrot.slane %v2755_v55, 1  ;;  %1498 = vst.msk [vmem:[#allocation2 + $0xc8] sm:$0xff] %vm1472_vm8, %v1427_v13  ;;  %1497 = vst.msk [vmem:[#allocation2 + $0xc0] sm:$0xff] %vm1472_vm8, %v1425_v61  ;;  %v2764_v4 = vmax.f32 %v2762_v39, %v2763_v38  ;;  %3721 = vmatprep.subr.bf16.mxu1 %v5014_v0 }
 0x22c   : > { %v2770_v62 = vrot.slane %v2769_v26, 1  ;;  %3254 = vrot.lane.b32.xlu0 %v6162_v60, %s5012_s19  ;;  %vm6742_vm5 = vmmov %vm6741_vm13 }
 0x22d   : > { %v2757_v63 = vmax.f32 %v2755_v55, %v2756_v3  ;;  %v3163_v1 = vsel %vm3145_vm14, %v2750_v53, %v3162_v27  ;;  %vm6746_vm6 = vmmov %vm6745_vm0 }
 0x22e   : > { %v2771_v2 = vmax.f32 %v2769_v26, %v2770_v62  ;;  %v1431_v5 = vpop.permute.xlu1 %1430  ;;  %v1429_v6 = vpop.permute.xlu0 %1428  ;;  %3722 = vmatpush1.bf16.msra.mxu1 %v4952_v7 }
 0x22f   : > { %v3164_v12 = vsel %vm3147_vm1, %v2757_v63, %v3163_v1  ;;  %1500 = vst.msk [vmem:[#allocation2 + $0xd8] sm:$0xff] %vm1472_vm8, %v1431_v5  ;;  %1499 = vst.msk [vmem:[#allocation2 + $0xd0] sm:$0xff] %vm1472_vm8, %v1429_v6  ;;  %3723 = vmatprep.subr.bf16.mxu1 %v5014_v0 }
 0x230   : > { %v3165_v60 = vsel %vm3149_vm2, %v2764_v4, %v3164_v12  ;;  %3303 = vrot.lane.b32.xlu0 %v6089_v56, %s5013_s20  ;;  %v4954_v56 = vld [vmem:[%s6712_s3 + $0x40] sm:$0xff]  }
 0x231   : > { %v3166_v37 = vsel %vm3151_vm15, %v2771_v2, %v3165_v60 }
 0x232   : > { %3212 = vst.msk [vmem:[#allocation3 + $0x31] sm:$0xff] %vm2202_vm12, %v3166_v37  ;;  %v1620_v8 = vpop.permute.xlu1 %1619  ;;  %v1618_v9 = vpop.permute.xlu0 %1617  ;;  %3724 = vmatpush1.bf16.msra.mxu1 %v4953_v17 }
 0x233   : > { %1691 = vst.msk [vmem:[#allocation2 + $0xc8] sm:$0xff] %vm1665_vm9, %v1620_v8  ;;  %1690 = vst.msk [vmem:[#allocation2 + $0xc0] sm:$0xff] %vm1665_vm9, %v1618_v9  ;;  %3739 = vmatprep.subr.bf16.mxu1 %v5014_v0 }
 0x236   : > { %v1624_v18 = vpop.permute.xlu1 %1623  ;;  %v1622_v14 = vpop.permute.xlu0 %1621  ;;  %3740 = vmatpush2.bf16.msra.mxu1 %v4954_v56 }
 0x237   : > { %1693 = vst.msk [vmem:[#allocation2 + $0xd8] sm:$0xff] %vm1665_vm9, %v1624_v18  ;;  %1692 = vst.msk [vmem:[#allocation2 + $0xd0] sm:$0xff] %vm1665_vm9, %v1622_v14  ;;  %4908 = vmatprep.subr.bf16.mxu1 %v5010_v57 }
 0x239   : > { %v3334_v15 = vld [vmem:[#allocation3 + $0x30] sm:$0xff] }
 0x23a   : > { %v3432_v10 = vld [vmem:[#allocation3 + $0x32] sm:$0xff]  ;;  %3352 = vrot.lane.b32.xlu0 %v3334_v15, %s5015_s23  ;;  %3498 = vrot.lane.b32.xlu1 %v3334_v15, %s5018_s11  ;;  %v1813_v11 = vpop.permute.xlu1 %1812  ;;  %v1811_v19 = vpop.permute.xlu0 %1810  ;;  %3229 = vst.msk [vmem:[#allocation4 + $0x30] sm:$0xff] %vm2202_vm12, %v3334_v15 }
 0x23b   : > { %3587 = vst.msk [vmem:[#allocation4 + $0x18] sm:$0xff] %vm2202_vm12, %v3432_v10  ;;  %v3383_v0 = vld [vmem:[#allocation3 + $0x31] sm:$0xff] }
 0x23c   : > { %1884 = vst.msk [vmem:[#allocation2 + $0xc8] sm:$0xff] %vm1858_vm10, %v1813_v11  ;;  %1883 = vst.msk [vmem:[#allocation2 + $0xc0] sm:$0xff] %vm1858_vm10, %v1811_v19 }
 0x23e   : > { %3401 = vrot.lane.b32.xlu0 %v3383_v0, %s5016_s28  ;;  %3547 = vrot.lane.b32.xlu1 %v3383_v0, %s5019_s14  ;;  %v468_v22 = vpop.permute.xlu1 %467  ;;  %v466_v25 = vpop.permute.xlu0 %465 }
 0x23f   : > { %535 = vst.msk [vmem:[#allocation2 + $0xe8] sm:$0xff] %vm505_vm3, %v468_v22  ;;  %534 = vst.msk [vmem:[#allocation2 + $0xe0] sm:$0xff] %vm505_vm3, %v466_v25 }
 0x242   : > { %v3597_v47 = vld [vmem:[#allocation4 + $0x18] sm:$0xff]  ;;  %3450 = vrot.lane.b32.xlu0 %v3432_v10, %s5017_s8  ;;  %3256 = vrot.lane.b32.xlu1 %v3383_v0, %s5012_s19  ;;  %v1817_v30 = vpop.permute.xlu1 %1816  ;;  %v1815_v31 = vpop.permute.xlu0 %1814 }
 0x243   : > { %v3611_v29 = vpack.c.bf16 %v3597_v47, %v3595_v28  ;;  %v1915_v23 = vld [vmem:[#allocation2 + $0xc0] sm:$0xff]  ;;  %v1916_v21 = vld [vmem:[#allocation2 + $0xc8] sm:$0xff]  ;;  %1886 = vst.msk [vmem:[#allocation2 + $0xd8] sm:$0xff] %vm1858_vm10, %v1817_v30  ;;  %1885 = vst.msk [vmem:[#allocation2 + $0xd0] sm:$0xff] %vm1858_vm10, %v1815_v31 }
 0x244   : > { %v1935_v46 = vpack.c.bf16 %v1916_v21, %v1915_v23 }
 0x245   : > { %4805 = vmatprep.mubr.msk.bf16.mxu1 %vm2202_vm12, %v3611_v29 }
 0x246   : > { %4900 = vmatprep.mubr.msk.bf16.mxu0 %vm1953_vm11, %v1935_v46  ;;  %3305 = vrot.lane.b32.xlu1 %v3432_v10, %s5013_s20  ;;  %v472_v24 = vpop.permute.xlu1 %471  ;;  %v470_v32 = vpop.permute.xlu0 %469 }
 0x247   : > { %537 = vst.msk [vmem:[#allocation2 + $0xf8] sm:$0xff] %vm505_vm3, %v472_v24  ;;  %536 = vst.msk [vmem:[#allocation2 + $0xf0] sm:$0xff] %vm505_vm3, %v470_v32 }
 0x248   : > { %vm6743_vm3 = vmmov %vm6742_vm5 }
 0x249   : > { %vm6744_vm4 = vmmov %vm6743_vm3 }
 0x24a   : > { %v661_v33 = vpop.permute.xlu1 %660  ;;  %v659_v34 = vpop.permute.xlu0 %658  ;;  %v1917_v35 = vld [vmem:[#allocation2 + $0xd0] sm:$0xff]  ;;  %v1918_v40 = vld [vmem:[#allocation2 + $0xd8] sm:$0xff] }
 0x24b   : > { %728 = vst.msk [vmem:[#allocation2 + $0xe8] sm:$0xff] %vm6741_vm13, %v661_v33  ;;  %v1936_v41 = vpack.c.bf16 %v1918_v40, %v1917_v35  ;;  %vm6747_vm13 = vmmov %vm6745_vm0 }
 0x24c   : > { %727 = vst.msk [vmem:[#allocation2 + $0xe0] sm:$0xff] %vm6742_vm5, %v659_v34  ;;  %vm6748_vm5 = vmmov %vm6745_vm0 }
 0x24d   : > { %v4890_v42 = vpop.f32.mrf.mxu0  ;;  %4901 = vmatmul.mubr.msk.bf16.gmra.mxu0 %vm1953_vm11, %v1936_v41 }
 0x24e   : > { %v2100_v44 = vadd.f32 %v6262_v43, %v4890_v42  ;;  %v665_v49 = vpop.permute.xlu1 %664  ;;  %v663_v50 = vpop.permute.xlu0 %662 }
 0x24f   : > { %730 = vst.msk [vmem:[#allocation2 + $0xf8] sm:$0xff] %vm6743_vm3, %v665_v49  ;;  %v2091_v45 = vpop.f32.mrf.mxu0  ;;  %vm6749_vm3 = vcmask 123904  }
 0x250   : > { %729 = vst.msk [vmem:[#allocation2 + $0xf0] sm:$0xff] %vm6744_vm4, %v663_v50  ;;  %v2184_v48 = vmax.f32 %v2100_v44, 0.0  ;;  %v2092_v51 = vadd.f32 %v6262_v43, %v2091_v45  ;;  %vm6750_vm4 = vmmov %vm6749_vm3 }
 0x251   : > { %v4891_v39 = vpop.f32.mrf.mxu0 }
 0x252   : > { %v2182_v36 = vmax.f32 %v2092_v51, 0.0  ;;  %v2103_v58 = vadd.f32 %v6262_v43, %v4891_v39  ;;  %v855_v16 = vpop.permute.xlu1 %854  ;;  %v853_v59 = vpop.permute.xlu0 %852  ;;  %v2222_v55 = vsel %vm2202_vm12, %v2184_v48, -inf }
 0x253   : > { %922 = vst.msk [vmem:[#allocation2 + $0xe8] sm:$0xff] %vm6745_vm0, %v855_v16  ;;  %v2094_v54 = vpop.f32.mrf.mxu0  ;;  %vm6751_vm0 = vmmov %vm6749_vm3 }
 0x254   : > { %921 = vst.msk [vmem:[#allocation2 + $0xe0] sm:$0xff] %vm6746_vm6, %v853_v59  ;;  %v2221_v38 = vsel %vm2202_vm12, %v2182_v36, -inf  ;;  %v2185_v26 = vmax.f32 %v2103_v58, 0.0  ;;  %v2095_v27 = vadd.f32 %v6262_v43, %v2094_v54  ;;  %vm6752_vm6 = vcmask 39968  }
 0x255   : > { %v2223_v13 = vmax.f32 %v2221_v38, %v2222_v55 }
 0x256   : > { %v2183_v61 = vmax.f32 %v2095_v27, 0.0  ;;  %v859_v52 = vpop.permute.xlu1 %858  ;;  %v857_v53 = vpop.permute.xlu0 %856  ;;  %v2225_v62 = vsel %vm2202_vm12, %v2185_v26, -inf }
 0x257   : > { %v2369_v3 = vcombine.high %v2223_v13, %v2223_v13  ;;  %v2376_v4 = vrot.slane %v2223_v13, %v5818_v20  ;;  %924 = vst.msk [vmem:[#allocation2 + $0xf8] sm:$0xff] %vm6747_vm13, %v859_v52  ;;  %vm6753_vm13 = vmmov %vm6752_vm6 }
 0x258   : > { %923 = vst.msk [vmem:[#allocation2 + $0xf0] sm:$0xff] %vm6748_vm5, %v857_v53  ;;  %v2224_v63 = vsel %vm2202_vm12, %v2183_v61, -inf  ;;  %vm6754_vm5 = vmmov %vm6751_vm0 }
 0x259   : > { %v2383_v1 = vrot.slane %v2369_v3, %v5818_v20  ;;  %v2384_v2 = vcombine.high %v2376_v4, %v2376_v4  ;;  %v2772_v5 = vsel %vm6749_vm3, %v2376_v4, -inf  ;;  %v2226_v6 = vmax.f32 %v2224_v63, %v2225_v62  ;;  %vm6755_vm3 = vmmov %vm6751_vm0 }
 0x25a   : > { %v2773_v7 = vrot.slane %v2772_v5, 4  ;;  %v1048_v12 = vpop.permute.xlu1 %1047  ;;  %v1046_v60 = vpop.permute.xlu0 %1045 }
 0x25b   : > { %v2385_v37 = vcombine.high %v2383_v1, %v2383_v1  ;;  %v2779_v8 = vsel %vm6750_vm4, %v2384_v2, -inf  ;;  %v2786_v9 = vsel %vm6751_vm0, %v2383_v1, -inf  ;;  %v2386_v17 = vcombine.high %v2226_v6, %v2226_v6  ;;  %1115 = vst.msk [vmem:[#allocation2 + $0xe8] sm:$0xff] %vm6752_vm6, %v1048_v12  ;;  %vm6756_vm4 = vmmov %vm6751_vm0 }
 0x25c   : > { %1114 = vst.msk [vmem:[#allocation2 + $0xe0] sm:$0xff] %vm6753_vm13, %v1046_v60  ;;  %v2774_v56 = vmax.f32 %v2772_v5, %v2773_v7  ;;  %v2780_v18 = vrot.slane %v2779_v8, 4  ;;  %v2787_v14 = vrot.slane %v2786_v9, 4  ;;  %v2393_v15 = vrot.slane %v2226_v6, %v5818_v20  ;;  %vm6757_vm0 = vmmov %vm6752_vm6 }
 0x25d   : > { %v2793_v10 = vsel %vm6754_vm5, %v2385_v37, -inf  ;;  %v2400_v11 = vrot.slane %v2386_v17, %v5818_v20  ;;  %vm6758_vm6 = vmmov %vm6757_vm0 }
 0x25e   : > { %v2775_v19 = vrot.slane %v2774_v56, 2  ;;  %v2781_v0 = vmax.f32 %v2779_v8, %v2780_v18  ;;  %v2788_v22 = vmax.f32 %v2786_v9, %v2787_v14  ;;  %v2794_v25 = vrot.slane %v2793_v10, 4  ;;  %v1052_v28 = vpop.permute.xlu1 %1051  ;;  %v1050_v47 = vpop.permute.xlu0 %1049  ;;  %vm6759_vm13 = vmmov %vm6755_vm3 }
 0x25f   : > { %v2401_v29 = vcombine.high %v2393_v15, %v2393_v15  ;;  %v2402_v30 = vcombine.high %v2400_v11, %v2400_v11  ;;  %v2800_v31 = vsel %vm6755_vm3, %v2393_v15, -inf  ;;  %v2814_v23 = vsel %vm6756_vm4, %v2400_v11, -inf  ;;  %1117 = vst.msk [vmem:[#allocation2 + $0xf8] sm:$0xff] %vm6757_vm0, %v1052_v28  ;;  %vm6760_vm5 = vmmov %vm6755_vm3 }
 0x260   : > { %1116 = vst.msk [vmem:[#allocation2 + $0xf0] sm:$0xff] %vm6758_vm6, %v1050_v47  ;;  %v2776_v21 = vmax.f32 %v2774_v56, %v2775_v19  ;;  %v2782_v46 = vrot.slane %v2781_v0, 2  ;;  %v2789_v24 = vrot.slane %v2788_v22, 2  ;;  %v2795_v32 = vmax.f32 %v2793_v10, %v2794_v25 }
 0x261   : > { %v2801_v33 = vrot.slane %v2800_v31, 4  ;;  %v2807_v34 = vsel %vm6759_vm13, %v2401_v29, -inf  ;;  %v2815_v35 = vrot.slane %v2814_v23, 4  ;;  %v2821_v40 = vsel %vm6760_vm5, %v2402_v30, -inf }
 0x262   : > { %v2777_v41 = vrot.slane %v2776_v21, 1  ;;  %v2783_v42 = vmax.f32 %v2781_v0, %v2782_v46  ;;  %v2790_v44 = vmax.f32 %v2788_v22, %v2789_v24  ;;  %v2796_v49 = vrot.slane %v2795_v32, 2  ;;  %v1241_v50 = vpop.permute.xlu1 %1240  ;;  %v1239_v45 = vpop.permute.xlu0 %1238 }
 0x263   : > { %v2802_v48 = vmax.f32 %v2800_v31, %v2801_v33  ;;  %v2808_v51 = vrot.slane %v2807_v34, 4  ;;  %v2816_v39 = vmax.f32 %v2814_v23, %v2815_v35  ;;  %v2822_v36 = vrot.slane %v2821_v40, 4  ;;  %1308 = vst.msk [vmem:[#allocation2 + $0xe8] sm:$0xff] %vm1278_vm7, %v1241_v50  ;;  %1307 = vst.msk [vmem:[#allocation2 + $0xe0] sm:$0xff] %vm1278_vm7, %v1239_v45 }
 0x264   : > { %v2784_v58 = vrot.slane %v2783_v42, 1  ;;  %v2791_v16 = vrot.slane %v2790_v44, 1  ;;  %v2797_v59 = vmax.f32 %v2795_v32, %v2796_v49  ;;  %v2778_v27 = vmax.f32 %v2776_v21, %v2777_v41 }
 0x265   : > { %v2803_v54 = vrot.slane %v2802_v48, 2  ;;  %v2809_v55 = vmax.f32 %v2807_v34, %v2808_v51  ;;  %v2817_v38 = vrot.slane %v2816_v39, 2  ;;  %v2823_v26 = vmax.f32 %v2821_v40, %v2822_v36 }
 0x266   : > { %v2785_v13 = vmax.f32 %v2783_v42, %v2784_v58  ;;  %v2792_v61 = vmax.f32 %v2790_v44, %v2791_v16  ;;  %v2798_v52 = vrot.slane %v2797_v59, 1  ;;  %v1245_v53 = vpop.permute.xlu1 %1244  ;;  %v1243_v3 = vpop.permute.xlu0 %1242  ;;  %vm6761_vm3 = vcmask 1041409  }
 0x267   : > { %v2804_v4 = vmax.f32 %v2802_v48, %v2803_v54  ;;  %v2810_v62 = vrot.slane %v2809_v55, 2  ;;  %v2818_v63 = vmax.f32 %v2816_v39, %v2817_v38  ;;  %v2824_v1 = vrot.slane %v2823_v26, 2  ;;  %1310 = vst.msk [vmem:[#allocation2 + $0xf8] sm:$0xff] %vm1278_vm7, %v1245_v53  ;;  %1309 = vst.msk [vmem:[#allocation2 + $0xf0] sm:$0xff] %vm1278_vm7, %v1243_v3 }
 0x268   : > { %v2799_v2 = vmax.f32 %v2797_v59, %v2798_v52  ;;  %v3167_v5 = vsel %vm6761_vm3, %v2785_v13, %v2778_v27  ;;  %vm6762_vm4 = vcmask 1042434   ;;  %vm6763_vm0 = vcmask 1043459   ;;  %vm6764_vm3 = vmmov %vm6760_vm5 }
 0x269   : > { %v3168_v6 = vsel %vm6762_vm4, %v2792_v61, %v3167_v5  ;;  %v2805_v7 = vrot.slane %v2804_v4, 1  ;;  %v2811_v12 = vmax.f32 %v2809_v55, %v2810_v62  ;;  %v2819_v60 = vrot.slane %v2818_v63, 1  ;;  %vm6765_vm4 = vmmov %vm6764_vm3 }
 0x26a   : > { %v2825_v37 = vmax.f32 %v2823_v26, %v2824_v1  ;;  %v3169_v8 = vsel %vm6763_vm0, %v2799_v2, %v3168_v6  ;;  %v1435_v9 = vpop.permute.xlu1 %1434  ;;  %v1433_v17 = vpop.permute.xlu0 %1432  ;;  %vm3274_vm7 = vcmask 261248   ;;  %vm3520_vm6 = vcmask 917248   ;;  %vm6766_vm0 = vmmov %vm6764_vm3 }
 0x26b   : > { %v2806_v56 = vmax.f32 %v2804_v4, %v2805_v7  ;;  %v2812_v18 = vrot.slane %v2811_v12, 1  ;;  %1502 = vst.msk [vmem:[#allocation2 + $0xe8] sm:$0xff] %vm1472_vm8, %v1435_v9  ;;  %1501 = vst.msk [vmem:[#allocation2 + $0xe0] sm:$0xff] %vm1472_vm8, %v1433_v17  ;;  %v2820_v14 = vmax.f32 %v2818_v63, %v2819_v60  ;;  %vm3569_vm13 = vcmask 1048448  }
 0x26c   : > { %v2826_v15 = vrot.slane %v2825_v37, 1 }
 0x26d   : > { %v2813_v10 = vmax.f32 %v2811_v12, %v2812_v18  ;;  %v3170_v11 = vsel %vm3145_vm14, %v2806_v56, %v3169_v8 }
 0x26e   : > { %v2827_v19 = vmax.f32 %v2825_v37, %v2826_v15  ;;  %v1439_v0 = vpop.permute.xlu1 %1438  ;;  %v1437_v22 = vpop.permute.xlu0 %1436 }
 0x26f   : > { %v3171_v25 = vsel %vm3147_vm1, %v2813_v10, %v3170_v11  ;;  %1504 = vst.msk [vmem:[#allocation2 + $0xf8] sm:$0xff] %vm1472_vm8, %v1439_v0  ;;  %1503 = vst.msk [vmem:[#allocation2 + $0xf0] sm:$0xff] %vm1472_vm8, %v1437_v22  ;;  %vm6724_vm8 = vcmask 392448  }
 0x270   : > { %v3172_v28 = vsel %vm3149_vm2, %v2820_v14, %v3171_v25 }
 0x271   : > { %v3173_v47 = vsel %vm3151_vm15, %v2827_v19, %v3172_v28 }
 0x272   : > { %3213 = vst.msk [vmem:[#allocation3 + $0x41] sm:$0xff] %vm2202_vm12, %v3173_v47  ;;  %v1628_v29 = vpop.permute.xlu1 %1627  ;;  %v1626_v30 = vpop.permute.xlu0 %1625 }
 0x273   : > { %1695 = vst.msk [vmem:[#allocation2 + $0xe8] sm:$0xff] %vm1665_vm9, %v1628_v29  ;;  %1694 = vst.msk [vmem:[#allocation2 + $0xe0] sm:$0xff] %vm1665_vm9, %v1626_v30 }
 0x276   : > { %v1632_v31 = vpop.permute.xlu1 %1631  ;;  %v1630_v23 = vpop.permute.xlu0 %1629 }
 0x277   : > { %1697 = vst.msk [vmem:[#allocation2 + $0xf8] sm:$0xff] %vm1665_vm9, %v1632_v31  ;;  %1696 = vst.msk [vmem:[#allocation2 + $0xf0] sm:$0xff] %vm1665_vm9, %v1630_v23  ;;  %vm3372_vm9 = vcmask 523648  }
 0x279   : > { %v3482_v21 = vld [vmem:[#allocation3 + $0x40] sm:$0xff] }
 0x27a   : > { %v3433_v46 = vld [vmem:[#allocation3 + $0x42] sm:$0xff]  ;;  %3500 = vrot.lane.b32.xlu0 %v3482_v21, %s5018_s11  ;;  %3354 = vrot.lane.b32.xlu1 %v3482_v21, %s5015_s23  ;;  %v1821_v24 = vpop.permute.xlu1 %1820  ;;  %v1819_v32 = vpop.permute.xlu0 %1818  ;;  %3230 = vst.msk [vmem:[#allocation4 + $0x40] sm:$0xff] %vm2202_vm12, %v3482_v21 }
 0x27b   : > { %3588 = vst.msk [vmem:[#allocation4 + $0x28] sm:$0xff] %vm2202_vm12, %v3433_v46  ;;  %v3531_v33 = vld [vmem:[#allocation3 + $0x41] sm:$0xff] }
 0x27c   : > { %1888 = vst.msk [vmem:[#allocation2 + $0xe8] sm:$0xff] %vm1858_vm10, %v1821_v24  ;;  %1887 = vst.msk [vmem:[#allocation2 + $0xe0] sm:$0xff] %vm1858_vm10, %v1819_v32 }
 0x27e   : > { %3549 = vrot.lane.b32.xlu0 %v3531_v33, %s5019_s14  ;;  %3403 = vrot.lane.b32.xlu1 %v3531_v33, %s5016_s28  ;;  %v1825_v34 = vpop.permute.xlu1 %1824  ;;  %v1823_v35 = vpop.permute.xlu0 %1822 }
 0x27f   : > { %1890 = vst.msk [vmem:[#allocation2 + $0xf8] sm:$0xff] %vm1858_vm10, %v1825_v34  ;;  %1889 = vst.msk [vmem:[#allocation2 + $0xf0] sm:$0xff] %vm1858_vm10, %v1823_v35  ;;  %vm3421_vm10 = vcmask 654848  }
 0x282   : > { %3258 = vrot.lane.b32.xlu0 %v3531_v33, %s5012_s19  ;;  %3452 = vrot.lane.b32.xlu1 %v3433_v46, %s5017_s8  ;;  %v3251_v40 = vpop.permute.xlu0 %3250  ;;  %v3253_v41 = vpop.permute.xlu1 %3252 }
 0x283   : > { %v1919_v42 = vld [vmem:[#allocation2 + $0xe0] sm:$0xff]  ;;  %v1920_v44 = vld [vmem:[#allocation2 + $0xe8] sm:$0xff]  ;;  %3275 = vst.msk [vmem:[#allocation4] sm:$0xff] %vm3274_vm7, %v3251_v40  ;;  %3276 = vst.msk [vmem:[#allocation4 + $0x10] sm:$0xff] %vm3274_vm7, %v3253_v41 }
 0x284   : > { %v1937_v49 = vpack.c.bf16 %v1920_v44, %v1919_v42 }
 0x286   : > { %4904 = vmatprep.mubr.msk.bf16.mxu0 %vm1953_vm11, %v1937_v49  ;;  %3307 = vrot.lane.b32.xlu0 %v3433_v46, %s5013_s20  ;;  %v3300_v50 = vpop.permute.xlu0 %3299  ;;  %v3302_v45 = vpop.permute.xlu1 %3301  ;;  %v1921_v48 = vld [vmem:[#allocation2 + $0xf0] sm:$0xff]  ;;  %v1922_v51 = vld [vmem:[#allocation2 + $0xf8] sm:$0xff] }
 0x287   : > { %3324 = vst.msk [vmem:[#allocation4] sm:$0xff] %vm6724_vm8, %v3300_v50  ;;  %3325 = vst.msk [vmem:[#allocation4 + $0x10] sm:$0xff] %vm6724_vm8, %v3302_v45  ;;  %v1938_v39 = vpack.c.bf16 %v1922_v51, %v1921_v48 }
 0x289   : > { %4905 = vmatmul.mubr.msk.bf16.gmra.mxu0 %vm1953_vm11, %v1938_v39  ;;  %vm3470_vm11 = vcmask 786048  }
 0x28a   : > { %v3349_v36 = vpop.permute.xlu0 %3348  ;;  %v3351_v58 = vpop.permute.xlu1 %3350 }
 0x28b   : > { %3373 = vst.msk [vmem:[#allocation4] sm:$0xff] %vm3372_vm9, %v3349_v36  ;;  %3374 = vst.msk [vmem:[#allocation4 + $0x10] sm:$0xff] %vm3372_vm9, %v3351_v58 }
 0x28d   : > { %v4894_v16 = vpop.f32.mrf.mxu0 }
 0x28e   : > { %v2116_v59 = vadd.f32 %v6262_v43, %v4894_v16  ;;  %v3398_v54 = vpop.permute.xlu0 %3397  ;;  %v3400_v55 = vpop.permute.xlu1 %3399 }
 0x28f   : > { %3422 = vst.msk [vmem:[#allocation4] sm:$0xff] %vm3421_vm10, %v3398_v54  ;;  %3423 = vst.msk [vmem:[#allocation4 + $0x10] sm:$0xff] %vm3421_vm10, %v3400_v55  ;;  %v2107_v38 = vpop.f32.mrf.mxu0 }
 0x290   : > { %v2188_v26 = vmax.f32 %v2116_v59, 0.0  ;;  %v2108_v27 = vadd.f32 %v6262_v43, %v2107_v38 }
 0x291   : > { %v4895_v13 = vpop.f32.mrf.mxu0 }
 0x292   : > { %v2186_v61 = vmax.f32 %v2108_v27, 0.0  ;;  %v2119_v52 = vadd.f32 %v6262_v43, %v4895_v13  ;;  %v3447_v53 = vpop.permute.xlu0 %3446  ;;  %v3449_v3 = vpop.permute.xlu1 %3448  ;;  %v2228_v62 = vsel %vm2202_vm12, %v2188_v26, -inf }
 0x293   : > { %3471 = vst.msk [vmem:[#allocation4] sm:$0xff] %vm3470_vm11, %v3447_v53  ;;  %3472 = vst.msk [vmem:[#allocation4 + $0x10] sm:$0xff] %vm3470_vm11, %v3449_v3  ;;  %v2110_v4 = vpop.f32.mrf.mxu0 }
 0x294   : > { %v2227_v63 = vsel %vm2202_vm12, %v2186_v61, -inf  ;;  %v2189_v1 = vmax.f32 %v2119_v52, 0.0  ;;  %v2111_v2 = vadd.f32 %v6262_v43, %v2110_v4 }
 0x295   : > { %v2229_v5 = vmax.f32 %v2227_v63, %v2228_v62 }
 0x296   : > { %v2187_v6 = vmax.f32 %v2111_v2, 0.0  ;;  %v3497_v7 = vpop.permute.xlu0 %3496  ;;  %v2231_v37 = vsel %vm2202_vm12, %v2189_v1, -inf }
 0x297   : > { %v2403_v12 = vcombine.high %v2229_v5, %v2229_v5  ;;  %v2410_v60 = vrot.slane %v2229_v5, %v5818_v20  ;;  %3521 = vst.msk [vmem:[#allocation4] sm:$0xff] %vm3520_vm6, %v3497_v7 }
 0x298   : > { %v2230_v8 = vsel %vm2202_vm12, %v2187_v6, -inf }
 0x299   : > { %v2417_v9 = vrot.slane %v2403_v12, %v5818_v20  ;;  %v2418_v17 = vcombine.high %v2410_v60, %v2410_v60  ;;  %v2828_v56 = vsel %vm6760_vm5, %v2410_v60, -inf  ;;  %v2232_v18 = vmax.f32 %v2230_v8, %v2231_v37  ;;  %vm6767_vm5 = vmmov %vm6766_vm0 }
 0x29a   : > { %v2829_v14 = vrot.slane %v2828_v56, 4  ;;  %v3546_v15 = vpop.permute.xlu0 %3545 }
 0x29b   : > { %v2419_v10 = vcombine.high %v2417_v9, %v2417_v9  ;;  %v2835_v11 = vsel %vm6764_vm3, %v2418_v17, -inf  ;;  %v2842_v19 = vsel %vm6765_vm4, %v2417_v9, -inf  ;;  %v2420_v0 = vcombine.high %v2232_v18, %v2232_v18  ;;  %3570 = vst.msk [vmem:[#allocation4] sm:$0xff] %vm3569_vm13, %v3546_v15  ;;  %vm6768_vm3 = vmmov %vm6766_vm0 }
 0x29c   : > { %v2830_v22 = vmax.f32 %v2828_v56, %v2829_v14  ;;  %v2836_v25 = vrot.slane %v2835_v11, 4  ;;  %v2843_v28 = vrot.slane %v2842_v19, 4  ;;  %v2427_v47 = vrot.slane %v2232_v18, %v5818_v20  ;;  %vm6769_vm4 = vmmov %vm6766_vm0 }
 0x29d   : > { %v2849_v29 = vsel %vm6766_vm0, %v2419_v10, -inf  ;;  %v2434_v30 = vrot.slane %v2420_v0, %v5818_v20 }
 0x29e   : > { %v2831_v31 = vrot.slane %v2830_v22, 2  ;;  %v2837_v23 = vmax.f32 %v2835_v11, %v2836_v25  ;;  %v2844_v21 = vmax.f32 %v2842_v19, %v2843_v28  ;;  %v2850_v46 = vrot.slane %v2849_v29, 4  ;;  %v3255_v24 = vpop.permute.xlu0 %3254 }
 0x29f   : > { %v2435_v32 = vcombine.high %v2427_v47, %v2427_v47  ;;  %v2436_v33 = vcombine.high %v2434_v30, %v2434_v30  ;;  %v2856_v34 = vsel %vm6767_vm5, %v2427_v47, -inf  ;;  %v2870_v35 = vsel %vm6768_vm3, %v2434_v30, -inf  ;;  %3277 = vst.msk [vmem:[#allocation4 + $0x20] sm:$0xff] %vm3274_vm7, %v3255_v24 }
 0x2a0   : > { %v2832_v40 = vmax.f32 %v2830_v22, %v2831_v31  ;;  %v2838_v41 = vrot.slane %v2837_v23, 2  ;;  %v2845_v42 = vrot.slane %v2844_v21, 2  ;;  %v2851_v44 = vmax.f32 %v2849_v29, %v2850_v46 }
 0x2a1   : > { %v2857_v49 = vrot.slane %v2856_v34, 4  ;;  %v2863_v50 = vsel %vm6769_vm4, %v2435_v32, -inf  ;;  %v2871_v45 = vrot.slane %v2870_v35, 4  ;;  %v2877_v48 = vsel %vm6766_vm0, %v2436_v33, -inf }
 0x2a2   : > { %v2833_v51 = vrot.slane %v2832_v40, 1  ;;  %v2839_v39 = vmax.f32 %v2837_v23, %v2838_v41  ;;  %v2846_v36 = vmax.f32 %v2844_v21, %v2845_v42  ;;  %v2852_v58 = vrot.slane %v2851_v44, 2  ;;  %v3304_v16 = vpop.permute.xlu0 %3303  ;;  %v3594_v32 = vld [vmem:[#allocation4] sm:$0xff]  ;;  %v3599_v42 = vld [vmem:[#allocation4 + $0x28] sm:$0xff] }
 0x2a3   : > { %v2858_v59 = vmax.f32 %v2856_v34, %v2857_v49  ;;  %v2864_v54 = vrot.slane %v2863_v50, 4  ;;  %v2872_v55 = vmax.f32 %v2870_v35, %v2871_v45  ;;  %v2878_v38 = vrot.slane %v2877_v48, 4  ;;  %3326 = vst.msk [vmem:[#allocation4 + $0x20] sm:$0xff] %vm6724_vm8, %v3304_v16 }
 0x2a4   : > { %v2840_v26 = vrot.slane %v2839_v39, 1  ;;  %v2847_v27 = vrot.slane %v2846_v36, 1  ;;  %v2853_v13 = vmax.f32 %v2851_v44, %v2852_v58  ;;  %v2834_v4 = vmax.f32 %v2832_v40, %v2833_v51 }
 0x2a5   : > { %v2859_v61 = vrot.slane %v2858_v59, 2  ;;  %v2865_v52 = vmax.f32 %v2863_v50, %v2864_v54  ;;  %v2873_v53 = vrot.slane %v2872_v55, 2  ;;  %v2879_v3 = vmax.f32 %v2877_v48, %v2878_v38 }
 0x2a6   : > { %v2841_v62 = vmax.f32 %v2839_v39, %v2840_v26  ;;  %v2848_v63 = vmax.f32 %v2846_v36, %v2847_v27  ;;  %v2854_v1 = vrot.slane %v2853_v13, 1  ;;  %vm6770_vm5 = vcmask 1041409  }
 0x2a7   : > { %v2860_v2 = vmax.f32 %v2858_v59, %v2859_v61  ;;  %v2866_v5 = vrot.slane %v2865_v52, 2  ;;  %v2874_v6 = vmax.f32 %v2872_v55, %v2873_v53  ;;  %v2880_v7 = vrot.slane %v2879_v3, 2 }
 0x2a8   : > { %v2855_v12 = vmax.f32 %v2853_v13, %v2854_v1  ;;  %v3174_v60 = vsel %vm6770_vm5, %v2841_v62, %v2834_v4  ;;  %vm6771_vm3 = vcmask 1042434   ;;  %vm6772_vm4 = vcmask 1043459   ;;  %vm6773_vm5 = vmmov %vm6766_vm0 }
 0x2a9   : > { %v3175_v37 = vsel %vm6771_vm3, %v2848_v63, %v3174_v60  ;;  %v2861_v8 = vrot.slane %v2860_v2, 1  ;;  %v2867_v9 = vmax.f32 %v2865_v52, %v2866_v5  ;;  %v2875_v17 = vrot.slane %v2874_v6, 1  ;;  %vm6774_vm3 = vmmov %vm6766_vm0 }
 0x2aa   : > { %v2881_v56 = vmax.f32 %v2879_v3, %v2880_v7  ;;  %v3176_v18 = vsel %vm6772_vm4, %v2855_v12, %v3175_v37  ;;  %vm6775_vm4 = vmmov %vm6766_vm0 }
 0x2ab   : > { %v2862_v14 = vmax.f32 %v2860_v2, %v2861_v8  ;;  %v2868_v15 = vrot.slane %v2867_v9, 1  ;;  %v2876_v10 = vmax.f32 %v2874_v6, %v2875_v17 }
 0x2ac   : > { %v2882_v11 = vrot.slane %v2881_v56, 1  ;;  %v3353_v19 = vpop.permute.xlu0 %3352  ;;  %v3499_v0 = vpop.permute.xlu1 %3498 }
 0x2ad   : > { %v2869_v22 = vmax.f32 %v2867_v9, %v2868_v15  ;;  %v3177_v25 = vsel %vm3145_vm14, %v2862_v14, %v3176_v18  ;;  %3375 = vst.msk [vmem:[#allocation4 + $0x20] sm:$0xff] %vm3372_vm9, %v3353_v19 }
 0x2ae   : > { %3522 = vst.msk [vmem:[#allocation4 + $0x10] sm:$0xff] %vm3520_vm6, %v3499_v0  ;;  %v2883_v28 = vmax.f32 %v2881_v56, %v2882_v11 }
 0x2af   : > { %v3178_v47 = vsel %vm3147_vm1, %v2869_v22, %v3177_v25 }
 0x2b0   : > { %v3179_v29 = vsel %vm3149_vm2, %v2876_v10, %v3178_v47  ;;  %v3402_v30 = vpop.permute.xlu0 %3401  ;;  %v3548_v31 = vpop.permute.xlu1 %3547 }
 0x2b1   : > { %v3180_v23 = vsel %vm3151_vm15, %v2883_v28, %v3179_v29  ;;  %3424 = vst.msk [vmem:[#allocation4 + $0x20] sm:$0xff] %vm3421_vm10, %v3402_v30 }
 0x2b2   : > { %3571 = vst.msk [vmem:[#allocation4 + $0x10] sm:$0xff] %vm3569_vm13, %v3548_v31 }
 0x2b3   : > { %3214 = vst.msk [vmem:[#allocation3 + $0x51] sm:$0xff] %vm2202_vm12, %v3180_v23 }
 0x2b4   : > { %v3451_v21 = vpop.permute.xlu0 %3450  ;;  %v3257_v46 = vpop.permute.xlu1 %3256 }
 0x2b5   : > { %3473 = vst.msk [vmem:[#allocation4 + $0x20] sm:$0xff] %vm3470_vm11, %v3451_v21 }
 0x2b6   : > { %3278 = vst.msk [vmem:[#allocation4 + $0x30] sm:$0xff] %vm3274_vm7, %v3257_v46 }
 0x2b8   : > { %v3306_v24 = vpop.permute.xlu1 %3305 }
 0x2b9   : > { %v3596_v33 = vld [vmem:[#allocation4 + $0x10] sm:$0xff]  ;;  %3327 = vst.msk [vmem:[#allocation4 + $0x30] sm:$0xff] %vm6724_vm8, %v3306_v24 }
 0x2ba   : > { %v3336_v34 = vld [vmem:[#allocation3 + $0x50] sm:$0xff]  ;;  %v3610_v35 = vpack.c.bf16 %v3596_v33, %v3594_v32 }
 0x2bb   : > { %v3434_v40 = vld [vmem:[#allocation3 + $0x52] sm:$0xff]  ;;  %3356 = vrot.lane.b32.xlu0 %v3336_v34, %s5015_s23  ;;  %3502 = vrot.lane.b32.xlu1 %v3336_v34, %s5018_s11  ;;  %3231 = vst.msk [vmem:[#allocation4 + $0x50] sm:$0xff] %vm2202_vm12, %v3336_v34 }
 0x2bc   : > { %3589 = vst.msk [vmem:[#allocation4 + $0x38] sm:$0xff] %vm2202_vm12, %v3434_v40  ;;  %3742 = vmatmul.mubr.bf16.vlgmr.msra.gmra.mxu1 %v3610_v35  ;;  %v3385_v41 = vld [vmem:[#allocation3 + $0x51] sm:$0xff] }
 0x2bf   : > { %3405 = vrot.lane.b32.xlu0 %v3385_v41, %s5016_s28  ;;  %3551 = vrot.lane.b32.xlu1 %v3385_v41, %s5019_s14 }
 0x2c3   : > { %v3601_v44 = vld [vmem:[#allocation4 + $0x38] sm:$0xff]  ;;  %3454 = vrot.lane.b32.xlu0 %v3434_v40, %s5017_s8  ;;  %3260 = vrot.lane.b32.xlu1 %v3385_v41, %s5012_s19 }
 0x2c4   : > { %v3613_v49 = vpack.c.bf16 %v3601_v44, %v3599_v42 }
 0x2c6   : > { %4806 = vmatprep.mubr.msk.bf16.mxu1 %vm2202_vm12, %v3613_v49 }
 0x2c7   : > { %3309 = vrot.lane.b32.xlu1 %v3434_v40, %s5013_s20 }
 0x2cd   : > { %v4898_v50 = vpop.f32.mrf.mxu0 }
 0x2ce   : > { %v2132_v45 = vadd.f32 %v6262_v43, %v4898_v50 }
 0x2cf   : > { %v2123_v48 = vpop.f32.mrf.mxu0 }
 0x2d0   : > { %v2192_v51 = vmax.f32 %v2132_v45, 0.0  ;;  %v2124_v39 = vadd.f32 %v6262_v43, %v2123_v48 }
 0x2d1   : > { %v4899_v36 = vpop.f32.mrf.mxu0 }
 0x2d2   : > { %v2190_v58 = vmax.f32 %v2124_v39, 0.0  ;;  %v2135_v16 = vadd.f32 %v6262_v43, %v4899_v36  ;;  %v2234_v54 = vsel %vm2202_vm12, %v2192_v51, -inf }
 0x2d3   : > { %v2126_v59 = vpop.f32.mrf.mxu0 }
 0x2d4   : > { %v2233_v55 = vsel %vm2202_vm12, %v2190_v58, -inf  ;;  %v2193_v38 = vmax.f32 %v2135_v16, 0.0  ;;  %v2127_v26 = vadd.f32 %v6262_v43, %v2126_v59 }
 0x2d5   : > { %v2235_v27 = vmax.f32 %v2233_v55, %v2234_v54 }
 0x2d6   : > { %v2191_v13 = vmax.f32 %v2127_v26, 0.0  ;;  %v2237_v53 = vsel %vm2202_vm12, %v2193_v38, -inf }
 0x2d7   : > { %v2437_v61 = vcombine.high %v2235_v27, %v2235_v27  ;;  %v2444_v52 = vrot.slane %v2235_v27, %v5818_v20 }
 0x2d8   : > { %v2236_v3 = vsel %vm2202_vm12, %v2191_v13, -inf }
 0x2d9   : > { %v2451_v4 = vrot.slane %v2437_v61, %v5818_v20  ;;  %v2452_v62 = vcombine.high %v2444_v52, %v2444_v52  ;;  %v2884_v63 = vsel %vm6766_vm0, %v2444_v52, -inf  ;;  %v2238_v1 = vmax.f32 %v2236_v3, %v2237_v53 }
 0x2da   : > { %v2885_v2 = vrot.slane %v2884_v63, 4 }
 0x2db   : > { %v2453_v5 = vcombine.high %v2451_v4, %v2451_v4  ;;  %v2891_v6 = vsel %vm6773_vm5, %v2452_v62, -inf  ;;  %v2898_v7 = vsel %vm6774_vm3, %v2451_v4, -inf  ;;  %v2454_v12 = vcombine.high %v2238_v1, %v2238_v1  ;;  %vm6776_vm5 = vmmov %vm6766_vm0 }
 0x2dc   : > { %v2886_v60 = vmax.f32 %v2884_v63, %v2885_v2  ;;  %v2892_v37 = vrot.slane %v2891_v6, 4  ;;  %v2899_v8 = vrot.slane %v2898_v7, 4  ;;  %v2461_v9 = vrot.slane %v2238_v1, %v5818_v20  ;;  %vm6777_vm3 = vmmov %vm6766_vm0 }
 0x2dd   : > { %v2905_v17 = vsel %vm6775_vm4, %v2453_v5, -inf  ;;  %v2468_v56 = vrot.slane %v2454_v12, %v5818_v20  ;;  %vm6778_vm4 = vmmov %vm6766_vm0 }
 0x2de   : > { %v2887_v18 = vrot.slane %v2886_v60, 2  ;;  %v2893_v14 = vmax.f32 %v2891_v6, %v2892_v37  ;;  %v2900_v15 = vmax.f32 %v2898_v7, %v2899_v8  ;;  %v2906_v10 = vrot.slane %v2905_v17, 4 }
 0x2df   : > { %v2469_v11 = vcombine.high %v2461_v9, %v2461_v9  ;;  %v2470_v19 = vcombine.high %v2468_v56, %v2468_v56  ;;  %v2912_v0 = vsel %vm6766_vm0, %v2461_v9, -inf  ;;  %v2926_v22 = vsel %vm6776_vm5, %v2468_v56, -inf }
 0x2e0   : > { %v2888_v25 = vmax.f32 %v2886_v60, %v2887_v18  ;;  %v2894_v28 = vrot.slane %v2893_v14, 2  ;;  %v2901_v47 = vrot.slane %v2900_v15, 2  ;;  %v2907_v29 = vmax.f32 %v2905_v17, %v2906_v10 }
 0x2e1   : > { %v2913_v30 = vrot.slane %v2912_v0, 4  ;;  %v2919_v31 = vsel %vm6777_vm3, %v2469_v11, -inf  ;;  %v2927_v23 = vrot.slane %v2926_v22, 4  ;;  %v2933_v21 = vsel %vm6778_vm4, %v2470_v19, -inf }
 0x2e2   : > { %v2889_v46 = vrot.slane %v2888_v25, 1  ;;  %v2895_v24 = vmax.f32 %v2893_v14, %v2894_v28  ;;  %v2902_v32 = vmax.f32 %v2900_v15, %v2901_v47  ;;  %v2908_v33 = vrot.slane %v2907_v29, 2  ;;  %v3585_v15 = vld [vmem:[#allocation3 + $0x92] sm:$0xff] }
 0x2e3   : > { %v2914_v34 = vmax.f32 %v2912_v0, %v2913_v30  ;;  %v2920_v35 = vrot.slane %v2919_v31, 4  ;;  %v2928_v40 = vmax.f32 %v2926_v22, %v2927_v23  ;;  %v2934_v41 = vrot.slane %v2933_v21, 4  ;;  %3593 = vst.msk [vmem:[#allocation4 + $0x78] sm:$0xff] %vm2202_vm12, %v3585_v15 }
 0x2e4   : > { %v2896_v42 = vrot.slane %v2895_v24, 1  ;;  %v2903_v44 = vrot.slane %v2902_v32, 1  ;;  %v2909_v49 = vmax.f32 %v2907_v29, %v2908_v33  ;;  %v2890_v39 = vmax.f32 %v2888_v25, %v2889_v46 }
 0x2e5   : > { %v2915_v50 = vrot.slane %v2914_v34, 2  ;;  %v2921_v45 = vmax.f32 %v2919_v31, %v2920_v35  ;;  %v2929_v48 = vrot.slane %v2928_v40, 2  ;;  %v2935_v51 = vmax.f32 %v2933_v21, %v2934_v41 }
 0x2e6   : > { %v2897_v36 = vmax.f32 %v2895_v24, %v2896_v42  ;;  %v2904_v58 = vmax.f32 %v2902_v32, %v2903_v44  ;;  %v2910_v16 = vrot.slane %v2909_v49, 1  ;;  %vm6779_vm0 = vcmask 1041409  }
 0x2e7   : > { %v2916_v59 = vmax.f32 %v2914_v34, %v2915_v50  ;;  %v2922_v54 = vrot.slane %v2921_v45, 2  ;;  %v2930_v55 = vmax.f32 %v2928_v40, %v2929_v48  ;;  %v2936_v38 = vrot.slane %v2935_v51, 2 }
 0x2e8   : > { %v2911_v26 = vmax.f32 %v2909_v49, %v2910_v16  ;;  %v3181_v27 = vsel %vm6779_vm0, %v2897_v36, %v2890_v39  ;;  %vm6780_vm5 = vcmask 1042434   ;;  %vm6781_vm3 = vcmask 1043459  }
 0x2e9   : > { %v3182_v13 = vsel %vm6780_vm5, %v2904_v58, %v3181_v27  ;;  %v2917_v61 = vrot.slane %v2916_v59, 1  ;;  %v2923_v52 = vmax.f32 %v2921_v45, %v2922_v54  ;;  %v2931_v53 = vrot.slane %v2930_v55, 1 }
 0x2ea   : > { %v2937_v3 = vmax.f32 %v2935_v51, %v2936_v38  ;;  %v3183_v4 = vsel %vm6781_vm3, %v2911_v26, %v3182_v13  ;;  %vm3996_vm0 = vcmask 259072   ;;  %vm4001_vm5 = vcmask 253952   ;;  %vm6782_vm3 = vmmov %vm6778_vm4 }
 0x2eb   : > { %v2918_v62 = vmax.f32 %v2916_v59, %v2917_v61  ;;  %v2924_v63 = vrot.slane %v2923_v52, 1  ;;  %v2932_v1 = vmax.f32 %v2930_v55, %v2931_v53  ;;  %3997 = vst.msk [vmem:[#allocation5] sm:$0x3f] %vm3996_vm0, %v5010_v57  ;;  %3999 = vst.msk [vmem:[#allocation5 + $0x28] sm:$0x3f] %vm3996_vm0, %v5010_v57 }
 0x2ec   : > { %v2938_v2 = vrot.slane %v2937_v3, 1  ;;  %v3501_v5 = vpop.permute.xlu0 %3500  ;;  %v3355_v6 = vpop.permute.xlu1 %3354  ;;  %4006 = vst.msk [vmem:[#allocation5 + $0xd] sm:$0x1] %vm4001_vm5, %v5010_v57  ;;  %4002 = vst.msk [vmem:[#allocation5 + $0x8] sm:$0x1] %vm4001_vm5, %v5010_v57 }
 0x2ed   : > { %v2925_v7 = vmax.f32 %v2923_v52, %v2924_v63  ;;  %v3184_v12 = vsel %vm3145_vm14, %v2918_v62, %v3183_v4  ;;  %3523 = vst.msk [vmem:[#allocation4 + $0x20] sm:$0xff] %vm3520_vm6, %v3501_v5  ;;  %vm6786_vm0 = vmmov %vm6782_vm3 }
 0x2ee   : > { %3376 = vst.msk [vmem:[#allocation4 + $0x30] sm:$0xff] %vm3372_vm9, %v3355_v6  ;;  %v2939_v60 = vmax.f32 %v2937_v3, %v2938_v2 }
 0x2ef   : > { %v3185_v37 = vsel %vm3147_vm1, %v2925_v7, %v3184_v12  ;;  %4003 = vst.msk [vmem:[#allocation5 + $0x10] sm:$0x1] %vm4001_vm5, %v5010_v57  ;;  %4004 = vst.msk [vmem:[#allocation5 + $0x18] sm:$0x1] %vm4001_vm5, %v5010_v57 }
 0x2f0   : > { %v3186_v8 = vsel %vm3149_vm2, %v2932_v1, %v3185_v37  ;;  %v3550_v9 = vpop.permute.xlu0 %3549  ;;  %v3404_v17 = vpop.permute.xlu1 %3403  ;;  %4005 = vst.msk [vmem:[#allocation5 + $0x20] sm:$0x1] %vm4001_vm5, %v5010_v57  ;;  %4007 = vst.msk [vmem:[#allocation5 + $0x15] sm:$0x1] %vm4001_vm5, %v5010_v57 }
 0x2f1   : > { %v3187_v56 = vsel %vm3151_vm15, %v2939_v60, %v3186_v8  ;;  %3572 = vst.msk [vmem:[#allocation4 + $0x20] sm:$0xff] %vm3569_vm13, %v3550_v9 }
 0x2f2   : > { %3425 = vst.msk [vmem:[#allocation4 + $0x30] sm:$0xff] %vm3421_vm10, %v3404_v17 }
 0x2f3   : > { %3215 = vst.msk [vmem:[#allocation3 + $0x61] sm:$0xff] %vm2202_vm12, %v3187_v56 }
 0x2f4   : > { %v3259_v18 = vpop.permute.xlu0 %3258  ;;  %v3453_v14 = vpop.permute.xlu1 %3452  ;;  %4008 = vst.msk [vmem:[#allocation5 + $0x1d] sm:$0x1] %vm4001_vm5, %v5010_v57  ;;  %4009 = vst.msk [vmem:[#allocation5 + $0x25] sm:$0x1] %vm4001_vm5, %v5010_v57 }
 0x2f5   : > { %3279 = vst.msk [vmem:[#allocation4 + $0x40] sm:$0xff] %vm3274_vm7, %v3259_v18  ;;  %vm6787_vm5 = vmmov %vm6786_vm0 }
 0x2f6   : > { %3474 = vst.msk [vmem:[#allocation4 + $0x30] sm:$0xff] %vm3470_vm11, %v3453_v14 }
 0x2f8   : > { %v3308_v10 = vpop.permute.xlu0 %3307 }
 0x2f9   : > { %3328 = vst.msk [vmem:[#allocation4 + $0x40] sm:$0xff] %vm6724_vm8, %v3308_v10  ;;  %vm6783_vm8 = vmmov %vm6782_vm3 }
 0x2fa   : > { %v3484_v11 = vld [vmem:[#allocation3 + $0x60] sm:$0xff] }
 0x2fb   : > { %v3435_v19 = vld [vmem:[#allocation3 + $0x62] sm:$0xff]  ;;  %3504 = vrot.lane.b32.xlu0 %v3484_v11, %s5018_s11  ;;  %3358 = vrot.lane.b32.xlu1 %v3484_v11, %s5015_s23  ;;  %3232 = vst.msk [vmem:[#allocation4 + $0x60] sm:$0xff] %vm2202_vm12, %v3484_v11 }
 0x2fc   : > { %3590 = vst.msk [vmem:[#allocation4 + $0x48] sm:$0xff] %vm2202_vm12, %v3435_v19  ;;  %v3533_v0 = vld [vmem:[#allocation3 + $0x61] sm:$0xff] }
 0x2ff   : > { %3553 = vrot.lane.b32.xlu0 %v3533_v0, %s5019_s14  ;;  %3407 = vrot.lane.b32.xlu1 %v3533_v0, %s5016_s28 }
 0x303   : > { %3262 = vrot.lane.b32.xlu0 %v3533_v0, %s5012_s19  ;;  %3456 = vrot.lane.b32.xlu1 %v3435_v19, %s5017_s8 }
 0x307   : > { %3311 = vrot.lane.b32.xlu0 %v3435_v19, %s5013_s20 }
 0x30d   : > { %v4902_v22 = vpop.f32.mrf.mxu0 }
 0x30e   : > { %v2148_v25 = vadd.f32 %v6262_v43, %v4902_v22 }
 0x30f   : > { %v2139_v28 = vpop.f32.mrf.mxu0 }
 0x310   : > { %v2196_v47 = vmax.f32 %v2148_v25, 0.0  ;;  %v2140_v29 = vadd.f32 %v6262_v43, %v2139_v28 }
 0x311   : > { %v4903_v30 = vpop.f32.mrf.mxu0 }
 0x312   : > { %v2194_v31 = vmax.f32 %v2140_v29, 0.0  ;;  %v2151_v23 = vadd.f32 %v6262_v43, %v4903_v30  ;;  %v2240_v46 = vsel %vm2202_vm12, %v2196_v47, -inf }
 0x313   : > { %v2142_v21 = vpop.f32.mrf.mxu0 }
 0x314   : > { %v2239_v24 = vsel %vm2202_vm12, %v2194_v31, -inf  ;;  %v2197_v32 = vmax.f32 %v2151_v23, 0.0  ;;  %v2143_v33 = vadd.f32 %v6262_v43, %v2142_v21 }
 0x315   : > { %v2241_v34 = vmax.f32 %v2239_v24, %v2240_v46 }
 0x316   : > { %v2195_v35 = vmax.f32 %v2143_v33, 0.0  ;;  %v2243_v42 = vsel %vm2202_vm12, %v2197_v32, -inf }
 0x317   : > { %v2471_v40 = vcombine.high %v2241_v34, %v2241_v34  ;;  %v2478_v41 = vrot.slane %v2241_v34, %v5818_v20 }
 0x318   : > { %v2242_v44 = vsel %vm2202_vm12, %v2195_v35, -inf }
 0x319   : > { %v2485_v49 = vrot.slane %v2471_v40, %v5818_v20  ;;  %v2486_v50 = vcombine.high %v2478_v41, %v2478_v41  ;;  %v2940_v45 = vsel %vm6778_vm4, %v2478_v41, -inf  ;;  %v2244_v48 = vmax.f32 %v2242_v44, %v2243_v42  ;;  %vm6785_vm4 = vmmov %vm6782_vm3 }
 0x31a   : > { %v2941_v51 = vrot.slane %v2940_v45, 4 }
 0x31b   : > { %v2487_v39 = vcombine.high %v2485_v49, %v2485_v49  ;;  %v2947_v43 = vsel %vm6782_vm3, %v2486_v50, -inf  ;;  %v2954_v36 = vsel %vm6783_vm8, %v2485_v49, -inf  ;;  %v2488_v58 = vcombine.high %v2244_v48, %v2244_v48  ;;  %vm6784_vm8 = vmmov %vm6782_vm3 }
 0x31c   : > { %v2942_v16 = vmax.f32 %v2940_v45, %v2941_v51  ;;  %v2948_v59 = vrot.slane %v2947_v43, 4  ;;  %v2955_v54 = vrot.slane %v2954_v36, 4  ;;  %v2495_v55 = vrot.slane %v2244_v48, %v5818_v20  ;;  %vm6788_vm3 = vmmov %vm6786_vm0 }
 0x31d   : > { %v2961_v38 = vsel %vm6784_vm8, %v2487_v39, -inf  ;;  %v2502_v26 = vrot.slane %v2488_v58, %v5818_v20  ;;  %vm6789_vm8 = vcmask 1041409  }
 0x31e   : > { %v2943_v27 = vrot.slane %v2942_v16, 2  ;;  %v2949_v13 = vmax.f32 %v2947_v43, %v2948_v59  ;;  %v2956_v61 = vmax.f32 %v2954_v36, %v2955_v54  ;;  %v2962_v52 = vrot.slane %v2961_v38, 4 }
 0x31f   : > { %v2503_v53 = vcombine.high %v2495_v55, %v2495_v55  ;;  %v2504_v3 = vcombine.high %v2502_v26, %v2502_v26  ;;  %v2968_v4 = vsel %vm6785_vm4, %v2495_v55, -inf  ;;  %v2982_v62 = vsel %vm6786_vm0, %v2502_v26, -inf }
 0x320   : > { %v2944_v63 = vmax.f32 %v2942_v16, %v2943_v27  ;;  %v2950_v1 = vrot.slane %v2949_v13, 2  ;;  %v2957_v2 = vrot.slane %v2956_v61, 2  ;;  %v2963_v5 = vmax.f32 %v2961_v38, %v2962_v52 }
 0x321   : > { %v2969_v6 = vrot.slane %v2968_v4, 4  ;;  %v2975_v7 = vsel %vm6787_vm5, %v2503_v53, -inf  ;;  %v2983_v12 = vrot.slane %v2982_v62, 4  ;;  %v2989_v60 = vsel %vm6788_vm3, %v2504_v3, -inf }
 0x322   : > { %v2945_v37 = vrot.slane %v2944_v63, 1  ;;  %v2951_v8 = vmax.f32 %v2949_v13, %v2950_v1  ;;  %v2958_v9 = vmax.f32 %v2956_v61, %v2957_v2  ;;  %v2964_v17 = vrot.slane %v2963_v5, 2  ;;  %v3598_v61 = vld [vmem:[#allocation4 + $0x20] sm:$0xff] }
 0x323   : > { %v2970_v56 = vmax.f32 %v2968_v4, %v2969_v6  ;;  %v2976_v18 = vrot.slane %v2975_v7, 4  ;;  %v2984_v14 = vmax.f32 %v2982_v62, %v2983_v12  ;;  %v2990_v15 = vrot.slane %v2989_v60, 4  ;;  %v4992_v6 = vld [vmem:[%s6711_s2] ss:$0 sm:$0xff] }
 0x324   : > { %v2952_v10 = vrot.slane %v2951_v8, 1  ;;  %v2959_v11 = vrot.slane %v2958_v9, 1  ;;  %v2965_v19 = vmax.f32 %v2963_v5, %v2964_v17  ;;  %v2946_v47 = vmax.f32 %v2944_v63, %v2945_v37  ;;  %v3603_v63 = vld [vmem:[#allocation4 + $0x48] sm:$0xff] }
 0x325   : > { %v2971_v0 = vrot.slane %v2970_v56, 2  ;;  %v2977_v22 = vmax.f32 %v2975_v7, %v2976_v18  ;;  %v2985_v25 = vrot.slane %v2984_v14, 2  ;;  %v2991_v28 = vmax.f32 %v2989_v60, %v2990_v15 }
 0x326   : > { %v2953_v29 = vmax.f32 %v2951_v8, %v2952_v10  ;;  %v2960_v30 = vmax.f32 %v2958_v9, %v2959_v11  ;;  %v2966_v31 = vrot.slane %v2965_v19, 1  ;;  %vm6790_vm4 = vcmask 1042434  }
 0x327   : > { %v2972_v23 = vmax.f32 %v2970_v56, %v2971_v0  ;;  %v2978_v21 = vrot.slane %v2977_v22, 2  ;;  %v2986_v46 = vmax.f32 %v2984_v14, %v2985_v25  ;;  %v2992_v24 = vrot.slane %v2991_v28, 2 }
 0x328   : > { %v2967_v32 = vmax.f32 %v2965_v19, %v2966_v31  ;;  %v3188_v33 = vsel %vm6789_vm8, %v2953_v29, %v2946_v47  ;;  %vm6791_vm0 = vcmask 1043459   ;;  %vm6792_vm5 = vcmask 392448   ;;  %vm6793_vm8 = vmmov %vm6788_vm3 }
 0x329   : > { %v3189_v34 = vsel %vm6790_vm4, %v2960_v30, %v3188_v33  ;;  %v2973_v35 = vrot.slane %v2972_v23, 1  ;;  %v2979_v40 = vmax.f32 %v2977_v22, %v2978_v21  ;;  %v2987_v41 = vrot.slane %v2986_v46, 1  ;;  %vm6794_vm4 = vmmov %vm6788_vm3 }
 0x32a   : > { %v2993_v42 = vmax.f32 %v2991_v28, %v2992_v24  ;;  %v3190_v44 = vsel %vm6791_vm0, %v2967_v32, %v3189_v34  ;;  %vm6795_vm0 = vmmov %vm6788_vm3 }
 0x32b   : > { %v2974_v49 = vmax.f32 %v2972_v23, %v2973_v35  ;;  %v2980_v50 = vrot.slane %v2979_v40, 1  ;;  %v2988_v45 = vmax.f32 %v2986_v46, %v2987_v41 }
 0x32c   : > { %v2994_v48 = vrot.slane %v2993_v42, 1 }
 0x32d   : > { %v3357_v51 = vpop.permute.xlu0 %3356  ;;  %v3503_v39 = vpop.permute.xlu1 %3502  ;;  %v2981_v43 = vmax.f32 %v2979_v40, %v2980_v50  ;;  %v3191_v36 = vsel %vm3145_vm14, %v2974_v49, %v3190_v44 }
 0x32e   : > { %3377 = vst.msk [vmem:[#allocation4 + $0x40] sm:$0xff] %vm3372_vm9, %v3357_v51  ;;  %v2995_v58 = vmax.f32 %v2993_v42, %v2994_v48 }
 0x32f   : > { %3524 = vst.msk [vmem:[#allocation4 + $0x30] sm:$0xff] %vm3520_vm6, %v3503_v39  ;;  %v3192_v16 = vsel %vm3147_vm1, %v2981_v43, %v3191_v36 }
 0x330   : > { %v3193_v59 = vsel %vm3149_vm2, %v2988_v45, %v3192_v16 }
 0x331   : > { %v3406_v54 = vpop.permute.xlu0 %3405  ;;  %v3552_v55 = vpop.permute.xlu1 %3551  ;;  %v3194_v38 = vsel %vm3151_vm15, %v2995_v58, %v3193_v59 }
 0x332   : > { %3426 = vst.msk [vmem:[#allocation4 + $0x40] sm:$0xff] %vm3421_vm10, %v3406_v54 }
 0x333   : > { %3573 = vst.msk [vmem:[#allocation4 + $0x30] sm:$0xff] %vm3569_vm13, %v3552_v55 }
 0x334   : > { %3216 = vst.msk [vmem:[#allocation3 + $0x71] sm:$0xff] %vm2202_vm12, %v3194_v38 }
 0x335   : > { %v3455_v26 = vpop.permute.xlu0 %3454  ;;  %v3261_v27 = vpop.permute.xlu1 %3260 }
 0x336   : > { %3475 = vst.msk [vmem:[#allocation4 + $0x40] sm:$0xff] %vm3470_vm11, %v3455_v26 }
 0x337   : > { %3280 = vst.msk [vmem:[#allocation4 + $0x50] sm:$0xff] %vm3274_vm7, %v3261_v27 }
 0x339   : > { %v3310_v13 = vpop.permute.xlu1 %3309 }
 0x33a   : > { %v3600_v52 = vld [vmem:[#allocation4 + $0x30] sm:$0xff]  ;;  %3329 = vst.msk [vmem:[#allocation4 + $0x50] sm:$0xff] %vm6792_vm5, %v3310_v13  ;;  %vm6796_vm5 = vmmov %vm6795_vm0 }
 0x33b   : > { %v3338_v53 = vld [vmem:[#allocation3 + $0x70] sm:$0xff]  ;;  %v3612_v3 = vpack.c.bf16 %v3600_v52, %v3598_v61 }
 0x33c   : > { %v3436_v4 = vld [vmem:[#allocation3 + $0x72] sm:$0xff]  ;;  %3360 = vrot.lane.b32.xlu0 %v3338_v53, %s5015_s23  ;;  %3506 = vrot.lane.b32.xlu1 %v3338_v53, %s5018_s11  ;;  %3233 = vst.msk [vmem:[#allocation4 + $0x70] sm:$0xff] %vm2202_vm12, %v3338_v53 }
 0x33d   : > { %3591 = vst.msk [vmem:[#allocation4 + $0x58] sm:$0xff] %vm2202_vm12, %v3436_v4  ;;  %3750 = vmatmul.mubr.bf16.gmra.mxu1 %v3612_v3  ;;  %v3387_v62 = vld [vmem:[#allocation3 + $0x71] sm:$0xff] }
 0x340   : > { %3409 = vrot.lane.b32.xlu0 %v3387_v62, %s5016_s28  ;;  %3555 = vrot.lane.b32.xlu1 %v3387_v62, %s5019_s14 }
 0x344   : > { %v3605_v1 = vld [vmem:[#allocation4 + $0x58] sm:$0xff]  ;;  %3458 = vrot.lane.b32.xlu0 %v3436_v4, %s5017_s8  ;;  %3264 = vrot.lane.b32.xlu1 %v3387_v62, %s5012_s19 }
 0x345   : > { %v3615_v2 = vpack.c.bf16 %v3605_v1, %v3603_v63 }
 0x347   : > { %4807 = vmatprep.mubr.msk.bf16.mxu1 %vm2202_vm12, %v3615_v2 }
 0x348   : > { %3313 = vrot.lane.b32.xlu1 %v3436_v4, %s5013_s20 }
 0x349   : > { %v4906_v5 = vpop.f32.mrf.mxu0 }
 0x34a   : > { %v2164_v7 = vadd.f32 %v4992_v6, %v4906_v5 }
 0x34b   : > { %v2155_v12 = vpop.f32.mrf.mxu0 }
 0x34c   : > { %v2200_v60 = vmax.f32 %v2164_v7, 0.0  ;;  %v2156_v37 = vadd.f32 %v4992_v6, %v2155_v12 }
 0x34d   : > { %v4907_v8 = vpop.f32.mrf.mxu0 }
 0x34e   : > { %v2198_v9 = vmax.f32 %v2156_v37, 0.0  ;;  %v2167_v17 = vadd.f32 %v4992_v6, %v4907_v8  ;;  %v2246_v18 = vsel %vm2202_vm12, %v2200_v60, -inf }
 0x34f   : > { %v2158_v56 = vpop.f32.mrf.mxu0 }
 0x350   : > { %v2245_v14 = vsel %vm2202_vm12, %v2198_v9, -inf  ;;  %v2201_v15 = vmax.f32 %v2167_v17, 0.0  ;;  %v2159_v10 = vadd.f32 %v4992_v6, %v2158_v56 }
 0x351   : > { %v2247_v11 = vmax.f32 %v2245_v14, %v2246_v18 }
 0x352   : > { %v2199_v19 = vmax.f32 %v2159_v10, 0.0  ;;  %v2249_v25 = vsel %vm2202_vm12, %v2201_v15, -inf }
 0x353   : > { %v2505_v0 = vcombine.high %v2247_v11, %v2247_v11  ;;  %v2512_v22 = vrot.slane %v2247_v11, %v5818_v20 }
 0x354   : > { %v2248_v28 = vsel %vm2202_vm12, %v2199_v19, -inf }
 0x355   : > { %v2519_v47 = vrot.slane %v2505_v0, %v5818_v20  ;;  %v2520_v29 = vcombine.high %v2512_v22, %v2512_v22  ;;  %v2996_v30 = vsel %vm6788_vm3, %v2512_v22, -inf  ;;  %v2250_v31 = vmax.f32 %v2248_v28, %v2249_v25  ;;  %vm6797_vm3 = vmmov %vm6795_vm0 }
 0x356   : > { %v2997_v23 = vrot.slane %v2996_v30, 4 }
 0x357   : > { %v2521_v21 = vcombine.high %v2519_v47, %v2519_v47  ;;  %v3003_v46 = vsel %vm6793_vm8, %v2520_v29, -inf  ;;  %v3010_v24 = vsel %vm6794_vm4, %v2519_v47, -inf  ;;  %v2522_v32 = vcombine.high %v2250_v31, %v2250_v31  ;;  %vm6798_vm8 = vmmov %vm6795_vm0 }
 0x358   : > { %v2998_v33 = vmax.f32 %v2996_v30, %v2997_v23  ;;  %v3004_v34 = vrot.slane %v3003_v46, 4  ;;  %v3011_v35 = vrot.slane %v3010_v24, 4  ;;  %v2529_v40 = vrot.slane %v2250_v31, %v5818_v20  ;;  %vm6799_vm4 = vmmov %vm6795_vm0 }
 0x359   : > { %v3017_v41 = vsel %vm6795_vm0, %v2521_v21, -inf  ;;  %v2536_v42 = vrot.slane %v2522_v32, %v5818_v20  ;;  %vm6800_vm0 = vcmask 1041409  }
 0x35a   : > { %v2999_v44 = vrot.slane %v2998_v33, 2  ;;  %v3005_v49 = vmax.f32 %v3003_v46, %v3004_v34  ;;  %v3012_v50 = vmax.f32 %v3010_v24, %v3011_v35  ;;  %v3018_v45 = vrot.slane %v3017_v41, 4 }
 0x35b   : > { %v2537_v48 = vcombine.high %v2529_v40, %v2529_v40  ;;  %v2538_v51 = vcombine.high %v2536_v42, %v2536_v42  ;;  %v3024_v39 = vsel %vm6796_vm5, %v2529_v40, -inf  ;;  %v3038_v43 = vsel %vm6797_vm3, %v2536_v42, -inf }
 0x35c   : > { %v3000_v36 = vmax.f32 %v2998_v33, %v2999_v44  ;;  %v3006_v58 = vrot.slane %v3005_v49, 2  ;;  %v3013_v16 = vrot.slane %v3012_v50, 2  ;;  %v3019_v59 = vmax.f32 %v3017_v41, %v3018_v45 }
 0x35d   : > { %v3025_v54 = vrot.slane %v3024_v39, 4  ;;  %v3031_v55 = vsel %vm6798_vm8, %v2537_v48, -inf  ;;  %v3039_v38 = vrot.slane %v3038_v43, 4  ;;  %v3045_v26 = vsel %vm6799_vm4, %v2538_v51, -inf  ;;  %v6528_v51 = vld [vmem:[%s6713_s4] ss:$0 sm:$0xff] }
 0x35e   : > { %v3001_v27 = vrot.slane %v3000_v36, 1  ;;  %v3007_v13 = vmax.f32 %v3005_v49, %v3006_v58  ;;  %v3014_v61 = vmax.f32 %v3012_v50, %v3013_v16  ;;  %v3020_v52 = vrot.slane %v3019_v59, 2  ;;  %v3487_v16 = vld [vmem:[#allocation3 + $0x90] sm:$0xff] }
 0x35f   : > { %v3026_v53 = vmax.f32 %v3024_v39, %v3025_v54  ;;  %v3032_v3 = vrot.slane %v3031_v55, 4  ;;  %v3040_v4 = vmax.f32 %v3038_v43, %v3039_v38  ;;  %v3046_v62 = vrot.slane %v3045_v26, 4 }
 0x360   : > { %v3008_v63 = vrot.slane %v3007_v13, 1  ;;  %v3015_v1 = vrot.slane %v3014_v61, 1  ;;  %v3021_v2 = vmax.f32 %v3019_v59, %v3020_v52  ;;  %v3002_v60 = vmax.f32 %v3000_v36, %v3001_v27 }
 0x361   : > { %v3027_v5 = vrot.slane %v3026_v53, 2  ;;  %v3033_v6 = vmax.f32 %v3031_v55, %v3032_v3  ;;  %v3041_v7 = vrot.slane %v3040_v4, 2  ;;  %v3047_v12 = vmax.f32 %v3045_v26, %v3046_v62  ;;  %v3536_v26 = vld [vmem:[#allocation3 + $0x91] sm:$0xff] }
 0x362   : > { %v3009_v37 = vmax.f32 %v3007_v13, %v3008_v63  ;;  %v3016_v8 = vmax.f32 %v3014_v61, %v3015_v1  ;;  %v3022_v9 = vrot.slane %v3021_v2, 1  ;;  %vm6801_vm5 = vcmask 1042434  }
 0x363   : > { %v3028_v17 = vmax.f32 %v3026_v53, %v3027_v5  ;;  %v3034_v56 = vrot.slane %v3033_v6, 2  ;;  %v3042_v18 = vmax.f32 %v3040_v4, %v3041_v7  ;;  %v3048_v14 = vrot.slane %v3047_v12, 2  ;;  %vm6805_vm4 = vmmov %vm6801_vm5 }
 0x364   : > { %v3023_v15 = vmax.f32 %v3021_v2, %v3022_v9  ;;  %v3195_v10 = vsel %vm6800_vm0, %v3009_v37, %v3002_v60  ;;  %vm6802_vm3 = vcmask 1043459   ;;  %vm4042_vm8 = vcmask 257024  }
 0x365   : > { %v3196_v11 = vsel %vm6801_vm5, %v3016_v8, %v3195_v10  ;;  %v3029_v19 = vrot.slane %v3028_v17, 1  ;;  %v3035_v0 = vmax.f32 %v3033_v6, %v3034_v56  ;;  %v3043_v22 = vrot.slane %v3042_v18, 1 }
 0x366   : > { %v3049_v25 = vmax.f32 %v3047_v12, %v3048_v14  ;;  %v3197_v28 = vsel %vm6802_vm3, %v3023_v15, %v3196_v11 }
 0x367   : > { %v3030_v47 = vmax.f32 %v3028_v17, %v3029_v19  ;;  %v3036_v29 = vrot.slane %v3035_v0, 1  ;;  %v3044_v30 = vmax.f32 %v3042_v18, %v3043_v22 }
 0x368   : > { %v3050_v31 = vrot.slane %v3049_v25, 1 }
 0x369   : > { %v3037_v23 = vmax.f32 %v3035_v0, %v3036_v29  ;;  %v3198_v21 = vsel %vm3145_vm14, %v3030_v47, %v3197_v28  ;;  %vm6804_vm14 = vmmov %vm6800_vm0 }
 0x36a   : > { %v3051_v46 = vmax.f32 %v3049_v25, %v3050_v31  ;;  %vm6806_vm0 = vmmov %vm6802_vm3 }
 0x36b   : > { %v3199_v24 = vsel %vm3147_vm1, %v3037_v23, %v3198_v21  ;;  %vm3782_vm1 = vcmask 261120   ;;  %vm6812_vm3 = vmmov %vm6805_vm4 }
 0x36c   : > { %v3200_v32 = vsel %vm3149_vm2, %v3044_v30, %v3199_v24  ;;  %vm3883_vm2 = vcmask 254976  }
 0x36d   : > { %v3505_v33 = vpop.permute.xlu0 %3504  ;;  %v3359_v34 = vpop.permute.xlu1 %3358  ;;  %v3201_v35 = vsel %vm3151_vm15, %v3051_v46, %v3200_v32  ;;  %vm6803_vm15 = vcmask 392448  }
 0x36e   : > { %3525 = vst.msk [vmem:[#allocation4 + $0x40] sm:$0xff] %vm3520_vm6, %v3505_v33  ;;  %vm6807_vm5 = vmmov %vm6803_vm15 }
 0x36f   : > { %3378 = vst.msk [vmem:[#allocation4 + $0x50] sm:$0xff] %vm3372_vm9, %v3359_v34 }
 0x370   : > { %3217 = vst.msk [vmem:[#allocation3 + $0x81] sm:$0xff] %vm2202_vm12, %v3201_v35 }
 0x371   : > { %v3554_v40 = vpop.permute.xlu0 %3553  ;;  %v3408_v41 = vpop.permute.xlu1 %3407 }
 0x372   : > { %3574 = vst.msk [vmem:[#allocation4 + $0x40] sm:$0xff] %vm3569_vm13, %v3554_v40 }
 0x373   : > { %3427 = vst.msk [vmem:[#allocation4 + $0x50] sm:$0xff] %vm3421_vm10, %v3408_v41 }
 0x375   : > { %v3263_v42 = vpop.permute.xlu0 %3262  ;;  %v3457_v44 = vpop.permute.xlu1 %3456 }
 0x376   : > { %3281 = vst.msk [vmem:[#allocation4 + $0x60] sm:$0xff] %vm3274_vm7, %v3263_v42 }
 0x377   : > { %3476 = vst.msk [vmem:[#allocation4 + $0x50] sm:$0xff] %vm3470_vm11, %v3457_v44  ;;  %v3486_v49 = vld [vmem:[#allocation3 + $0x80] sm:$0xff] }
 0x378   : > { %v3437_v50 = vld [vmem:[#allocation3 + $0x82] sm:$0xff]  ;;  %3508 = vrot.lane.b32.xlu0 %v3486_v49, %s5018_s11  ;;  %3362 = vrot.lane.b32.xlu1 %v3486_v49, %s5015_s23 }
 0x379   : > { %3592 = vst.msk [vmem:[#allocation4 + $0x68] sm:$0xff] %vm2202_vm12, %v3437_v50  ;;  %v3312_v45 = vpop.permute.xlu0 %3311  ;;  %v3535_v48 = vld [vmem:[#allocation3 + $0x81] sm:$0xff] }
 0x37a   : > { %3330 = vst.msk [vmem:[#allocation4 + $0x60] sm:$0xff] %vm6803_vm15, %v3312_v45  ;;  %v3609_v45 = vld [vmem:[#allocation4 + $0x78] sm:$0xff]  ;;  %vm6813_vm15 = vmmov %vm6806_vm0 }
 0x37c   : > { %3557 = vrot.lane.b32.xlu0 %v3535_v48, %s5019_s14  ;;  %3411 = vrot.lane.b32.xlu1 %v3535_v48, %s5016_s28  ;;  %v3743_v39 = vpop.f32.mrf.mxu1 }
 0x37d   : > { %v3744_v43 = vadd.f32 %v6528_v51, %v3743_v39  ;;  %v3602_v39 = vld [vmem:[#allocation4 + $0x40] sm:$0xff] }
 0x37e   : > { %v3745_v36 = vpop.f32.mrf.mxu1 }
 0x37f   : > { %v3774_v59 = vmax.f32 %v3744_v43, 0.0 }
 0x380   : > { %3460 = vrot.lane.b32.xlu1 %v3437_v50, %s5017_s8  ;;  %v3746_v58 = vpop.f32.mrf.mxu1  ;;  %v3607_v50 = vld [vmem:[#allocation4 + $0x68] sm:$0xff] }
 0x381   : > { %v3747_v54 = vadd.f32 %v6528_v51, %v3746_v58  ;;  %v3783_v27 = vsel %vm3782_vm1, %v3774_v59, -inf  ;;  %v3617_v58 = vpack.c.bf16 %v3609_v45, %v3607_v50 }
 0x382   : > { %v3748_v55 = vpop.f32.mrf.mxu1 }
 0x383   : > { %v3775_v38 = vmax.f32 %v3747_v54, 0.0 }
 0x384   : > { %3510 = vrot.lane.b32.xlu1 %v3487_v16, %s5018_s11 }
 0x385   : > { %v3784_v13 = vsel %vm3782_vm1, %v3775_v38, -inf }
 0x386   : > { %v3785_v61 = vmax.f32 %v3783_v27, %v3784_v13 }
 0x388   : > { %3559 = vrot.lane.b32.xlu1 %v3536_v26, %s5019_s14  ;;  %v3799_v52 = vcombine.high %v3785_v61, %v3785_v61  ;;  %v3806_v53 = vrot.slane %v3785_v61, %v5818_v20 }
 0x38a   : > { %v3813_v3 = vrot.slane %v3799_v52, %v5818_v20  ;;  %v3814_v4 = vcombine.high %v3806_v53, %v3806_v53  ;;  %v3884_v62 = vsel %vm3883_vm2, %v3806_v53, -inf }
 0x38b   : > { %v3885_v63 = vrot.slane %v3884_v62, 4 }
 0x38c   : > { %v3815_v1 = vcombine.high %v3813_v3, %v3813_v3  ;;  %v3891_v2 = vsel %vm3883_vm2, %v3814_v4, -inf  ;;  %v3898_v5 = vsel %vm3883_vm2, %v3813_v3, -inf }
 0x38d   : > { %v3886_v6 = vmax.f32 %v3884_v62, %v3885_v63  ;;  %v3892_v7 = vrot.slane %v3891_v2, 4  ;;  %v3899_v12 = vrot.slane %v3898_v5, 4 }
 0x38e   : > { %v3905_v60 = vsel %vm3883_vm2, %v3815_v1, -inf }
 0x38f   : > { %v3887_v37 = vrot.slane %v3886_v6, 2  ;;  %v3893_v8 = vmax.f32 %v3891_v2, %v3892_v7  ;;  %v3900_v9 = vmax.f32 %v3898_v5, %v3899_v12  ;;  %v3906_v17 = vrot.slane %v3905_v60, 4 }
 0x391   : > { %v3888_v56 = vmax.f32 %v3886_v6, %v3887_v37  ;;  %v3894_v18 = vrot.slane %v3893_v8, 2  ;;  %v3901_v14 = vrot.slane %v3900_v9, 2  ;;  %v3907_v15 = vmax.f32 %v3905_v60, %v3906_v17 }
 0x393   : > { %v3889_v10 = vrot.slane %v3888_v56, 1  ;;  %v3895_v11 = vmax.f32 %v3893_v8, %v3894_v18  ;;  %v3902_v19 = vmax.f32 %v3900_v9, %v3901_v14  ;;  %v3908_v0 = vrot.slane %v3907_v15, 2 }
 0x395   : > { %v3896_v22 = vrot.slane %v3895_v11, 1  ;;  %v3903_v25 = vrot.slane %v3902_v19, 1  ;;  %v3909_v28 = vmax.f32 %v3907_v15, %v3908_v0  ;;  %v3890_v47 = vmax.f32 %v3888_v56, %v3889_v10 }
 0x397   : > { %v3897_v29 = vmax.f32 %v3895_v11, %v3896_v22  ;;  %v3904_v30 = vmax.f32 %v3902_v19, %v3903_v25  ;;  %v3910_v31 = vrot.slane %v3909_v28, 1 }
 0x399   : > { %v3911_v23 = vmax.f32 %v3909_v28, %v3910_v31  ;;  %v4026_v21 = vsel %vm6804_vm14, %v3897_v29, %v3890_v47 }
 0x39a   : > { %v4027_v46 = vsel %vm6805_vm4, %v3904_v30, %v4026_v21 }
 0x39b   : > { %v4028_v24 = vsel %vm6806_vm0, %v3911_v23, %v4027_v46 }
 0x39c   : > { %4043 = vst.msk [vmem:[#allocation5 + $0x9] sm:$0xf] %vm4042_vm8, %v4028_v24 }
 0x3a3   : > { %v4955_v32 = vld [vmem:[#allocation5 + $0x1] ss:$8 sps:$4 sm:$0xff]  }
 0x3a4   : > { %v4957_v33 = vld [vmem:[#allocation5] ss:$8 sps:$4 sm:$0xff]   ;;  %4071 = vrot.lane.b32.xlu0 %v4955_v32, %s5013_s20 }
 0x3a5   : > { %4059 = vst.msk [vmem:[#allocation6] sm:$0xff] %vm3782_vm1, %v4957_v33  ;;  %v4956_v34 = vld [vmem:[#allocation5 + $0x2] ss:$8 sps:$4 sm:$0xff]  }
 0x3a8   : > { %4090 = vrot.lane.b32.xlu0 %v4956_v34, %s5016_s28 }
 0x3ae   : > { %v3361_v35 = vpop.permute.xlu0 %3360  ;;  %v3507_v40 = vpop.permute.xlu1 %3506 }
 0x3af   : > { %3379 = vst.msk [vmem:[#allocation4 + $0x60] sm:$0xff] %vm3372_vm9, %v3361_v35 }
 0x3b0   : > { %3526 = vst.msk [vmem:[#allocation4 + $0x50] sm:$0xff] %vm3520_vm6, %v3507_v40 }
 0x3b2   : > { %v3410_v41 = vpop.permute.xlu0 %3409  ;;  %v3556_v42 = vpop.permute.xlu1 %3555 }
 0x3b3   : > { %3428 = vst.msk [vmem:[#allocation4 + $0x60] sm:$0xff] %vm3421_vm10, %v3410_v41 }
 0x3b4   : > { %3575 = vst.msk [vmem:[#allocation4 + $0x50] sm:$0xff] %vm3569_vm13, %v3556_v42 }
 0x3b6   : > { %v3459_v44 = vpop.permute.xlu0 %3458  ;;  %v3265_v49 = vpop.permute.xlu1 %3264 }
 0x3b7   : > { %3477 = vst.msk [vmem:[#allocation4 + $0x60] sm:$0xff] %vm3470_vm11, %v3459_v44 }
 0x3b8   : > { %3282 = vst.msk [vmem:[#allocation4 + $0x70] sm:$0xff] %vm3274_vm7, %v3265_v49  ;;  %vm6808_vm7 = vmmov %vm6804_vm14 }
 0x3b9   : > { %vm6815_vm14 = vmmov %vm6812_vm3 }
 0x3ba   : > { %v3314_v48 = vpop.permute.xlu1 %3313 }
 0x3bb   : > { %v3604_v43 = vld [vmem:[#allocation4 + $0x50] sm:$0xff]  ;;  %3331 = vst.msk [vmem:[#allocation4 + $0x70] sm:$0xff] %vm6807_vm5, %v3314_v48 }
 0x3bc   : > { %v3614_v36 = vpack.c.bf16 %v3604_v43, %v3602_v39 }
 0x3be   : > { %3758 = vmatmul.mubr.bf16.gmra.mxu1 %v3614_v36 }
 0x3bf   : > { %4808 = vmatprep.mubr.msk.bf16.mxu1 %vm2202_vm12, %v3617_v58  ;;  %vm4077_vm12 = vcmask 523520  }
 0x3ea   : > { %v3509_v16 = vpop.permute.xlu0 %3508  ;;  %v3363_v59 = vpop.permute.xlu1 %3362 }
 0x3eb   : > { %3527 = vst.msk [vmem:[#allocation4 + $0x60] sm:$0xff] %vm3520_vm6, %v3509_v16  ;;  %v4966_v16 = vld [vmem:[%s6714_s5 + $0x88] sm:$0xff]  }
 0x3ec   : > { %3380 = vst.msk [vmem:[#allocation4 + $0x70] sm:$0xff] %vm3372_vm9, %v3363_v59  ;;  %vm4096_vm9 = vcmask 785920   ;;  %4909 = vmatpush3.bf16.msra.mxu1 %v4966_v16  ;;  %v4968_v59 = vld [vmem:[%s6714_s5 + $0x80] sm:$0xff]  }
 0x3ed   : > { %4910 = vmatprep.subr.bf16.mxu1 %v5010_v57  ;;  %v4980_v16 = vld [vmem:[%s6714_s5 + $0x60] sm:$0xff]  }
 0x3ee   : > { %v3558_v54 = vpop.permute.xlu0 %3557  ;;  %v3412_v55 = vpop.permute.xlu1 %3411 }
 0x3ef   : > { %3576 = vst.msk [vmem:[#allocation4 + $0x60] sm:$0xff] %vm3569_vm13, %v3558_v54 }
 0x3f0   : > { %3429 = vst.msk [vmem:[#allocation4 + $0x70] sm:$0xff] %vm3421_vm10, %v3412_v55  ;;  %vm6809_vm10 = vmmov %vm6805_vm4  ;;  %4911 = vmatpush3.bf16.msra.mxu1 %v4968_v59 }
 0x3f1   : > { %vm6816_vm4 = vmmov %vm6806_vm0 }
 0x3f2   : > { %v3461_v38 = vpop.permute.xlu1 %3460 }
 0x3f3   : > { %3478 = vst.msk [vmem:[#allocation4 + $0x70] sm:$0xff] %vm3470_vm11, %v3461_v38  ;;  %vm6810_vm11 = vmmov %vm6806_vm0  ;;  %vm4483_vm0 = vcmask 517120  }
 0x3f6   : > { %v3511_v26 = vpop.permute.xlu1 %3510  ;;  %v3606_v62 = vld [vmem:[#allocation4 + $0x60] sm:$0xff] }
 0x3f7   : > { %3528 = vst.msk [vmem:[#allocation4 + $0x70] sm:$0xff] %vm3520_vm6, %v3511_v26  ;;  %vm5020_vm6 = vmmov 0  }
 0x3fa   : > { %v3560_v27 = vpop.permute.xlu1 %3559 }
 0x3fb   : > { %3577 = vst.msk [vmem:[#allocation4 + $0x70] sm:$0xff] %vm3569_vm13, %v3560_v27  ;;  %vm6811_vm13 = vmmov %vm6808_vm7 }
 0x3fd   : > { %v3751_v13 = vpop.f32.mrf.mxu1 }
 0x3fe   : > { %v3752_v61 = vadd.f32 %v6528_v51, %v3751_v13 }
 0x3ff   : > { %v3753_v52 = vpop.f32.mrf.mxu1 }
 0x400   : > { %v3776_v3 = vmax.f32 %v3752_v61, 0.0 }
 0x401   : > { %v3754_v53 = vpop.f32.mrf.mxu1 }
 0x402   : > { %v3755_v4 = vadd.f32 %v6528_v51, %v3754_v53  ;;  %v3608_v63 = vld [vmem:[#allocation4 + $0x70] sm:$0xff]  ;;  %v3786_v6 = vsel %vm3782_vm1, %v3776_v3, -inf }
 0x403   : > { %v3756_v1 = vpop.f32.mrf.mxu1  ;;  %v3616_v2 = vpack.c.bf16 %v3608_v63, %v3606_v62 }
 0x404   : > { %v3777_v5 = vmax.f32 %v3755_v4, 0.0 }
 0x405   : > { %3766 = vmatmul.mubr.bf16.gmra.mxu1 %v3616_v2 }
 0x406   : > { %v3787_v7 = vsel %vm3782_vm1, %v3777_v5, -inf  ;;  %4912 = vmatprep.mubr.msk.bf16.mxu1 %vm5020_vm6, %v5010_v57 }
 0x407   : > { %v3788_v12 = vmax.f32 %v3786_v6, %v3787_v7 }
 0x409   : > { %v3816_v60 = vcombine.high %v3788_v12, %v3788_v12  ;;  %v3823_v37 = vrot.slane %v3788_v12, %v5818_v20 }
 0x40b   : > { %v3830_v8 = vrot.slane %v3816_v60, %v5818_v20  ;;  %v3831_v9 = vcombine.high %v3823_v37, %v3823_v37  ;;  %v3912_v17 = vsel %vm3883_vm2, %v3823_v37, -inf }
 0x40c   : > { %v3913_v56 = vrot.slane %v3912_v17, 4 }
 0x40d   : > { %v3832_v18 = vcombine.high %v3830_v8, %v3830_v8  ;;  %v3919_v14 = vsel %vm3883_vm2, %v3831_v9, -inf  ;;  %v3926_v15 = vsel %vm3883_vm2, %v3830_v8, -inf }
 0x40e   : > { %v3914_v10 = vmax.f32 %v3912_v17, %v3913_v56  ;;  %v3920_v11 = vrot.slane %v3919_v14, 4  ;;  %v3927_v19 = vrot.slane %v3926_v15, 4 }
 0x40f   : > { %v3933_v0 = vsel %vm3883_vm2, %v3832_v18, -inf }
 0x410   : > { %v3915_v22 = vrot.slane %v3914_v10, 2  ;;  %v3921_v25 = vmax.f32 %v3919_v14, %v3920_v11  ;;  %v3928_v28 = vmax.f32 %v3926_v15, %v3927_v19  ;;  %v3934_v47 = vrot.slane %v3933_v0, 4 }
 0x412   : > { %v3916_v29 = vmax.f32 %v3914_v10, %v3915_v22  ;;  %v3922_v30 = vrot.slane %v3921_v25, 2  ;;  %v3929_v31 = vrot.slane %v3928_v28, 2  ;;  %v3935_v23 = vmax.f32 %v3933_v0, %v3934_v47 }
 0x414   : > { %v3917_v21 = vrot.slane %v3916_v29, 1  ;;  %v3923_v46 = vmax.f32 %v3921_v25, %v3922_v30  ;;  %v3930_v24 = vmax.f32 %v3928_v28, %v3929_v31  ;;  %v3936_v32 = vrot.slane %v3935_v23, 2 }
 0x416   : > { %v3924_v33 = vrot.slane %v3923_v46, 1  ;;  %v3931_v34 = vrot.slane %v3930_v24, 1  ;;  %v3937_v35 = vmax.f32 %v3935_v23, %v3936_v32  ;;  %v3918_v40 = vmax.f32 %v3916_v29, %v3917_v21  ;;  %v4072_v49 = vpop.permute.xlu0 %4071 }
 0x417   : > { %4078 = vst.msk [vmem:[#allocation6] sm:$0xff] %vm4077_vm12, %v4072_v49 }
 0x418   : > { %v3925_v41 = vmax.f32 %v3923_v46, %v3924_v33  ;;  %v3932_v42 = vmax.f32 %v3930_v24, %v3931_v34  ;;  %v3938_v44 = vrot.slane %v3937_v35, 1 }
 0x41a   : > { %v3939_v50 = vmax.f32 %v3937_v35, %v3938_v44  ;;  %v4029_v45 = vsel %vm6808_vm7, %v3925_v41, %v3918_v40  ;;  %v4091_v43 = vpop.permute.xlu0 %4090  ;;  %v4974_v40 = vld [vmem:[%s6714_s5 + $0x78] sm:$0xff]  }
 0x41b   : > { %v4030_v48 = vsel %vm6809_vm10, %v3932_v42, %v4029_v45  ;;  %4097 = vst.msk [vmem:[#allocation6] sm:$0xff] %vm4096_vm9, %v4091_v43  ;;  %v4975_v41 = vld [vmem:[%s6714_s5 + $0x38] sm:$0xff]   ;;  %v4976_v42 = vld [vmem:[%s6714_s5 + $0x70] sm:$0xff]   ;;  %4849 = vmatprep.subr.bf16.mxu0 %v4974_v40  ;;  %v4978_v45 = vld [vmem:[%s6714_s5 + $0x68] sm:$0xff]  }
 0x41c   : > { %v4031_v39 = vsel %vm6810_vm11, %v3939_v50, %v4030_v48  ;;  %4850 = vmatpush3.bf16.msra.mxu0 %v4975_v41  ;;  %v4977_v50 = vld [vmem:[%s6714_s5 + $0x30] sm:$0xff]  }
 0x41d   : > { %4044 = vst.msk [vmem:[#allocation5 + $0x11] sm:$0xf] %vm4042_vm8, %v4031_v39  ;;  %4851 = vmatprep.subr.bf16.mxu0 %v4976_v42 }
 0x420   : > { %4852 = vmatpush3.bf16.msra.mxu0 %v4977_v50 }
 0x421   : > { %4853 = vmatprep.subr.bf16.mxu0 %v4978_v45 }
 0x424   : > { %v4958_v36 = vld [vmem:[#allocation5 + $0xa] ss:$8 sps:$4 sm:$0xff]  }
 0x425   : > { %v4959_v58 = vld [vmem:[#allocation5 + $0x9] ss:$8 sps:$4 sm:$0xff]   ;;  %4142 = vrot.lane.b32.xlu0 %v4958_v36, %s5013_s20 }
 0x426   : > { %4130 = vst.msk [vmem:[#allocation6 + $0x8] sm:$0xff] %vm3782_vm1, %v4959_v58  ;;  %v4979_v58 = vld [vmem:[%s6714_s5 + $0x28] sm:$0xff]  }
 0x427   : > { %v4964_v59 = vld [vmem:[#allocation5 + $0x8] ss:$8 sps:$4 sm:$0xff]   ;;  %4854 = vmatpush3.bf16.msra.mxu0 %v4979_v58 }
 0x428   : > { %4855 = vmatprep.subr.bf16.mxu0 %v4980_v16 }
 0x47e   : > { %v3759_v54 = vpop.f32.mrf.mxu1 }
 0x47f   : > { %v3760_v55 = vadd.f32 %v6528_v51, %v3759_v54  ;;  %v4981_v54 = vld [vmem:[%s6714_s5 + $0x20] sm:$0xff]  }
 0x480   : > { %v3761_v38 = vpop.f32.mrf.mxu1  ;;  %4856 = vmatpush3.bf16.msra.mxu0 %v4981_v54 }
 0x481   : > { %v3778_v27 = vmax.f32 %v3760_v55, 0.0  ;;  %v4982_v55 = vld [vmem:[%s6714_s5 + $0x58] sm:$0xff]  }
 0x482   : > { %v3762_v26 = vpop.f32.mrf.mxu1  ;;  %v4983_v38 = vld [vmem:[%s6714_s5 + $0x18] sm:$0xff]   ;;  %4857 = vmatprep.subr.bf16.mxu0 %v4982_v55 }
 0x483   : > { %v3763_v13 = vadd.f32 %v6528_v51, %v3762_v26  ;;  %v3789_v53 = vsel %vm3782_vm1, %v3778_v27, -inf  ;;  %v4984_v26 = vld [vmem:[%s6714_s5 + $0x50] sm:$0xff]  }
 0x484   : > { %v3764_v61 = vpop.f32.mrf.mxu1  ;;  %4858 = vmatpush3.bf16.msra.mxu0 %v4983_v38  ;;  %v4985_v27 = vld [vmem:[%s6714_s5 + $0x10] sm:$0xff]  }
 0x485   : > { %v3779_v52 = vmax.f32 %v3763_v13, 0.0  ;;  %4859 = vmatprep.subr.bf16.mxu0 %v4984_v26 }
 0x487   : > { %v3790_v3 = vsel %vm3782_vm1, %v3779_v52, -inf }
 0x488   : > { %v3791_v4 = vmax.f32 %v3789_v53, %v3790_v3  ;;  %4860 = vmatpush3.bf16.msra.mxu0 %v4985_v27 }
 0x48a   : > { %v3833_v62 = vcombine.high %v3791_v4, %v3791_v4  ;;  %v3840_v63 = vrot.slane %v3791_v4, %v5818_v20 }
 0x48c   : > { %v3847_v57 = vrot.slane %v3833_v62, %v5818_v20  ;;  %v3848_v1 = vcombine.high %v3840_v63, %v3840_v63  ;;  %v3940_v2 = vsel %vm3883_vm2, %v3840_v63, -inf }
 0x48d   : > { %v3941_v5 = vrot.slane %v3940_v2, 4 }
 0x48e   : > { %v3849_v6 = vcombine.high %v3847_v57, %v3847_v57  ;;  %v3947_v7 = vsel %vm3883_vm2, %v3848_v1, -inf  ;;  %v3954_v12 = vsel %vm3883_vm2, %v3847_v57, -inf }
 0x48f   : > { %v3942_v60 = vmax.f32 %v3940_v2, %v3941_v5  ;;  %v3948_v37 = vrot.slane %v3947_v7, 4  ;;  %v3955_v8 = vrot.slane %v3954_v12, 4 }
 0x490   : > { %v3961_v9 = vsel %vm3883_vm2, %v3849_v6, -inf }
 0x491   : > { %v3943_v17 = vrot.slane %v3942_v60, 2  ;;  %v3949_v56 = vmax.f32 %v3947_v7, %v3948_v37  ;;  %v3956_v18 = vmax.f32 %v3954_v12, %v3955_v8  ;;  %v3962_v14 = vrot.slane %v3961_v9, 4 }
 0x493   : > { %v3944_v15 = vmax.f32 %v3942_v60, %v3943_v17  ;;  %v3950_v10 = vrot.slane %v3949_v56, 2  ;;  %v3957_v11 = vrot.slane %v3956_v18, 2  ;;  %v3963_v19 = vmax.f32 %v3961_v9, %v3962_v14 }
 0x495   : > { %v3945_v0 = vrot.slane %v3944_v15, 1  ;;  %v3951_v22 = vmax.f32 %v3949_v56, %v3950_v10  ;;  %v3958_v25 = vmax.f32 %v3956_v18, %v3957_v11  ;;  %v3964_v28 = vrot.slane %v3963_v19, 2 }
 0x497   : > { %v3952_v47 = vrot.slane %v3951_v22, 1  ;;  %v3959_v29 = vrot.slane %v3958_v25, 1  ;;  %v3965_v30 = vmax.f32 %v3963_v19, %v3964_v28  ;;  %v3946_v31 = vmax.f32 %v3944_v15, %v3945_v0  ;;  %v4143_v24 = vpop.permute.xlu0 %4142 }
 0x498   : > { %4148 = vst.msk [vmem:[#allocation6 + $0x8] sm:$0xff] %vm4077_vm12, %v4143_v24 }
 0x499   : > { %v3953_v23 = vmax.f32 %v3951_v22, %v3952_v47  ;;  %v3960_v21 = vmax.f32 %v3958_v25, %v3959_v29  ;;  %v3966_v46 = vrot.slane %v3965_v30, 1 }
 0x49b   : > { %v3967_v32 = vmax.f32 %v3965_v30, %v3966_v46  ;;  %v4032_v33 = vsel %vm6811_vm13, %v3953_v23, %v3946_v31 }
 0x49c   : > { %v4033_v34 = vsel %vm6812_vm3, %v3960_v21, %v4032_v33 }
 0x49d   : > { %v4034_v35 = vsel %vm6813_vm15, %v3967_v32, %v4033_v34 }
 0x49e   : > { %4045 = vst.msk [vmem:[#allocation5 + $0x19] sm:$0xf] %vm4042_vm8, %v4034_v35 }
 0x4a5   : > { %v4960_v44 = vld [vmem:[#allocation5 + $0x11] ss:$8 sps:$4 sm:$0xff]  }
 0x4a6   : > { %v4961_v49 = vld [vmem:[#allocation5 + $0x10] ss:$8 sps:$4 sm:$0xff]   ;;  %4073 = vrot.lane.b32.xlu1 %v4960_v44, %s5013_s20  ;;  %v4987_v44 = vld [vmem:[%s6714_s5 + $0x48] sm:$0xff]  }
 0x4a7   : > { %4161 = vrot.lane.b32.xlu0 %v4961_v49, %s5016_s28  ;;  %v4970_v48 = vld [vmem:[#allocation5 + $0x12] ss:$8 sps:$4 sm:$0xff]   ;;  %v4988_v49 = vld [vmem:[%s6714_s5 + $0x8] sm:$0xff]   ;;  %4861 = vmatprep.subr.bf16.mxu0 %v4987_v44 }
 0x4a8   : > { %v4962_v39 = vld [vmem:[#allocation5 + $0x12] ss:$8 sps:$4 sm:$0xff]   ;;  %4199 = vst.msk [vmem:[#allocation6 + $0x10] sm:$0xff] %vm3782_vm1, %v4970_v48  ;;  %4862 = vmatpush3.bf16.msra.mxu0 %v4988_v49 }
 0x4a9   : > { %v4973_v43 = vld [vmem:[#allocation5 + $0x10] ss:$8 sps:$4 sm:$0xff]  }
 0x4aa   : > { %v4963_v36 = vld [vmem:[#allocation5 + $0x11] ss:$8 sps:$4 sm:$0xff]   ;;  %4092 = vrot.lane.b32.xlu1 %v4962_v39, %s5016_s28  ;;  %4060 = vst.msk [vmem:[#allocation6 + $0x18] sm:$0xff] %vm3782_vm1, %v4973_v43  ;;  %v4989_v43 = vld [vmem:[%s6714_s5 + $0x40] sm:$0xff]  }
 0x4ab   : > { %4179 = vrot.lane.b32.xlu0 %v4963_v36, %s5018_s11  ;;  %v4990_v36 = vld [vmem:[%s6714_s5] sm:$0xff]   ;;  %4863 = vmatprep.subr.bf16.mxu0 %v4989_v43 }
 0x4ac   : > { %4864 = vmatpush3.bf16.msra.mxu0 %v4990_v36 }
 0x4af   : > { %4109 = vrot.lane.b32.xlu0 %v4964_v59, %s5018_s11  ;;  %v4203_v16 = vld [vmem:[#allocation6 + $0x10] sm:$0xff] }
 0x4c5   : > { %v3767_v13 = vpop.f32.mrf.mxu1 }
 0x4c6   : > { %v3768_v61 = vadd.f32 %v6528_v51, %v3767_v13 }
 0x4c7   : > { %v3769_v52 = vpop.f32.mrf.mxu1 }
 0x4c8   : > { %v3780_v3 = vmax.f32 %v3768_v61, 0.0 }
 0x4c9   : > { %v3770_v53 = vpop.f32.mrf.mxu1 }
 0x4ca   : > { %v3771_v4 = vadd.f32 %v6528_v51, %v3770_v53  ;;  %v3792_v57 = vsel %vm3782_vm1, %v3780_v3, -inf }
 0x4cb   : > { %v3772_v62 = vpop.f32.mrf.mxu1 }
 0x4cc   : > { %v3781_v63 = vmax.f32 %v3771_v4, 0.0 }
 0x4ce   : > { %v3793_v1 = vsel %vm3782_vm1, %v3781_v63, -inf }
 0x4cf   : > { %v3794_v2 = vmax.f32 %v3792_v57, %v3793_v1 }
 0x4d1   : > { %v3850_v5 = vcombine.high %v3794_v2, %v3794_v2  ;;  %v3857_v6 = vrot.slane %v3794_v2, %v5818_v20 }
 0x4d3   : > { %v3864_v7 = vrot.slane %v3850_v5, %v5818_v20  ;;  %v3865_v12 = vcombine.high %v3857_v6, %v3857_v6  ;;  %v3968_v60 = vsel %vm3883_vm2, %v3857_v6, -inf }
 0x4d4   : > { %v3969_v37 = vrot.slane %v3968_v60, 4 }
 0x4d5   : > { %v3866_v8 = vcombine.high %v3864_v7, %v3864_v7  ;;  %v3975_v9 = vsel %vm3883_vm2, %v3865_v12, -inf  ;;  %v3982_v51 = vsel %vm3883_vm2, %v3864_v7, -inf }
 0x4d6   : > { %v3970_v17 = vmax.f32 %v3968_v60, %v3969_v37  ;;  %v3976_v56 = vrot.slane %v3975_v9, 4  ;;  %v3983_v18 = vrot.slane %v3982_v51, 4 }
 0x4d7   : > { %v3989_v14 = vsel %vm3883_vm2, %v3866_v8, -inf  ;;  %vm6814_vm2 = vmmov %vm6808_vm7  ;;  %v4809_v8 = vld [vmem:[%s6715_s6] ss:$0 sm:$0xff] }
 0x4d8   : > { %v3971_v15 = vrot.slane %v3970_v17, 2  ;;  %v3977_v10 = vmax.f32 %v3975_v9, %v3976_v56  ;;  %v3984_v11 = vmax.f32 %v3982_v51, %v3983_v18  ;;  %v3990_v19 = vrot.slane %v3989_v14, 4  ;;  %vm6817_vm5 = vmmov %vm6814_vm2 }
 0x4da   : > { %v3972_v0 = vmax.f32 %v3970_v17, %v3971_v15  ;;  %v3978_v22 = vrot.slane %v3977_v10, 2  ;;  %v3985_v25 = vrot.slane %v3984_v11, 2  ;;  %v3991_v28 = vmax.f32 %v3989_v14, %v3990_v19 }
 0x4dc   : > { %v3973_v47 = vrot.slane %v3972_v0, 1  ;;  %v3979_v29 = vmax.f32 %v3977_v10, %v3978_v22  ;;  %v3986_v30 = vmax.f32 %v3984_v11, %v3985_v25  ;;  %v3992_v31 = vrot.slane %v3991_v28, 2 }
 0x4de   : > { %v3980_v23 = vrot.slane %v3979_v29, 1  ;;  %v3987_v21 = vrot.slane %v3986_v30, 1  ;;  %v3993_v46 = vmax.f32 %v3991_v28, %v3992_v31  ;;  %v3974_v24 = vmax.f32 %v3972_v0, %v3973_v47 }
 0x4e0   : > { %v3981_v32 = vmax.f32 %v3979_v29, %v3980_v23  ;;  %v3988_v33 = vmax.f32 %v3986_v30, %v3987_v21  ;;  %v3994_v34 = vrot.slane %v3993_v46, 1 }
 0x4e2   : > { %v3995_v35 = vmax.f32 %v3993_v46, %v3994_v34  ;;  %v4035_v40 = vsel %vm6814_vm2, %v3981_v32, %v3974_v24 }
 0x4e3   : > { %v4036_v41 = vsel %vm6815_vm14, %v3988_v33, %v4035_v40 }
 0x4e4   : > { %v4037_v42 = vsel %vm6816_vm4, %v3995_v35, %v4036_v41 }
 0x4e5   : > { %4046 = vst.msk [vmem:[#allocation5 + $0x21] sm:$0xf] %vm4042_vm8, %v4037_v42  ;;  %vm4115_vm8 = vcmask 1048320  }
 0x4ec   : > { %v4965_v50 = vld [vmem:[#allocation5 + $0x1a] ss:$8 sps:$4 sm:$0xff]  }
 0x4ed   : > { %4144 = vrot.lane.b32.xlu1 %v4965_v50, %s5013_s20  ;;  %v4971_v45 = vld [vmem:[#allocation5 + $0x22] ss:$8 sps:$4 sm:$0xff]  }
 0x4ee   : > { %v4986_v48 = vld [vmem:[#allocation5 + $0x19] ss:$8 sps:$4 sm:$0xff]   ;;  %4200 = vst.msk [vmem:[#allocation6 + $0x28] sm:$0xff] %vm3782_vm1, %v4971_v45 }
 0x4ef   : > { %v4967_v39 = vld [vmem:[#allocation5 + $0x20] ss:$8 sps:$4 sm:$0xff]   ;;  %4131 = vst.msk [vmem:[#allocation6 + $0x20] sm:$0xff] %vm3782_vm1, %v4986_v48 }
 0x4f0   : > { %v4969_v58 = vld [vmem:[#allocation5 + $0x21] ss:$8 sps:$4 sm:$0xff]  }
 0x4f1   : > { %4163 = vrot.lane.b32.xlu1 %v4967_v39, %s5016_s28  ;;  %v4972_v55 = vld [vmem:[#allocation5 + $0x18] ss:$8 sps:$4 sm:$0xff]  }
 0x4f5   : > { %4181 = vrot.lane.b32.xlu1 %v4969_v58, %s5018_s11  ;;  %v4206_v59 = vld [vmem:[#allocation6 + $0x28] sm:$0xff] }
 0x4f6   : > { %v4209_v54 = vpack.c.bf16 %v4206_v59, %v4203_v16 }
 0x4f8   : > { %4913 = vmatmul.mubr.msk.bf16.vlgmr.msra.gmra.mxu1 %vm3782_vm1, %v4209_v54  ;;  %vm4454_vm1 = vcmask 519168  }
 0x4f9   : > { %4111 = vrot.lane.b32.xlu1 %v4972_v55, %s5018_s11  ;;  %s4831_s11 = sshll.u32 %s6820_s25, 2 }
 0x4fa   : > { %s278_s13 = scalar_lea.vmem %s6716_s7, %s4831_s11 }
 0x518   : > { %v4074_v38 = vpop.permute.xlu1 %4073 }
 0x519   : > { %4079 = vst.msk [vmem:[#allocation6 + $0x18] sm:$0xff] %vm4077_vm12, %v4074_v38  ;;  %v4162_v26 = vpop.permute.xlu0 %4161 }
 0x51a   : > { %4167 = vst.msk [vmem:[#allocation6 + $0x8] sm:$0xff] %vm4096_vm9, %v4162_v26 }
 0x51c   : > { %v4093_v27 = vpop.permute.xlu1 %4092 }
 0x51d   : > { %4098 = vst.msk [vmem:[#allocation6 + $0x18] sm:$0xff] %vm4096_vm9, %v4093_v27  ;;  %v4180_v13 = vpop.permute.xlu0 %4179 }
 0x51e   : > { %4185 = vst.msk [vmem:[#allocation6 + $0x8] sm:$0xff] %vm4115_vm8, %v4180_v13 }
 0x521   : > { %v4110_v61 = vpop.permute.xlu0 %4109 }
 0x522   : > { %4116 = vst.msk [vmem:[#allocation6] sm:$0xff] %vm4115_vm8, %v4110_v61 }
 0x525   : > { %v4202_v62 = vld [vmem:[#allocation6 + $0x8] sm:$0xff] }
 0x529   : > { %v4201_v1 = vld [vmem:[#allocation6] sm:$0xff] }
 0x55f   : > { %v4145_v52 = vpop.permute.xlu1 %4144 }
 0x560   : > { %4149 = vst.msk [vmem:[#allocation6 + $0x20] sm:$0xff] %vm4077_vm12, %v4145_v52  ;;  %vm6818_vm12 = vmmov %vm6814_vm2 }
 0x563   : > { %v4164_v53 = vpop.permute.xlu1 %4163 }
 0x564   : > { %4168 = vst.msk [vmem:[#allocation6 + $0x20] sm:$0xff] %vm4096_vm9, %v4164_v53 }
 0x567   : > { %v4182_v3 = vpop.permute.xlu1 %4181 }
 0x568   : > { %4186 = vst.msk [vmem:[#allocation6 + $0x20] sm:$0xff] %vm4115_vm8, %v4182_v3 }
 0x56b   : > { %v4112_v4 = vpop.permute.xlu1 %4111 }
 0x56c   : > { %4117 = vst.msk [vmem:[#allocation6 + $0x18] sm:$0xff] %vm4115_vm8, %v4112_v4 }
 0x56f   : > { %v4205_v63 = vld [vmem:[#allocation6 + $0x20] sm:$0xff] }
 0x570   : > { %v4208_v57 = vpack.c.bf16 %v4205_v63, %v4202_v62 }
 0x572   : > { %4396 = vmatprep.mubr.bf16.mxu0 %v4208_v57 }
 0x573   : > { %v4204_v2 = vld [vmem:[#allocation6 + $0x18] sm:$0xff] }
 0x574   : > { %v4207_v5 = vpack.c.bf16 %v4204_v2, %v4201_v1 }
 0x576   : > { %4397 = vmatmul.mubr.bf16.vlgmr.msra.gmra.mxu0 %v4207_v5 }
 0x5b8   : > { %v4439_v6 = vpop.f32.mrf.mxu1 }
 0x5ba   : > { %v4914_v7 = vpop.f32.mrf.mxu1 }
 0x5bc   : > { %v4442_v12 = vpop.f32.mrf.mxu1 }
 0x5be   : > { %v4915_v60 = vpop.f32.mrf.mxu1 }
 0x636   : > { %v4865_v37 = vpop.f32.mrf.mxu0 }
 0x638   : > { %v4866_v9 = vpop.f32.mrf.mxu0 }
 0x639   : > { %v4867_v51 = vadd.f32 %v4866_v9, %v4865_v37 }
 0x63a   : > { %v4868_v17 = vpop.f32.mrf.mxu0 }
 0x63b   : > { %v4399_v56 = vadd.f32 %v4867_v51, %v4809_v8 }
 0x63c   : > { %v4869_v18 = vpop.f32.mrf.mxu0 }
 0x63d   : > { %v4440_v14 = vadd.f32 %v4439_v6, %v4399_v56  ;;  %v4870_v15 = vadd.f32 %v4869_v18, %v4868_v17 }
 0x63f   : > { %v4446_v10 = vmax.f32 %v4440_v14, 0.0  ;;  %v4402_v11 = vadd.f32 %v4870_v15, %v4809_v8 }
 0x641   : > { %v4450_v19 = vcombine.high %v4446_v10, %v4446_v10  ;;  %v4443_v0 = vadd.f32 %v4442_v12, %v4402_v11  ;;  %v4455_v22 = vsel %vm4454_vm1, %v4446_v10, -inf }
 0x643   : > { %v4456_v25 = vsel %vm4454_vm1, %v4450_v19, -inf  ;;  %v4447_v28 = vmax.f32 %v4443_v0, 0.0 }
 0x644   : > { %v4457_v47 = vmax.f32 %v4455_v22, %v4456_v25 }
 0x645   : > { %v4451_v29 = vcombine.high %v4447_v28, %v4447_v28  ;;  %v4458_v31 = vsel %vm4454_vm1, %v4447_v28, -inf }
 0x646   : > { %v4469_v30 = vrot.slane %v4457_v47, %v5818_v20 }
 0x647   : > { %v4459_v23 = vsel %vm4454_vm1, %v4451_v29, -inf }
 0x648   : > { %v4470_v21 = vcombine.high %v4469_v30, %v4469_v30  ;;  %v4484_v46 = vsel %vm4483_vm0, %v4469_v30, -inf  ;;  %v4460_v24 = vmax.f32 %v4458_v31, %v4459_v23 }
 0x649   : > { %v4485_v32 = vrot.slane %v4484_v46, 4 }
 0x64a   : > { %v4491_v33 = vsel %vm4483_vm0, %v4470_v21, -inf  ;;  %v4477_v34 = vrot.slane %v4460_v24, %v5818_v20 }
 0x64b   : > { %v4486_v35 = vmax.f32 %v4484_v46, %v4485_v32  ;;  %v4492_v40 = vrot.slane %v4491_v33, 4 }
 0x64c   : > { %v4478_v41 = vcombine.high %v4477_v34, %v4477_v34  ;;  %v4498_v42 = vsel %vm4483_vm0, %v4477_v34, -inf }
 0x64d   : > { %v4487_v44 = vrot.slane %v4486_v35, 2  ;;  %v4493_v49 = vmax.f32 %v4491_v33, %v4492_v40  ;;  %v4499_v50 = vrot.slane %v4498_v42, 4 }
 0x64e   : > { %v4505_v45 = vsel %vm4483_vm0, %v4478_v41, -inf }
 0x64f   : > { %v4488_v48 = vmax.f32 %v4486_v35, %v4487_v44  ;;  %v4494_v39 = vrot.slane %v4493_v49, 2  ;;  %v4500_v43 = vmax.f32 %v4498_v42, %v4499_v50  ;;  %v4506_v36 = vrot.slane %v4505_v45, 4 }
 0x651   : > { %v4489_v58 = vrot.slane %v4488_v48, 1  ;;  %v4495_v16 = vmax.f32 %v4493_v49, %v4494_v39  ;;  %v4501_v59 = vrot.slane %v4500_v43, 2  ;;  %v4507_v54 = vmax.f32 %v4505_v45, %v4506_v36 }
 0x653   : > { %v4496_v20 = vrot.slane %v4495_v16, 1  ;;  %v4502_v55 = vmax.f32 %v4500_v43, %v4501_v59  ;;  %v4508_v38 = vrot.slane %v4507_v54, 2  ;;  %v4490_v26 = vmax.f32 %v4488_v48, %v4489_v58 }
 0x655   : > { %v4497_v27 = vmax.f32 %v4495_v16, %v4496_v20  ;;  %v4503_v13 = vrot.slane %v4502_v55, 1  ;;  %v4509_v61 = vmax.f32 %v4507_v54, %v4508_v38 }
 0x657   : > { %v4516_v52 = vsel %vm6817_vm5, %v4497_v27, %v4490_v26  ;;  %v4510_v53 = vrot.slane %v4509_v61, 1  ;;  %v4504_v3 = vmax.f32 %v4502_v55, %v4503_v13 }
 0x658   : > { %4520 = vst.msk [vmem:[%s278_s13] sm:$0x3] %vm4483_vm0, %v4516_v52 }
 0x659   : > { %v4511_v4 = vmax.f32 %v4509_v61, %v4510_v53 }
 0x65b   : > { %v4517_v62 = vsel %vm6818_vm12, %v4511_v4, %v4504_v3 }
 0x65c   : > { %4521 = vst.msk [vmem:[%s278_s13 + $0x2] sm:$0x3] %vm4483_vm0, %v4517_v62 }
 0x65d PF: > { %s17_s24 = sadd.s32 1, %s4999_s24  }
 0x65e   : > { %p14_p4 = scmp.ge.s32.totalorder %s17_s24, 4  }
 0x660   :  { %16 = sbr.rel (!%p14_p4) target bundleno = 1 (0x1), region = 86 }

</bundles_post_ra>
